<compile_context>
chip_gen: v6e
topology: v6e:2x2x1
jax: 0.10.0
libtpu: 0.0.40
codegen_flags: <defaults>
</compile_context>

<pallas_src>
import functools

import numpy as np
import jax
import jax.numpy as jnp
from jax.experimental import pallas as pl
from jax.experimental.pallas import tpu as pltpu

_VMEM_LIMIT = 48 * 1024 * 1024        # under v7x's 64 MiB physical VMEM
_VMEM_TILE_BUDGET = 36 * 1024 * 1024  # what one conv step may use (estimate)


def _compiler_params(dim_sem):
    return pltpu.CompilerParams(
        dimension_semantics=tuple(dim_sem),
        vmem_limit_bytes=_VMEM_LIMIT,
    )


# ------------------- single-buffering of grid-invariant operands --------------

_BUFFERED_OK = None


def _single_buffer_supported():
    """Probe once whether BlockSpec(pipeline_mode=pl.Buffered(1)) lowers/runs."""
    global _BUFFERED_OK
    if _BUFFERED_OK is None:
        try:
            def _copy(x_ref, o_ref):
                o_ref[...] = x_ref[...]

            with jax.ensure_compile_time_eval():
                x = jnp.arange(8 * 128, dtype=jnp.float32).reshape(8, 128)
                out = pl.pallas_call(
                    _copy,
                    out_shape=jax.ShapeDtypeStruct((16, 128), jnp.float32),
                    grid=(2,),
                    in_specs=[pl.BlockSpec((8, 128), lambda i: (0, 0),
                                           pipeline_mode=pl.Buffered(1))],
                    out_specs=pl.BlockSpec((8, 128), lambda i: (i, 0)),
                )(x)
                jax.block_until_ready(out)
                _BUFFERED_OK = bool(jnp.all(out[:8] == x)) and bool(jnp.all(out[8:] == x))
        except Exception:  # fall back to default double-buffering
            _BUFFERED_OK = False
    return _BUFFERED_OK


def _const_spec(block_shape, index_map):
    """BlockSpec for a grid-invariant operand; single-buffered if supported."""
    if _single_buffer_supported():
        return pl.BlockSpec(block_shape, index_map, pipeline_mode=pl.Buffered(1))
    return pl.BlockSpec(block_shape, index_map)


# ------------------------------ tile-size selection ---------------------------

def _slab_bytes(shape, dtype_bytes):
    """VMEM footprint of a block, incl. (8, 128) tile padding of minor dims."""
    lead = 1
    for d in shape[:-2]:
        lead *= d
    sub = -(-shape[-2] // 8) * 8
    lane = -(-shape[-1] // 128) * 128
    return lead * sub * lane * dtype_bytes


def _tile_vmem_bytes(W, Cin, Cout, K, pool, th):
    """TH-dependent VMEM (output block x2, acc, halo slab, pool scratch)."""
    pad = (K - 1) // 2
    out_h = th // 2 if pool else th
    out_w = W // 2 if pool else W
    b = 2 * _slab_bytes((out_h, out_w, Cout), 2)
    if K > 1:
        b += _slab_bytes((th * W, Cout), 4)
        b += _slab_bytes((th + 2 * pad, W + 2 * pad, Cin), 2)
    if pool:
        b += _slab_bytes((th, W // 2, Cout), 4)
    return b


def _pick_th(H, W, Cin, Cout, K, pool):
    """Row-tile height: TH | H, even when pooling, sized per the layer."""
    step = 2 if pool else 1

    def fix(th):
        th = max(step, min(H, th))
        if pool:
            th += th % 2
            th = min(th, H)
        while th > step and H % th != 0:
            th -= step
        if H % th != 0:
            th = H
        return th

    # Whole-image tiles for deep / small-spatial layers; otherwise size the
    # tile so each MXU call sees M = TH*W >= ~1024 rows (amortizes the ~0.35us
    # per-grid-step overhead and the KxK RHS pushes).
    if Cin >= 256 or H * W <= 4096:
        th = H
    else:
        m_target = 1024 if Cin <= 128 else 512
        th = pl.cdiv(m_target, W)
    th = fix(th)

    # VMEM guard: the image/weight blocks are TH-independent; budget the rest.
    fixed = (2 * _slab_bytes((H, W, Cin), 2)
             + 2 * _slab_bytes((K * K, Cin, Cout), 2))
    budget = max(_VMEM_TILE_BUDGET - fixed, 8 * 1024 * 1024)
    while th > step and _tile_vmem_bytes(W, Cin, Cout, K, pool, th) > budget:
        new_th = fix(max(step, th // 2))
        if new_th >= th:
            break
        th = new_th
    return th


# ------------------------------ conv (+relu +pool) ----------------------------

def _conv_kernel(x_ref, w_ref, b_ref, o_ref, *scratch,
                 K, pad, TH, relu, pool, num_tiles):
    """KxK 'same' conv (stride 1) over one row tile of one NHWC image.

    x_ref:   (1, H, W, Cin)    bf16 full image (block index constant over t)
    w_ref:   (K, K, Cin, Cout) bf16
    b_ref:   (1, Cout)         f32
    o_ref:   (1, TH_out, W_out, Cout) bf16 (halved spatially when pool=True)
    scratch: [acc (TH*W, Cout) f32, pad slab (TH+2p, W+2p, Cin) bf16] if K > 1
             [half (TH, W//2, Cout) f32]                              if pool
    """
    _, H, W, Cin = x_ref.shape
    Cout = o_ref.shape[-1]
    M = TH * W

    si = 0
    acc_ref = pad_ref = half_ref = None
    if K > 1:
        acc_ref = scratch[si]; si += 1
        pad_ref = scratch[si]; si += 1
    if pool:
        half_ref = scratch[si]; si += 1

    t = pl.program_id(1)
    r0 = pl.multiple_of(t * TH, TH)          # first output row of this tile

    # ---- Assemble the zero-padded halo slab; zero only the border strips.
    if K > 1:
        zrow = jnp.zeros((pad, W, Cin), jnp.bfloat16)
        zcol = jnp.zeros((TH + 2 * pad, pad, Cin), jnp.bfloat16)
        pad_ref[:, pl.ds(0, pad), :] = zcol
        pad_ref[:, pl.ds(W + pad, pad), :] = zcol
        if num_tiles == 1:
            pad_ref[pl.ds(0, pad), pl.ds(pad, W), :] = zrow
            pad_ref[pl.ds(TH + pad, pad), pl.ds(pad, W), :] = zrow
            pad_ref[pl.ds(pad, TH), pl.ds(pad, W), :] = x_ref[0]
        else:
            @pl.when(t == 0)
            def _():
                pad_ref[pl.ds(0, pad), pl.ds(pad, W), :] = zrow
                pad_ref[pl.ds(pad, TH + pad), pl.ds(pad, W), :] = (
                    x_ref[0, pl.ds(0, TH + pad), :, :])

            @pl.when(t == num_tiles - 1)
            def _():
                pad_ref[pl.ds(TH + pad, pad), pl.ds(pad, W), :] = zrow
                pad_ref[pl.ds(0, TH + pad), pl.ds(pad, W), :] = (
                    x_ref[0, pl.ds(H - TH - pad, TH + pad), :, :])

            if num_tiles > 2:
                @pl.when(jnp.logical_and(t > 0, t < num_tiles - 1))
                def _():
                    pad_ref[pl.ds(0, TH + 2 * pad), pl.ds(pad, W), :] = (
                        x_ref[0, pl.ds(r0 - pad, TH + 2 * pad), :, :])

    # ---- MXU: fold the kx taps into a register partial, one acc pass per ky.
    bias = b_ref[...]
    acc = None
    if K == 1:
        lhs = x_ref[0, pl.ds(r0, TH), :, :].reshape(M, Cin)
        acc = jnp.dot(lhs, w_ref[0, 0], preferred_element_type=jnp.float32)
    else:
        for ky in range(K):
            part = None
            for kx in range(K):
                lhs = pad_ref[pl.ds(ky, TH), pl.ds(kx, W), :].reshape(M, Cin)
                contrib = jnp.dot(lhs, w_ref[ky, kx],
                                  preferred_element_type=jnp.float32)
                part = contrib if part is None else part + contrib
            if ky == 0:
                acc_ref[...] = part
            else:
                acc_ref[...] += part

    # ---- Epilogue.
    if not pool:
        y = (acc if acc is not None else acc_ref[...]) + bias
        if relu:
            y = jnp.maximum(y, 0.0)
        o_ref[0] = y.reshape(TH, W, Cout).astype(o_ref.dtype)
    else:
        # 2x2/2 max-pool on the raw conv accumulation (pooling commutes with
        # the per-channel bias add and with ReLU), then bias+ReLU on the
        # quarter-size result. Column pairs are adjacent sublanes of the flat
        # (TH*W, Cout) accumulator; row pairs are stride-2 rows of half_ref.
        TH2, W2 = TH // 2, W // 2
        colmax = jnp.maximum(acc_ref[pl.ds(0, M // 2, stride=2), :],
                             acc_ref[pl.ds(1, M // 2, stride=2), :])
        half_ref[...] = colmax.reshape(TH, W2, Cout)
        pooled = jnp.maximum(half_ref[pl.ds(0, TH2, stride=2), :, :],
                             half_ref[pl.ds(1, TH2, stride=2), :, :])
        y = pooled.reshape(TH2 * W2, Cout) + bias
        if relu:
            y = jnp.maximum(y, 0.0)
        o_ref[0] = y.reshape(TH2, W2, Cout).astype(o_ref.dtype)


def conv2d(x, w, b, *, relu=True, pool=False):
    """Stride-1 'same' conv + bias (+ReLU) (+fused 2x2/2 max-pool) in NHWC.

    x: (N, H, W, Cin); w: (K, K, Cin, Cout) HWIO; b: (Cout,). Returns bf16 NHWC.
    """
    N, H, W, Cin = x.shape
    K, Cout = w.shape[0], w.shape[-1]
    pad = (K - 1) // 2
    if pool:
        assert K > 1 and H % 2 == 0 and W % 2 == 0, (
            "fused max-pool needs a KxK (K>1) conv and even H, W")

    TH = _pick_th(H, W, Cin, Cout, K, pool)
    num_tiles = H // TH
    TH_out = TH // 2 if pool else TH
    W_out = W // 2 if pool else W
    H_out = H // 2 if pool else H

    x = x.astype(jnp.bfloat16)
    w = w.astype(jnp.bfloat16)
    b = b.astype(jnp.float32).reshape(1, Cout)

    scratch = []
    if K > 1:
        scratch.append(pltpu.VMEM((TH * W, Cout), jnp.float32))
        scratch.append(pltpu.VMEM((TH + 2 * pad, W + 2 * pad, Cin), jnp.bfloat16))
    if pool:
        scratch.append(pltpu.VMEM((TH, W // 2, Cout), jnp.float32))

    kernel = functools.partial(_conv_kernel, K=K, pad=pad, TH=TH, relu=relu,
                               pool=pool, num_tiles=num_tiles)
    return pl.pallas_call(
        kernel,
        out_shape=jax.ShapeDtypeStruct((N, H_out, W_out, Cout), jnp.bfloat16),
        grid=(N, num_tiles),
        in_specs=[
            pl.BlockSpec((1, H, W, Cin), lambda n, t: (n, 0, 0, 0)),
            _const_spec((K, K, Cin, Cout), lambda n, t: (0, 0, 0, 0)),
            _const_spec((1, Cout), lambda n, t: (0, 0)),
        ],
        out_specs=pl.BlockSpec((1, TH_out, W_out, Cout), lambda n, t: (n, t, 0, 0)),
        scratch_shapes=scratch,
        compiler_params=_compiler_params(("parallel", "arbitrary")),
    )(x, w, b)


# ---------------------- fused conv6_2 + bilinear upsample ---------------------

def _bilinear_matrix(out_size, in_size):
    """PyTorch F.interpolate(mode='bilinear', align_corners=False) weights."""
    scale = in_size / out_size
    i = np.arange(out_size)
    src = np.maximum((i + 0.5) * scale - 0.5, 0.0)
    i0 = np.minimum(np.floor(src).astype(np.int64), in_size - 1)
    i1 = np.minimum(i0 + 1, in_size - 1)
    w1 = np.clip(src - i0, 0.0, 1.0)
    m = np.zeros((out_size, in_size), np.float32)
    m[np.arange(out_size), i0] += (1.0 - w1).astype(np.float32)
    m[np.arange(out_size), i1] += w1.astype(np.float32)
    return jnp.asarray(m)


def _head_kernel(x_ref, w_ref, b_ref, ry_ref, rxt_ref, o_ref):
    """conv6_2 (1x1, 512->2, no ReLU) + bilinear resize; writes NCHW directly.

    x_ref: (1, h, w, Cin) bf16 ; w_ref: (Cin, 2) bf16 ; b_ref: (1, 2) f32
    ry_ref: (H, h) f32 ; rxt_ref: (w, W) f32 ; o_ref: (1, 2, H, W) f32
    out[c] = Ry @ seg[..., c] @ Rx^T
    """
    _, h, w, Cin = x_ref.shape
    seg = jnp.dot(x_ref[0].reshape(h * w, Cin), w_ref[...],
                  preferred_element_type=jnp.float32) + b_ref[...]
    seg = seg.reshape(h, w, 2)
    ry = ry_ref[...]
    rxt = rxt_ref[...]
    for c in range(2):
        tmp = jnp.dot(ry, seg[:, :, c], preferred_element_type=jnp.float32)
        o_ref[0, c] = jnp.dot(tmp, rxt, preferred_element_type=jnp.float32)


def head_seg_upsample(x, w, b, out_hw):
    """x: (N, h, w, Cin) NHWC -> hand_seg (N, 2, out_hw, out_hw) NCHW fp32."""
    N, h, w_sp, Cin = x.shape
    H = W = out_hw
    ry = _bilinear_matrix(H, h)             # (H, h)
    rxt = _bilinear_matrix(W, w_sp).T       # (w, W)
    x = x.astype(jnp.bfloat16)
    wmat = w.reshape(Cin, 2).astype(jnp.bfloat16)
    bvec = b.astype(jnp.float32).reshape(1, 2)
    return pl.pallas_call(
        _head_kernel,
        out_shape=jax.ShapeDtypeStruct((N, 2, H, W), jnp.float32),
        grid=(N,),
        in_specs=[
            pl.BlockSpec((1, h, w_sp, Cin), lambda n: (n, 0, 0, 0)),
            _const_spec((Cin, 2), lambda n: (0, 0)),
            _const_spec((1, 2), lambda n: (0, 0)),
            _const_spec((H, h), lambda n: (0, 0)),
            _const_spec((w_sp, W), lambda n: (0, 0)),
        ],
        out_specs=pl.BlockSpec((1, 2, H, W), lambda n: (n, 0, 0, 0)),
        compiler_params=_compiler_params(("parallel",)),
    )(x, wmat, bvec, ry, rxt)


# ---------------------------- parameters & forward ----------------------------

_LAYER_DEFS = [
    ("conv1_1", 3, 64, 3), ("conv1_2", 64, 64, 3),
    ("conv2_1", 64, 128, 3), ("conv2_2", 128, 128, 3),
    ("conv3_1", 128, 256, 3), ("conv3_2", 256, 256, 3),
    ("conv3_3", 256, 256, 3), ("conv3_4", 256, 256, 3),
    ("conv4_1", 256, 512, 3), ("conv4_2", 512, 512, 3),
    ("conv4_3", 512, 512, 3), ("conv4_4", 512, 512, 3),
    ("conv5_1", 512, 512, 3), ("conv5_2", 512, 128, 3),
    ("conv6_1", 128, 512, 1), ("conv6_2", 512, 2, 1),
]


def init_params(key):
    params = {}
    for name, cin, cout, k in _LAYER_DEFS:
        key, kw, kb = jax.random.split(key, 3)
        fan_in = cin * k * k
        w = jax.random.normal(kw, (k, k, cin, cout), jnp.float32) / np.sqrt(fan_in)
        b = 0.01 * jax.random.normal(kb, (cout,), jnp.float32)
        params[name] = (w.astype(jnp.bfloat16), b)   # bf16 weights, f32 bias
    return params


def hand_seg_net_forward(x_nchw, params, crop_size=256):
    """HandSegNet.model_conv forward; returns hand_seg as NCHW (N, 2, H, H)."""
    del crop_size  # only used by the (undefined) crop post-processing
    N, _, H, W = x_nchw.shape
    x = jnp.transpose(x_nchw, (0, 2, 3, 1)).astype(jnp.bfloat16)  # NCHW -> NHWC

    out = conv2d(x, *params["conv1_1"], relu=True)
    out = conv2d(out, *params["conv1_2"], relu=True, pool=True)   # fused relu+pool
    out = conv2d(out, *params["conv2_1"], relu=True)
    out = conv2d(out, *params["conv2_2"], relu=True, pool=True)
    out = conv2d(out, *params["conv3_1"], relu=True)
    out = conv2d(out, *params["conv3_2"], relu=True)
    out = conv2d(out, *params["conv3_3"], relu=True)
    out = conv2d(out, *params["conv3_4"], relu=True, pool=True)
    out = conv2d(out, *params["conv4_1"], relu=True)
    out = conv2d(out, *params["conv4_2"], relu=True)
    out = conv2d(out, *params["conv4_3"], relu=True)
    out = conv2d(out, *params["conv4_4"], relu=True)
    out = conv2d(out, *params["conv5_1"], relu=True)
    out = conv2d(out, *params["conv5_2"], relu=True)
    out = conv2d(out, *params["conv6_1"], relu=True)              # 1x1 conv
    w62, b62 = params["conv6_2"]
    hand_seg = head_seg_upsample(out, w62, b62, H)                # conv6_2 + bilinear

    # TODO(synk): single_obj_scoremap / cal_center_bb / crop_image_from_xy are not
    # defined in the provided module source, so the crop/center/mask outputs of
    # HandSegNet.forward cannot be reproduced; only hand_seg is returned.
    return hand_seg


# ------------------------------------ main ------------------------------------

if __name__ == "__main__":
    key = jax.random.PRNGKey(0)
    pkey, xkey = jax.random.split(key)
    params = init_params(pkey)
    # Small input consistent with the module: NCHW, 3 channels, 16x16 spatial.
    x = jax.random.normal(xkey, (2, 3, 16, 16), jnp.float32)
    hand_seg = hand_seg_net_forward(x, params)
    jax.block_until_ready(hand_seg)
    assert hand_seg.shape == (2, 2, 16, 16)
    print("KERNEL_OK")
</pallas_src>

<mosaic_0001>
module attributes {stable_mosaic.version = 11 : i64} {
  func.func @_copy(%arg0: i32, %arg1: memref<8x128xf32, #tpu.memory_space<vmem>>, %arg2: memref<8x128xf32, #tpu.memory_space<vmem>>) attributes {dimension_semantics = [#tpu.dimension_semantics<arbitrary>], iteration_bounds = array<i64: 2>, scalar_prefetch = 0 : i64, scratch_operands = 0 : i64, tpu.core_type = #tpu.core_type<tc>, window_params = [{pipeline_mode = #tpu.pipeline_mode<synchronous>, transform_indices = @transform_0, window_bounds = array<i64: 8, 128>}, {transform_indices = @transform_1, window_bounds = array<i64: 8, 128>}]} {
    %c0 = arith.constant 0 : index
    %c0_0 = arith.constant 0 : index
    %0 = vector.load %arg1[%c0, %c0_0] : memref<8x128xf32, #tpu.memory_space<vmem>>, vector<8x128xf32>
    %c0_1 = arith.constant 0 : index
    %c0_2 = arith.constant 0 : index
    %1 = vector.load %arg2[%c0_1, %c0_2] : memref<8x128xf32, #tpu.memory_space<vmem>>, vector<8x128xf32>
    tpu.vector_store %arg2[%c0_1, %c0_2], %0 {strides = array<i32>} : memref<8x128xf32, #tpu.memory_space<vmem>>, vector<8x128xf32>,
    return
  }
  func.func @transform_0(%arg0: i32) -> (i32, i32) {
    %c0_i32 = arith.constant 0 : i32
    %c0_i32_0 = arith.constant 0 : i32
    %c0_i32_1 = arith.constant 0 : i32
    return %c0_i32, %c0_i32_0 : i32, i32
  }
  func.func @transform_1(%arg0: i32) -> (i32, i32) {
    %c0_i32 = arith.constant 0 : i32
    %c0_i32_0 = arith.constant 0 : i32
    return %arg0, %c0_i32 : i32, i32
  }
}

module attributes {stable_mosaic.version = 11 : i64} {
  func.func @_conv_kernel(%arg0: i32, %arg1: i32, %arg2: memref<1x16x16x3xbf16, #tpu.memory_space<vmem>>, %arg3: memref<3x3x3x64xbf16, #tpu.memory_space<vmem>>, %arg4: memref<1x64xf32, #tpu.memory_space<vmem>>, %arg5: memref<1x16x16x64xbf16, #tpu.memory_space<vmem>>, %arg6: memref<256x64xf32, #tpu.memory_space<vmem>>, %arg7: memref<18x18x3xbf16, #tpu.memory_space<vmem>>) attributes {dimension_semantics = [#tpu.dimension_semantics<parallel>, #tpu.dimension_semantics<arbitrary>], iteration_bounds = array<i64: 2, 1>, scalar_prefetch = 0 : i64, scratch_operands = 2 : i64, tpu.core_type = #tpu.core_type<tc>, window_params = [{transform_indices = @transform_0, window_bounds = array<i64: 1, 16, 16, 3>}, {pipeline_mode = #tpu.pipeline_mode<synchronous>, transform_indices = @transform_1, window_bounds = array<i64: 3, 3, 3, 64>}, {pipeline_mode = #tpu.pipeline_mode<synchronous>, transform_indices = @transform_2, window_bounds = array<i64: 1, 64>}, {transform_indices = @transform_3, window_bounds = array<i64: 1, 16, 16, 64>}]} {
    %cst = arith.constant 0.000000e+00 : bf16
    %0 = vector.broadcast %cst : bf16 to vector<1x16x3xbf16>
    %cst_0 = arith.constant 0.000000e+00 : bf16
    %1 = vector.broadcast %cst_0 : bf16 to vector<18x1x3xbf16>
    %c0 = arith.constant 0 : index
    %c0_1 = arith.constant 0 : index
    %c0_2 = arith.constant 0 : index
    %2 = vector.load %arg7[%c0, %c0_1, %c0_2] : memref<18x18x3xbf16, #tpu.memory_space<vmem>>, vector<18x1x3xbf16>
    tpu.vector_store %arg7[%c0, %c0_1, %c0_2], %1 {strides = array<i32>} : memref<18x18x3xbf16, #tpu.memory_space<vmem>>, vector<18x1x3xbf16>,
    %c0_3 = arith.constant 0 : index
    %c17 = arith.constant 17 : index
    %c0_4 = arith.constant 0 : index
    %3 = vector.load %arg7[%c0_3, %c17, %c0_4] : memref<18x18x3xbf16, #tpu.memory_space<vmem>>, vector<18x1x3xbf16>
    tpu.vector_store %arg7[%c0_3, %c17, %c0_4], %1 {strides = array<i32>} : memref<18x18x3xbf16, #tpu.memory_space<vmem>>, vector<18x1x3xbf16>,
    %c0_5 = arith.constant 0 : index
    %c1 = arith.constant 1 : index
    %c0_6 = arith.constant 0 : index
    %4 = vector.load %arg7[%c0_5, %c1, %c0_6] : memref<18x18x3xbf16, #tpu.memory_space<vmem>>, vector<1x16x3xbf16>
    tpu.vector_store %arg7[%c0_5, %c1, %c0_6], %0 {strides = array<i32>} : memref<18x18x3xbf16, #tpu.memory_space<vmem>>, vector<1x16x3xbf16>,
    %c17_7 = arith.constant 17 : index
    %c1_8 = arith.constant 1 : index
    %c0_9 = arith.constant 0 : index
    %5 = vector.load %arg7[%c17_7, %c1_8, %c0_9] : memref<18x18x3xbf16, #tpu.memory_space<vmem>>, vector<1x16x3xbf16>
    tpu.vector_store %arg7[%c17_7, %c1_8, %c0_9], %0 {strides = array<i32>} : memref<18x18x3xbf16, #tpu.memory_space<vmem>>, vector<1x16x3xbf16>,
    %c0_10 = arith.constant 0 : index
    %c0_11 = arith.constant 0 : index
    %c0_12 = arith.constant 0 : index
    %c0_13 = arith.constant 0 : index
    %6 = vector.load %arg2[%c0_10, %c0_11, %c0_12, %c0_13] : memref<1x16x16x3xbf16, #tpu.memory_space<vmem>>, vector<1x16x16x3xbf16>
    %7 = vector.shape_cast %6 : vector<1x16x16x3xbf16> to vector<16x16x3xbf16>
    %c1_14 = arith.constant 1 : index
    %c1_15 = arith.constant 1 : index
    %c0_16 = arith.constant 0 : index
    %8 = vector.load %arg7[%c1_14, %c1_15, %c0_16] : memref<18x18x3xbf16, #tpu.memory_space<vmem>>, vector<16x16x3xbf16>
    tpu.vector_store %arg7[%c1_14, %c1_15, %c0_16], %7 {strides = array<i32>} : memref<18x18x3xbf16, #tpu.memory_space<vmem>>, vector<16x16x3xbf16>,
    %c0_17 = arith.constant 0 : index
    %c0_18 = arith.constant 0 : index
    %9 = vector.load %arg4[%c0_17, %c0_18] : memref<1x64xf32, #tpu.memory_space<vmem>>, vector<1x64xf32>
    %c0_19 = arith.constant 0 : index
    %c0_20 = arith.constant 0 : index
    %c0_21 = arith.constant 0 : index
    %10 = vector.load %arg7[%c0_19, %c0_20, %c0_21] : memref<18x18x3xbf16, #tpu.memory_space<vmem>>, vector<16x16x3xbf16>
    %11 = vector.shape_cast %10 : vector<16x16x3xbf16> to vector<256x3xbf16>
    %c0_22 = arith.constant 0 : index
    %c0_23 = arith.constant 0 : index
    %c0_24 = arith.constant 0 : index
    %c0_25 = arith.constant 0 : index
    %12 = vector.load %arg3[%c0_22, %c0_23, %c0_24, %c0_25] : memref<3x3x3x64xbf16, #tpu.memory_space<vmem>>, vector<1x1x3x64xbf16>
    %13 = vector.shape_cast %12 : vector<1x1x3x64xbf16> to vector<3x64xbf16>
    %cst_26 = arith.constant dense<0.000000e+00> : vector<256x64xf32>
    %14 = tpu.matmul %11, %13, %cst_26 {dimension_numbers = #tpu.dot_dimension_numbers<[1], [0], [0], [1], [0, 0, 1, 1], [], []>} : vector<256x3xbf16>, vector<3x64xbf16>, vector<256x64xf32> -> vector<256x64xf32>
    %c0_27 = arith.constant 0 : index
    %c1_28 = arith.constant 1 : index
    %c0_29 = arith.constant 0 : index
    %15 = vector.load %arg7[%c0_27, %c1_28, %c0_29] : memref<18x18x3xbf16, #tpu.memory_space<vmem>>, vector<16x16x3xbf16>
    %16 = vector.shape_cast %15 : vector<16x16x3xbf16> to vector<256x3xbf16>
    %c0_30 = arith.constant 0 : index
    %c1_31 = arith.constant 1 : index
    %c0_32 = arith.constant 0 : index
    %c0_33 = arith.constant 0 : index
    %17 = vector.load %arg3[%c0_30, %c1_31, %c0_32, %c0_33] : memref<3x3x3x64xbf16, #tpu.memory_space<vmem>>, vector<1x1x3x64xbf16>
    %18 = vector.shape_cast %17 : vector<1x1x3x64xbf16> to vector<3x64xbf16>
    %cst_34 = arith.constant dense<0.000000e+00> : vector<256x64xf32>
    %19 = tpu.matmul %16, %18, %cst_34 {dimension_numbers = #tpu.dot_dimension_numbers<[1], [0], [0], [1], [0, 0, 1, 1], [], []>} : vector<256x3xbf16>, vector<3x64xbf16>, vector<256x64xf32> -> vector<256x64xf32>
    %20 = arith.addf %14, %19 : vector<256x64xf32>
    %c0_35 = arith.constant 0 : index
    %c2 = arith.constant 2 : index
    %c0_36 = arith.constant 0 : index
    %21 = vector.load %arg7[%c0_35, %c2, %c0_36] : memref<18x18x3xbf16, #tpu.memory_space<vmem>>, vector<16x16x3xbf16>
    %22 = vector.shape_cast %21 : vector<16x16x3xbf16> to vector<256x3xbf16>
    %c0_37 = arith.constant 0 : index
    %c2_38 = arith.constant 2 : index
    %c0_39 = arith.constant 0 : index
    %c0_40 = arith.constant 0 : index
    %23 = vector.load %arg3[%c0_37, %c2_38, %c0_39, %c0_40] : memref<3x3x3x64xbf16, #tpu.memory_space<vmem>>, vector<1x1x3x64xbf16>
    %24 = vector.shape_cast %23 : vector<1x1x3x64xbf16> to vector<3x64xbf16>
    %cst_41 = arith.constant dense<0.000000e+00> : vector<256x64xf32>
    %25 = tpu.matmul %22, %24, %cst_41 {dimension_numbers = #tpu.dot_dimension_numbers<[1], [0], [0], [1], [0, 0, 1, 1], [], []>} : vector<256x3xbf16>, vector<3x64xbf16>, vector<256x64xf32> -> vector<256x64xf32>
    %26 = arith.addf %20, %25 : vector<256x64xf32>
    %c0_42 = arith.constant 0 : index
    %c0_43 = arith.constant 0 : index
    %27 = vector.load %arg6[%c0_42, %c0_43] : memref<256x64xf32, #tpu.memory_space<vmem>>, vector<256x64xf32>
    tpu.vector_store %arg6[%c0_42, %c0_43], %26 {strides = array<i32>} : memref<256x64xf32, #tpu.memory_space<vmem>>, vector<256x64xf32>,
    %c1_44 = arith.constant 1 : index
    %c0_45 = arith.constant 0 : index
    %c0_46 = arith.constant 0 : index
    %28 = vector.load %arg7[%c1_44, %c0_45, %c0_46] : memref<18x18x3xbf16, #tpu.memory_space<vmem>>, vector<16x16x3xbf16>
    %29 = vector.shape_cast %28 : vector<16x16x3xbf16> to vector<256x3xbf16>
    %c1_47 = arith.constant 1 : index
    %c0_48 = arith.constant 0 : index
    %c0_49 = arith.constant 0 : index
    %c0_50 = arith.constant 0 : index
    %30 = vector.load %arg3[%c1_47, %c0_48, %c0_49, %c0_50] : memref<3x3x3x64xbf16, #tpu.memory_space<vmem>>, vector<1x1x3x64xbf16>
    %31 = vector.shape_cast %30 : vector<1x1x3x64xbf16> to vector<3x64xbf16>
    %cst_51 = arith.constant dense<0.000000e+00> : vector<256x64xf32>
    %32 = tpu.matmul %29, %31, %cst_51 {dimension_numbers = #tpu.dot_dimension_numbers<[1], [0], [0], [1], [0, 0, 1, 1], [], []>} : vector<256x3xbf16>, vector<3x64xbf16>, vector<256x64xf32> -> vector<256x64xf32>
    %c1_52 = arith.constant 1 : index
    %c1_53 = arith.constant 1 : index
    %c0_54 = arith.constant 0 : index
    %33 = vector.load %arg7[%c1_52, %c1_53, %c0_54] : memref<18x18x3xbf16, #tpu.memory_space<vmem>>, vector<16x16x3xbf16>
    %34 = vector.shape_cast %33 : vector<16x16x3xbf16> to vector<256x3xbf16>
    %c1_55 = arith.constant 1 : index
    %c1_56 = arith.constant 1 : index
    %c0_57 = arith.constant 0 : index
    %c0_58 = arith.constant 0 : index
    %35 = vector.load %arg3[%c1_55, %c1_56, %c0_57, %c0_58] : memref<3x3x3x64xbf16, #tpu.memory_space<vmem>>, vector<1x1x3x64xbf16>
    %36 = vector.shape_cast %35 : vector<1x1x3x64xbf16> to vector<3x64xbf16>
    %cst_59 = arith.constant dense<0.000000e+00> : vector<256x64xf32>
    %37 = tpu.matmul %34, %36, %cst_59 {dimension_numbers = #tpu.dot_dimension_numbers<[1], [0], [0], [1], [0, 0, 1, 1], [], []>} : vector<256x3xbf16>, vector<3x64xbf16>, vector<256x64xf32> -> vector<256x64xf32>
    %38 = arith.addf %32, %37 : vector<256x64xf32>
    %c1_60 = arith.constant 1 : index
    %c2_61 = arith.constant 2 : index
    %c0_62 = arith.constant 0 : index
    %39 = vector.load %arg7[%c1_60, %c2_61, %c0_62] : memref<18x18x3xbf16, #tpu.memory_space<vmem>>, vector<16x16x3xbf16>
    %40 = vector.shape_cast %39 : vector<16x16x3xbf16> to vector<256x3xbf16>
    %c1_63 = arith.constant 1 : index
    %c2_64 = arith.constant 2 : index
    %c0_65 = arith.constant 0 : index
    %c0_66 = arith.constant 0 : index
    %41 = vector.load %arg3[%c1_63, %c2_64, %c0_65, %c0_66] : memref<3x3x3x64xbf16, #tpu.memory_space<vmem>>, vector<1x1x3x64xbf16>
    %42 = vector.shape_cast %41 : vector<1x1x3x64xbf16> to vector<3x64xbf16>
    %cst_67 = arith.constant dense<0.000000e+00> : vector<256x64xf32>
    %43 = tpu.matmul %40, %42, %cst_67 {dimension_numbers = #tpu.dot_dimension_numbers<[1], [0], [0], [1], [0, 0, 1, 1], [], []>} : vector<256x3xbf16>, vector<3x64xbf16>, vector<256x64xf32> -> vector<256x64xf32>
    %44 = arith.addf %38, %43 : vector<256x64xf32>
    %c0_68 = arith.constant 0 : index
    %c0_69 = arith.constant 0 : index
    %45 = vector.load %arg6[%c0_68, %c0_69] : memref<256x64xf32, #tpu.memory_space<vmem>>, vector<256x64xf32>
    %46 = arith.addf %45, %44 : vector<256x64xf32>
    %c0_70 = arith.constant 0 : index
    %c0_71 = arith.constant 0 : index
    %47 = vector.load %arg6[%c0_70, %c0_71] : memref<256x64xf32, #tpu.memory_space<vmem>>, vector<256x64xf32>
    tpu.vector_store %arg6[%c0_70, %c0_71], %46 {strides = array<i32>} : memref<256x64xf32, #tpu.memory_space<vmem>>, vector<256x64xf32>,
    %c2_72 = arith.constant 2 : index
    %c0_73 = arith.constant 0 : index
    %c0_74 = arith.constant 0 : index
    %48 = vector.load %arg7[%c2_72, %c0_73, %c0_74] : memref<18x18x3xbf16, #tpu.memory_space<vmem>>, vector<16x16x3xbf16>
    %49 = vector.shape_cast %48 : vector<16x16x3xbf16> to vector<256x3xbf16>
    %c2_75 = arith.constant 2 : index
    %c0_76 = arith.constant 0 : index
    %c0_77 = arith.constant 0 : index
    %c0_78 = arith.constant 0 : index
    %50 = vector.load %arg3[%c2_75, %c0_76, %c0_77, %c0_78] : memref<3x3x3x64xbf16, #tpu.memory_space<vmem>>, vector<1x1x3x64xbf16>
    %51 = vector.shape_cast %50 : vector<1x1x3x64xbf16> to vector<3x64xbf16>
    %cst_79 = arith.constant dense<0.000000e+00> : vector<256x64xf32>
    %52 = tpu.matmul %49, %51, %cst_79 {dimension_numbers = #tpu.dot_dimension_numbers<[1], [0], [0], [1], [0, 0, 1, 1], [], []>} : vector<256x3xbf16>, vector<3x64xbf16>, vector<256x64xf32> -> vector<256x64xf32>
    %c2_80 = arith.constant 2 : index
    %c1_81 = arith.constant 1 : index
    %c0_82 = arith.constant 0 : index
    %53 = vector.load %arg7[%c2_80, %c1_81, %c0_82] : memref<18x18x3xbf16, #tpu.memory_space<vmem>>, vector<16x16x3xbf16>
    %54 = vector.shape_cast %53 : vector<16x16x3xbf16> to vector<256x3xbf16>
    %c2_83 = arith.constant 2 : index
    %c1_84 = arith.constant 1 : index
    %c0_85 = arith.constant 0 : index
    %c0_86 = arith.constant 0 : index
    %55 = vector.load %arg3[%c2_83, %c1_84, %c0_85, %c0_86] : memref<3x3x3x64xbf16, #tpu.memory_space<vmem>>, vector<1x1x3x64xbf16>
    %56 = vector.shape_cast %55 : vector<1x1x3x64xbf16> to vector<3x64xbf16>
    %cst_87 = arith.constant dense<0.000000e+00> : vector<256x64xf32>
    %57 = tpu.matmul %54, %56, %cst_87 {dimension_numbers = #tpu.dot_dimension_numbers<[1], [0], [0], [1], [0, 0, 1, 1], [], []>} : vector<256x3xbf16>, vector<3x64xbf16>, vector<256x64xf32> -> vector<256x64xf32>
    %58 = arith.addf %52, %57 : vector<256x64xf32>
    %c2_88 = arith.constant 2 : index
    %c2_89 = arith.constant 2 : index
    %c0_90 = arith.constant 0 : index
    %59 = vector.load %arg7[%c2_88, %c2_89, %c0_90] : memref<18x18x3xbf16, #tpu.memory_space<vmem>>, vector<16x16x3xbf16>
    %60 = vector.shape_cast %59 : vector<16x16x3xbf16> to vector<256x3xbf16>
    %c2_91 = arith.constant 2 : index
    %c2_92 = arith.constant 2 : index
    %c0_93 = arith.constant 0 : index
    %c0_94 = arith.constant 0 : index
    %61 = vector.load %arg3[%c2_91, %c2_92, %c0_93, %c0_94] : memref<3x3x3x64xbf16, #tpu.memory_space<vmem>>, vector<1x1x3x64xbf16>
    %62 = vector.shape_cast %61 : vector<1x1x3x64xbf16> to vector<3x64xbf16>
    %cst_95 = arith.constant dense<0.000000e+00> : vector<256x64xf32>
    %63 = tpu.matmul %60, %62, %cst_95 {dimension_numbers = #tpu.dot_dimension_numbers<[1], [0], [0], [1], [0, 0, 1, 1], [], []>} : vector<256x3xbf16>, vector<3x64xbf16>, vector<256x64xf32> -> vector<256x64xf32>
    %64 = arith.addf %58, %63 : vector<256x64xf32>
    %c0_96 = arith.constant 0 : index
    %c0_97 = arith.constant 0 : index
    %65 = vector.load %arg6[%c0_96, %c0_97] : memref<256x64xf32, #tpu.memory_space<vmem>>, vector<256x64xf32>
    %66 = arith.addf %65, %64 : vector<256x64xf32>
    %c0_98 = arith.constant 0 : index
    %c0_99 = arith.constant 0 : index
    %67 = vector.load %arg6[%c0_98, %c0_99] : memref<256x64xf32, #tpu.memory_space<vmem>>, vector<256x64xf32>
    tpu.vector_store %arg6[%c0_98, %c0_99], %66 {strides = array<i32>} : memref<256x64xf32, #tpu.memory_space<vmem>>, vector<256x64xf32>,
    %c0_100 = arith.constant 0 : index
    %c0_101 = arith.constant 0 : index
    %68 = vector.load %arg6[%c0_100, %c0_101] : memref<256x64xf32, #tpu.memory_space<vmem>>, vector<256x64xf32>
    %69 = vector.broadcast %9 : vector<1x64xf32> to vector<256x64xf32>
    %70 = arith.addf %68, %69 : vector<256x64xf32>
    %cst_102 = arith.constant 0.000000e+00 : f32
    %71 = vector.broadcast %cst_102 : f32 to vector<256x64xf32>
    %72 = arith.maximumf %70, %71 : vector<256x64xf32>
    %73 = vector.shape_cast %72 : vector<256x64xf32> to vector<16x16x64xf32>
    %74 = arith.truncf %73 : vector<16x16x64xf32> to vector<16x16x64xbf16>
    %c0_103 = arith.constant 0 : index
    %c0_104 = arith.constant 0 : index
    %c0_105 = arith.constant 0 : index
    %c0_106 = arith.constant 0 : index
    %75 = vector.load %arg5[%c0_103, %c0_104, %c0_105, %c0_106] : memref<1x16x16x64xbf16, #tpu.memory_space<vmem>>, vector<1x16x16x64xbf16>
    %76 = vector.shape_cast %75 : vector<1x16x16x64xbf16> to vector<16x16x64xbf16>
    %77 = vector.shape_cast %74 : vector<16x16x64xbf16> to vector<1x16x16x64xbf16>
    tpu.vector_store %arg5[%c0_103, %c0_104, %c0_105, %c0_106], %77 {strides = array<i32>} : memref<1x16x16x64xbf16, #tpu.memory_space<vmem>>, vector<1x16x16x64xbf16>,
    return
  }
  func.func @transform_0(%arg0: i32, %arg1: i32) -> (i32, i32, i32, i32) {
    %c0_i32 = arith.constant 0 : i32
    %c0_i32_0 = arith.constant 0 : i32
    %c0_i32_1 = arith.constant 0 : i32
    %c0_i32_2 = arith.constant 0 : i32
    return %arg0, %c0_i32, %c0_i32_0, %c0_i32_1 : i32, i32, i32, i32
  }
  func.func @transform_1(%arg0: i32, %arg1: i32) -> (i32, i32, i32, i32) {
    %c0_i32 = arith.constant 0 : i32
    %c0_i32_0 = arith.constant 0 : i32
    %c0_i32_1 = arith.constant 0 : i32
    %c0_i32_2 = arith.constant 0 : i32
    %c0_i32_3 = arith.constant 0 : i32
    return %c0_i32, %c0_i32_0, %c0_i32_1, %c0_i32_2 : i32, i32, i32, i32
  }
  func.func @transform_2(%arg0: i32, %arg1: i32) -> (i32, i32) {
    %c0_i32 = arith.constant 0 : i32
    %c0_i32_0 = arith.constant 0 : i32
    %c0_i32_1 = arith.constant 0 : i32
    return %c0_i32, %c0_i32_0 : i32, i32
  }
  func.func @transform_3(%arg0: i32, %arg1: i32) -> (i32, i32, i32, i32) {
    %c0_i32 = arith.constant 0 : i32
    %c0_i32_0 = arith.constant 0 : i32
    %c0_i32_1 = arith.constant 0 : i32
    return %arg0, %arg1, %c0_i32, %c0_i32_0 : i32, i32, i32, i32
  }
}

</mosaic_0001>

<bundles_post_ra>
// kernel: tpu_custom_call.1
= control target key start
LH: loop header
LB: loop body
LE: loop exit
PB: predicated region body
PF: predicated region fallthrough
CT: control target
= control target key end

     0   :  { %6 = vsyncpa [#allocation3], 0  ;;  %s453_s0 = inlined_call_operand.hbm [shape: f32[8,128], index: 0, kind: input, shape index: {}]   ;;  %s454_s1 = inlined_call_operand.hbm [shape: f32[16,128], index: 1, kind: output, shape index: {}]  }
   0x1   :  { %7 = vsyncpa [#allocation4], 0 }
   0x2   :  { %9 = vsyncpa [#allocation4 + $0x1], 0  ;;  %s347_s6 = smov 0   ;;  %s349_s7 = smov 0  }
   0x3   :  { %s351_s8 = smov 0   ;;  %s353_s9 = smov 0  }
   0x4 LB: > { %s368_s10 = sadd.s32 4294967295, %s333_s9   ;;  %s183_s11 = sadd.s32 4294967294, %s333_s9   ;;  %s333_s9 = sphi %s353_s9, %s462_s9   ;;  %s329_s8 = sphi %s351_s8, %s461_s8   ;;  %s325_s7 = sphi %s349_s7, %s460_s7   ;;  %s321_s6 = sphi %s347_s6, %s459_s6  }
   0x5   : > { %s372_s12 = sadd.s32 1, %s333_s9   ;;  %s43_s13 = sadd.s32 1, %s329_s8 }
   0x6   : > { %s40_s14 = ssub.s32 %s333_s9, %s372_s12  ;;  %p53_p0 = scmp.ne.s32.totalorder %s329_s8, %s325_s7 }
   0x7   : > { %p41_p1 = scmp.eq.s32.totalorder %s40_s14, 0  ;;  %p54_p2 = scmp.eq.s32.totalorder %s368_s10, 1 }
   0x8   : > { %p59_p3 = scmp.ne.s32.totalorder %s325_s7, %s321_s6  ;;  %p60_p4 = scmp.eq.s32.totalorder %s183_s11, 1 }
   0x9   : > { %s383_s15 = scalar_select %p41_p1, %s329_s8, %s43_s13  }
   0xa   : > { %p385_p5 = por %p54_p2, %p53_p0  ;;  %p389_p6 = por %p60_p4, %p59_p3 }
   0xb   : > { %p184_p7 = scmp.ge.s32.totalorder %s333_s9, 1  ;;  %p67_p8 = scmp.lt.s32.totalorder %s333_s9, 3 }
   0xc   : > { %s456_s17 = scalar_select %p389_p6, 1, 0 }
   0xd   : > { %p207_p9 = scmp.eq.s32.totalorder %s368_s10, 0  ;;  %p396_p10 = pnand %p184_p7, %p67_p8 }
   0xe   : > { %s335_s19 = smov [#allocation2]  }
   0xf   : > { %s80_s20 = sshll.u32 %s335_s19, 4  ;;  %p199_p11 = pneg %p396_p10  ;;  %s81_s20 = int_to_ptr.vmem [resolvable:$true] %s80_s20 }
  0x10   : > { %s254_s21 = scalar_lea.vmem %s81_s20, 128  ;;  %p262_p3 = scmp.lt.s32.totalorder %s81_s20, %s81_s20 }
  0x11   : > { %p200_p12 = pnand %p207_p9, %p199_p11  ;;  %p255_p0 = scmp.ne.s32.totalorder %s81_s20, %s254_s21 }
  0x12   : > { %p263_p4 = scmp.lt.s32.totalorder %s254_s21, %s254_s21 }
  0x13   : > { %p245_p13 = pneg %p200_p12 }
  0x14   : > { %p264_p6 = por %p263_p4, %p262_p3 }
  0x15   : > { %p257_p1 = pnand %p255_p0, %p245_p13 }
  0x17   : > { %p258_p2 = pneg %p257_p1 }
  0x19   : > { %p265_p7 = pnand %p264_p6, %p258_p2 }
  0x1b   : > { %268 = shalt.err (!%p265_p7)
}
  0x1c   : > { %202 = dma.hbm_to_vmem [thread:$0]  (!%p200_p12), %s453_s0, 128, %s81_s20, [#allocation3]  }
  0x1d   : > { %93 = sbr.rel (%p396_p10) target bundleno = 60 (0x3c), region = 24 }
  0x22   : > { %312 = dma.done.wait (%p207_p9), [#allocation3], 128  }
  0x23   : > { %314 = vsyncadd (%p207_p9), [#allocation3], 4294967168  ;;  %s105_s24 = sand.u32 1, %s325_s7   ;;  %s190_s28 = sshll.u32 %s368_s10, 7  ;;  %v108_v0 = vld [vmem:[#allocation2] sm:$0xff] }
  0x24   : > { %s188_s25 = sshll.u32 %s105_s24, 3  ;;  %s122_s2 = scalar_lea.hbm %s454_s1, %s190_s28 }
  0x25   : > { %s107_s26 = scalar_lea.vmem [#allocation5], %s188_s25  ;;  %s111_s3 = scalar_lea.sflag [#allocation4], %s105_s24 }
  0x26   : > { %s124_s27 = sshll.u32 %s107_s26, 4  ;;  %109 = vst [vmem:[%s107_s26] sm:$0xff] %v108_v0  ;;  %s336_s5 = smov [#allocation5]   ;;  %s415_s27 = int_to_ptr.vmem [resolvable:$true] %s124_s27 }
  0x27   : > { %s269_s4 = scalar_lea.vmem %s415_s27, 128  ;;  %s273_s11 = sshll.u32 %s336_s5, 4  ;;  %s274_s11 = int_to_ptr.vmem [resolvable:$false] %s273_s11 }
  0x28   : > { %p270_p6 = scmp.ne.s32.totalorder %s415_s27, %s269_s4  ;;  %s275_s10 = scalar_lea.vmem %s274_s11, 256 }
  0x29   : > { %p276_p10 = scmp.lt.s32.totalorder %s415_s27, %s274_s11  ;;  %p277_p11 = scmp.lt.s32.totalorder %s275_s10, %s269_s4 }
  0x2a   : > { %p271_p8 = pnand %p270_p6, %p385_p5 }
  0x2b   : > { %p278_p12 = por %p277_p11, %p276_p10 }
  0x2c   : > { %p272_p9 = pneg %p271_p8 }
  0x2e   : > { %p279_p13 = pnand %p278_p12, %p272_p9 }
  0x30   : > { %282 = shalt.err (!%p279_p13)
}
  0x31   : > { %s283_s13 = scalar_lea.hbm %s122_s2, 128  ;;  %s287_s19 = scalar_lea.hbm %s454_s1, 256 }
  0x32   : > { %p284_p0 = scmp.ne.s32.totalorder %s122_s2, %s283_s13  ;;  %p288_p3 = scmp.lt.s32.totalorder %s122_s2, %s454_s1 }
  0x33   : > { %p289_p4 = scmp.lt.s32.totalorder %s287_s19, %s283_s13 }
  0x34   : > { %p285_p1 = pnand %p284_p0, %p385_p5 }
  0x35   : > { %p290_p7 = por %p289_p4, %p288_p3 }
  0x36   : > { %p286_p2 = pneg %p285_p1 }
  0x38   : > { %p291_p6 = pnand %p290_p7, %p286_p2 }
  0x3a   : > { %294 = shalt.err (!%p291_p6)
}
  0x3b   : > { %197 = dma.vmem_to_hbm [thread:$0]  (%p385_p5), %s415_s27, 128, %s122_s2, %s111_s3  }
  0x3c PF: > { %p209_p8 = scmp.ge.s32.totalorder %s333_s9, 2  ;;  %s136_s22 = sand.u32 1, %s321_s6  }
  0x3d   : > { %p458_p9 = scmp.ne.s32.totalorder %s456_s17, 0  ;;  %s137_s23 = scalar_lea.sflag [#allocation4], %s136_s22 }
  0x3f   : > { %p204_p10 = pnand %p209_p8, %p458_p9 }
  0x41   : > { %p205_p11 = pneg %p204_p10 }
  0x43   : > { %316 = dma.done.wait (%p205_p11), %s137_s23, 128  }
  0x44   : > { %318 = vsyncadd (%p205_p11), %s137_s23, 4294967168  ;;  %p12_p12 = scmp.ge.s32.totalorder %s372_s12, 4   ;;  %s459_s6 = smov %s325_s7 }
  0x45   : > { %s460_s7 = smov %s329_s8  ;;  %s461_s8 = smov %s383_s15 }
  0x46   : > { %s462_s9 = smov %s372_s12  ;;  %14 = sbr.rel (!%p12_p12) target bundleno = 4 (0x4), region = 61 }
  0x4b   :  { %142 = vsyncpa [#allocation3], 1 }
  0x4c   :  { %144 = vsyncpa [#allocation3 + $0x1], 1 }
  0x4d   :  { %145 = vsyncpa [#allocation4], 1 }
  0x4e   :  { %147 = vsyncpa [#allocation4 + $0x1], 1 }

// kernel: tpu_custom_call.1
= control target key start
LH: loop header
LB: loop body
LE: loop exit
PB: predicated region body
PF: predicated region fallthrough
CT: control target
= control target key end

     0   :  { %8 = vsyncpa [#allocation5], 0  ;;  %s9622_s0 = inlined_call_operand.vmem [shape: bf16[2,16,16,3], index: 0, kind: input, shape index: {}]   ;;  %s9623_s1 = inlined_call_operand.vmem [shape: bf16[3,3,3,64], index: 1, kind: input, shape index: {}]   ;;  %s9624_s2 = inlined_call_operand.vmem [shape: f32[1,64], index: 2, kind: input, shape index: {}]   ;;  %s9625_s3 = inlined_call_operand.hbm [shape: bf16[2,16,16,64], index: 3, kind: output, shape index: {}]  }
   0x1   :  { %10 = vsyncpa [#allocation5 + $0x1], 0  ;;  %s6810_s12 = smov 0   ;;  %s6812_s13 = smov 0  }
   0x2   :  { %s6814_s14 = smov 0   ;;  %s6816_s15 = smov 0  }
   0x3   :  { %s6818_s16 = smov 0   ;;  %s6820_s17 = smov 0  }
   0x4 LB: > { %s5699_s18 = sadd.s32 4294967295, %s6783_s17   ;;  %s5700_s19 = sadd.s32 4294967294, %s6783_s17   ;;  %s6783_s17 = sphi %s6820_s17, %s16_s17   ;;  %s6779_s16 = sphi %s6818_s16, %s9874_s16   ;;  %s6775_s15 = sphi %s6816_s15, %s9873_s15   ;;  %s6771_s14 = sphi %s6814_s14, %s9872_s14   ;;  %s6767_s13 = sphi %s6812_s13, %s9871_s13   ;;  %s6763_s12 = sphi %s6810_s12, %s9870_s12  }
   0x5   : > { %s28_s20 = sadd.s32 1, %s6779_s16  ;;  %s105_s21 = sadd.s32 1, %s6771_s14 }
   0x6   : > { %p30_p0 = scmp.ge.s32.totalorder %s28_s20, 2  ;;  %p115_p1 = scmp.ne.s32.totalorder %s6771_s14, %s6767_s13 }
   0x7   : > { %p116_p2 = scmp.eq.s32.totalorder %s5699_s18, 1  ;;  %p121_p3 = scmp.ne.s32.totalorder %s6767_s13, %s6763_s12 }
   0x8   : > { %s9876_s20 = smov (%p30_p0, %s28_s20), 0  ;;  %p122_p5 = scmp.eq.s32.totalorder %s5700_s19, 1 }
   0x9   : > { %p6850_p4 = por %p116_p2, %p115_p1  ;;  %s100_s23 = ssub.s32 %s6779_s16, %s9876_s20 }
   0xa   : > { %p5703_p6 = scmp.ge.s32.totalorder %s6783_s17, 1  ;;  %p103_p7 = scmp.eq.s32.totalorder %s100_s23, 0 }
   0xb   : > { %p6857_p8 = por %p122_p5, %p121_p3  ;;  %p154_p9 = scmp.lt.s32.totalorder %s6783_s17, 3 }
   0xc   : > { %s6863_s25 = scalar_select %p103_p7, %s6771_s14, %s105_s21  }
   0xd   : > { %p155_p10 = pnand %p5703_p6, %p154_p9 }
   0xf   : > { %158 = sbr.rel (%p155_p10) target bundleno = 692 (0x2b4), region = 32 }
  0x14   : > { %v5707_v0 = vld [vmem:[%s9623_s1 + $0x2] sm:$0x3]  ;;  %vm1319_vm0 = vcmask 1040384   ;;  %vm1320_vm1 = vcmask 1041408   ;;  %vm185_vm2 = vcmask 16384   ;;  %v6785_v1 = vmov 65535  }
  0x15   : > { %v1321_v2 = vsel %vm1319_vm0, 4294967295, %v6785_v1  ;;  %vm186_vm3 = vsmask.f32 256  ;;  %v188_v3 = vld [vmem:[#allocation3] sm:$0x1]  ;;  %vm298_vm4 = vcmask 19456  }
  0x16   : > { %v6868_v4 = vsel %vm1320_vm1, %v1321_v2, 0  ;;  %vm6871_vm5 = vmand %vm185_vm2, %vm186_vm3  ;;  %v9669_v5 = vmov 0  ;;  %vm242_vm6 = vsmask.f32 7938  ;;  %v244_v6 = vld [vmem:[#allocation3 + $0x8] sm:$0x1] }
  0x17   : > { %v9670_v5 = vsel %vm6871_vm5, 4294967295, %v9669_v5  ;;  %v1324_v7 = vand.u32 %v5707_v0, %v6868_v4  ;;  %v189_v8 = vsel %vm6871_vm5, 0, %v188_v3  ;;  %vm6879_vm7 = vmand %vm185_vm2, %vm242_vm6  ;;  %v9672_v9 = vmov 0  ;;  %p178_p11 = scmp.lt.s32.totalorder %s6775_s15, 1  ;;  %v191_v12 = vld [vmem:[#allocation3 + $0xc] sm:$0x1] }
  0x18   : > { %9671 = vst [vmem:[#allocation7_spill] sm:$0xff] %v9670_v5  ;;  %v9673_v9 = vsel %vm6879_vm7, 4294967295, %v9672_v9  ;;  %v6786_v10 = vmov 0   ;;  %190 = vst [vmem:[#allocation3] sm:$0x1] %v189_v8  ;;  %v245_v11 = vsel %vm6879_vm7, 0, %v244_v6 }
  0x19   : > { %9674 = vst [vmem:[#allocation8_spill] sm:$0xff] %v9673_v9  ;;  %304 = vst.msk [vmem:[#allocation3 + $0x4] sm:$0xf] %vm298_vm4, %v6786_v10  ;;  %v247_v13 = vld [vmem:[#allocation3 + $0x14] sm:$0x1]  ;;  %6276 = vmatprep.subr.bf16.mxu0 %v1324_v7  ;;  %6582 = vmatprep.subr.bf16.mxu1 %v1324_v7  ;;  %s179_s28 = scalar_select %p178_p11, %s6775_s15, 1 }
  0x1a   : > { %312 = vst.msk [vmem:[#allocation3 + $0xd0] sm:$0xf] %vm298_vm4, %v6786_v10  ;;  %246 = vst [vmem:[#allocation3 + $0x8] sm:$0x1] %v245_v11  ;;  %v192_v14 = vsel %vm6871_vm5, 0, %v191_v12  ;;  %v248_v15 = vsel %vm6879_vm7, 0, %v247_v13  ;;  %6277 = vmatpush3.bf16.msra.mxu0 %v1324_v7  ;;  %6583 = vmatpush3.bf16.msra.mxu1 %v1324_v7 }
  0x1b   : > { %193 = vst [vmem:[#allocation3 + $0xc] sm:$0x1] %v192_v14  ;;  %249 = vst [vmem:[#allocation3 + $0x14] sm:$0x1] %v248_v15  ;;  %v212_v16 = vld [vmem:[#allocation3 + $0x60] sm:$0x1] }
  0x1c   : > { %v268_v17 = vld [vmem:[#allocation3 + $0x68] sm:$0x1]  ;;  %s6089_s29 = sshll.u32 %s179_s28, 7  ;;  %v213_v18 = vsel %vm6871_vm5, 0, %v212_v16  ;;  %v816_v20 = vld [vmem:[%s9623_s1] sm:$0x3]  ;;  %vm6902_vm8 = vmand %vm298_vm4, %vm242_vm6 }
  0x1d   : > { %v269_v19 = vsel %vm6879_vm7, 0, %v268_v17  ;;  %v9675_v21 = vmov 0  ;;  %s6909_s7 = scalar_lea.vmem %s9622_s0, %s6089_s29  ;;  %vm348_vm9 = vsmask.f32 4368  ;;  %214 = vst [vmem:[#allocation3 + $0x60] sm:$0x1] %v213_v18  ;;  %v6912_v22 = vand.u32 %v6868_v4, %v816_v20 }
  0x1e   : > { %v9676_v21 = vsel %vm6902_vm8, 4294967295, %v9675_v21  ;;  %270 = vst [vmem:[#allocation3 + $0x68] sm:$0x1] %v269_v19  ;;  %v5788_v23 = vld [vmem:[%s9623_s1 + $0x4] sm:$0x3]  ;;  %vm6938_vm12 = vmor %vm186_vm3, %vm348_vm9  ;;  %v9678_v46 = vmov 0 }
  0x1f   : > { %9677 = vst [vmem:[#allocation9_spill] sm:$0xff] %v9676_v21  ;;  %v316_v24 = vld [vmem:[%s6909_s7] sm:$0xf]  ;;  %v317_v25 = vld [vmem:[%s6909_s7 + $0x4] sm:$0xf]  ;;  %v6921_v27 = vand.u32 %v5788_v23, %v6868_v4  ;;  %6310 = vmatprep.subr.bf16.mxu1 %v6912_v22  ;;  %v9679_v46 = vsel %vm6938_vm12, 4294967295, %v9678_v46 }
  0x20   : > { %v330_v26 = vld [vmem:[%s6909_s7 + $0x38] sm:$0xf]  ;;  %v6923_v28 = vld [vmem:[#allocation3 + $0x4] sm:$0xf]  ;;  %v351_v29 = vshrl.u32 %v316_v24, 16  ;;  %v354_v30 = vshll.u32 %v316_v24, 16 }
  0x21   : > { %v359_v31 = vshrl.u32 %v317_v25, 16  ;;  %v362_v32 = vshll.u32 %v317_v25, 16  ;;  %v300_v33 = vld [vmem:[#allocation3] sm:$0xf]  ;;  %v846_v34 = vshll.u32 %v6923_v28, 16  ;;  %v850_v35 = vshrl.u32 %v6923_v28, 16  ;;  %6344 = vmatprep.subr.bf16.mxu0 %v6921_v27 }
  0x22   : > { %v331_v36 = vld [vmem:[%s6909_s7 + $0x3c] sm:$0xf]  ;;  %v215_v37 = vld [vmem:[#allocation3 + $0x6c] sm:$0x1]  ;;  %v301_v38 = vsel %vm6902_vm8, 0, %v300_v33  ;;  %v353_v40 = vrot.slane %v351_v29, 7 }
  0x23   : > { %v305_v39 = vld [vmem:[#allocation3 + $0x8] sm:$0x1]  ;;  %vm833_vm10 = vsmask.f32 3328  ;;  %vm834_vm11 = vsmask.f32 7440 }
  0x24   : > { %v361_v41 = vrot.slane %v359_v31, 7  ;;  %v470_v42 = vshrl.u32 %v330_v26, 16  ;;  %302 = vst [vmem:[#allocation3] sm:$0xf] %v301_v38  ;;  %v306_v43 = vsel %vm6871_vm5, 0, %v305_v39  ;;  %v6934_v44 = vrot.slane %v846_v34, 5  ;;  %vm6978_vm13 = vmor %vm833_vm10, %vm834_vm11 }
  0x25   : > { %v852_v45 = vrot.slane %v850_v35, 4  ;;  %9680 = vst [vmem:[#allocation10_spill] sm:$0xff] %v9679_v46  ;;  %v671_v47 = vld [vmem:[#allocation3 + $0xc] sm:$0xf]  ;;  %v473_v48 = vshll.u32 %v330_v26, 16  ;;  %v356_v49 = vor.u32 %v354_v30, %v353_v40  ;;  %v357_v50 = vrot.slane %v353_v40, 4 }
  0x26   : > { %307 = vst [vmem:[#allocation3 + $0x8] sm:$0x1] %v306_v43  ;;  %v364_v51 = vor.u32 %v362_v32, %v361_v41  ;;  %v366_v52 = vrot.slane %v361_v41, 4  ;;  %v675_v53 = vld [vmem:[#allocation3 + $0x14] sm:$0x1]  ;;  %v472_v55 = vrot.slane %v470_v42, 7 }
  0x27   : > { %v271_v54 = vld [vmem:[#allocation3 + $0x74] sm:$0x1]  ;;  %v478_v56 = vshrl.u32 %v331_v36, 16  ;;  %v481_v57 = vshll.u32 %v331_v36, 16  ;;  %v332_v58 = vld [vmem:[%s6909_s7 + $0x40] sm:$0xf]  ;;  %v672_v60 = vsel %vm6902_vm8, %v356_v49, %v671_v47  ;;  %v853_v1 = vor.u32 %v852_v45, %v6934_v44 }
  0x28   : > { %v365_v59 = vsel %vm6938_vm12, %v357_v50, %v364_v51  ;;  %v676_v61 = vsel %vm6871_vm5, %v366_v52, %v675_v53  ;;  %v720_v62 = vld [vmem:[#allocation3 + $0x60] sm:$0xf]  ;;  %v216_v63 = vsel %vm6871_vm5, 0, %v215_v37  ;;  %v333_v0 = vld [vmem:[%s6909_s7 + $0x44] sm:$0xf]  ;;  %v475_v2 = vor.u32 %v473_v48, %v472_v55  ;;  %s175_s5 = sand.u32 1, %s6767_s13  }
  0x29   : > { %673 = vst [vmem:[#allocation3 + $0xc] sm:$0xf] %v672_v60  ;;  %674 = vst.msk [vmem:[#allocation3 + $0x10] sm:$0xf] %vm298_vm4, %v365_v59  ;;  %v476_v3 = vrot.slane %v472_v55, 4  ;;  %v480_v6 = vrot.slane %v478_v56, 7 }
  0x2a   : > { %677 = vst [vmem:[#allocation3 + $0x14] sm:$0x1] %v676_v61  ;;  %v724_v7 = vld [vmem:[#allocation3 + $0x68] sm:$0x1]  ;;  %217 = vst [vmem:[#allocation3 + $0x6c] sm:$0x1] %v216_v63  ;;  %v721_v17 = vsel %vm6902_vm8, %v475_v2, %v720_v62 }
  0x2b   : > { %v194_v8 = vld [vmem:[#allocation3 + $0x18] sm:$0x1]  ;;  %v272_v10 = vsel %vm6879_vm7, 0, %v271_v54  ;;  %v487_v11 = vshrl.u32 %v332_v58, 16  ;;  %v490_v12 = vshll.u32 %v332_v58, 16  ;;  %v495_v13 = vshrl.u32 %v333_v0, 16 }
  0x2c   : > { %v250_v14 = vld [vmem:[#allocation3 + $0x20] sm:$0x1]  ;;  %v483_v15 = vor.u32 %v481_v57, %v480_v6  ;;  %v485_v16 = vrot.slane %v480_v6, 4  ;;  %273 = vst [vmem:[#allocation3 + $0x74] sm:$0x1] %v272_v10  ;;  %v498_v18 = vshll.u32 %v333_v0, 16 }
  0x2d   : > { %v6958_v19 = vld [vmem:[#allocation3] sm:$0xf]  ;;  %722 = vst [vmem:[#allocation3 + $0x60] sm:$0xf] %v721_v17  ;;  %v489_v20 = vrot.slane %v487_v11, 7  ;;  %v6960_v23 = vrot.slane %v495_v13, 7 }
  0x2e   : > { %v195_v24 = vsel %vm6871_vm5, 0, %v194_v8  ;;  %v251_v25 = vsel %vm6879_vm7, 0, %v250_v14  ;;  %v6966_v26 = vld [vmem:[#allocation3 + $0x8] sm:$0x1]  ;;  %v837_v29 = vshrl.u32 %v6958_v19, 16  ;;  %v840_v30 = vshll.u32 %v6958_v19, 16 }
  0x2f   : > { %v484_v31 = vsel %vm6938_vm12, %v476_v3, %v483_v15  ;;  %v725_v32 = vsel %vm6871_vm5, %v485_v16, %v724_v7  ;;  %196 = vst [vmem:[#allocation3 + $0x18] sm:$0x1] %v195_v24  ;;  %252 = vst [vmem:[#allocation3 + $0x20] sm:$0x1] %v251_v25  ;;  %v854_v33 = vrot.slane %v853_v1, 4  ;;  %v856_v34 = vshll.u32 %v6966_v26, 16 }
  0x30   : > { %723 = vst.msk [vmem:[#allocation3 + $0x64] sm:$0xf] %vm298_vm4, %v484_v31  ;;  %726 = vst [vmem:[#allocation3 + $0x68] sm:$0x1] %v725_v32  ;;  %v839_v36 = vrot.slane %v837_v29, 4  ;;  %v842_v37 = vrot.slane %v840_v30, 5  ;;  %v492_v43 = vor.u32 %v490_v12, %v489_v20  ;;  %v500_v47 = vor.u32 %v498_v18, %v6960_v23 }
  0x31   : > { %vm1270_vm14 = vcmask 23552   ;;  %v6984_v39 = vld [vmem:[%s6909_s7 + $0x8] sm:$0xf]  ;;  %v858_v40 = vrot.slane %v856_v34, 5  ;;  %v6986_v41 = vld [vmem:[#allocation3 + $0xc] sm:$0xf] }
  0x32   : > { %v6988_v42 = vld [vmem:[#allocation3 + $0x10] sm:$0xf]  ;;  %v493_v45 = vrot.slane %v489_v20, 4  ;;  %v843_v48 = vor.u32 %v842_v37, %v839_v36  ;;  %v6991_v49 = vld [vmem:[#allocation3 + $0x14] sm:$0x1]  ;;  %v861_v50 = vshrl.u32 %v6986_v41, 16 }
  0x33   : > { %v864_v51 = vshll.u32 %v6986_v41, 16  ;;  %v870_v52 = vshll.u32 %v6988_v42, 16  ;;  %v859_v53 = vsel %vm6978_vm13, %v854_v33, %v858_v40  ;;  %v874_v54 = vshrl.u32 %v6988_v42, 16  ;;  %v727_v1 = vld [vmem:[#allocation3 + $0x6c] sm:$0xf]  ;;  %s9376_s8 = sshll.u32 %s175_s5, 7 }
  0x34   : > { %v880_v55 = vshll.u32 %v6991_v49, 16  ;;  %v502_v56 = vrot.slane %v6960_v23, 4  ;;  %v844_v57 = vrot.slane %v843_v48, 4  ;;  %v863_v58 = vrot.slane %v861_v50, 4  ;;  %v800_v61 = vld [vmem:[#allocation3 + $0x60] sm:$0xf] }
  0x35   : > { %v866_v59 = vrot.slane %v864_v51, 5  ;;  %v872_v60 = vrot.slane %v870_v52, 5  ;;  %v876_v62 = vrot.slane %v874_v54, 4  ;;  %v1029_v0 = vshrl.u32 %v800_v61, 16  ;;  %v731_v23 = vld [vmem:[#allocation3 + $0x74] sm:$0x1] }
  0x36   : > { %v882_v63 = vrot.slane %v880_v55, 5  ;;  %v368_v2 = vshrl.u32 %v6984_v39, 16  ;;  %v849_v3 = vsel %vm6978_vm13, %v844_v57, %v6934_v44  ;;  %v1032_v10 = vshll.u32 %v800_v61, 16  ;;  %v319_v30 = vld [vmem:[%s6909_s7 + $0xc] sm:$0xf]  ;;  %s9397_s9 = scalar_lea.vmem [#allocation4], %s9376_s8 }
  0x37   : > { %v867_v6 = vor.u32 %v866_v59, %v863_v58  ;;  %v801_v7 = vld [vmem:[#allocation3 + $0x64] sm:$0xf]  ;;  %v825_v8 = vld [vmem:[#allocation3 + $0x68] sm:$0x1]  ;;  %v501_v11 = vsel %vm6938_vm12, %v493_v45, %v500_v47  ;;  %v5708_v12 = vcombine.low %v849_v3, %v859_v53  ;;  %v877_v13 = vor.u32 %v876_v62, %v872_v60  ;;  %v678_v53 = vld [vmem:[#allocation3 + $0x18] sm:$0xf] }
  0x38   : > { %v1031_v14 = vrot.slane %v1029_v0, 4  ;;  %v1038_v15 = vshll.u32 %v801_v7, 16  ;;  %730 = vst.msk [vmem:[#allocation3 + $0x70] sm:$0xf] %vm298_vm4, %v501_v11  ;;  %v1034_v17 = vrot.slane %v1032_v10, 5  ;;  %v1042_v18 = vshrl.u32 %v801_v7, 16 }
  0x39   : > { %v868_v16 = vrot.slane %v867_v6, 4  ;;  %v1048_v20 = vshll.u32 %v825_v8, 16  ;;  %6278 = vmatprep.mubr.msk.bf16.mxu0 %vm1270_vm14, %v5708_v12  ;;  %v878_v44 = vrot.slane %v877_v13, 4  ;;  %v1839_v24 = vrot.slane %v6988_v42, 5  ;;  %v197_v36 = vld [vmem:[#allocation3 + $0x24] sm:$0x1] }
  0x3a   : > { %v1040_v25 = vrot.slane %v1038_v15, 5  ;;  %v728_v29 = vsel %vm6902_vm8, %v492_v43, %v727_v1  ;;  %v1035_v32 = vor.u32 %v1034_v17, %v1031_v14  ;;  %v1044_v33 = vrot.slane %v1042_v18, 4  ;;  %v253_v43 = vld [vmem:[#allocation3 + $0x2c] sm:$0x1]  ;;  %v320_v54 = vld [vmem:[%s6909_s7 + $0x10] sm:$0xf] }
  0x3b   : > { %v873_v31 = vsel %vm6978_vm13, %v868_v16, %v872_v60  ;;  %v1050_v34 = vrot.slane %v1048_v20, 5  ;;  %729 = vst [vmem:[#allocation3 + $0x6c] sm:$0xf] %v728_v29  ;;  %v883_v37 = vsel %vm6978_vm13, %v878_v44, %v882_v63  ;;  %v732_v40 = vsel %vm6871_vm5, %v502_v56, %v731_v23  ;;  %v321_v10 = vld [vmem:[%s6909_s7 + $0x14] sm:$0xf]  ;;  %s6122_s10 = sshll.u32 %s6775_s15, 11 }
  0x3c   : > { %v370_v45 = vrot.slane %v368_v2, 7  ;;  %v371_v47 = vshll.u32 %v6984_v39, 16  ;;  %v5709_v48 = vcombine.low %v873_v31, %v883_v37  ;;  %v1036_v50 = vrot.slane %v1035_v32, 4  ;;  %733 = vst [vmem:[#allocation3 + $0x74] sm:$0x1] %v732_v40  ;;  %s5626_s11 = sshll.u32 %s9397_s9, 4  ;;  %s9567_s21 = scalar_lea.hbm %s9625_s3, %s6122_s10  ;;  %s9569_s11 = int_to_ptr.vmem [resolvable:$true] %s5626_s11 }
  0x3d   : > { %v1045_v51 = vor.u32 %v1044_v33, %v1040_v25  ;;  %v376_v52 = vshrl.u32 %v319_v30, 16  ;;  %v379_v58 = vshll.u32 %v319_v30, 16  ;;  %v198_v59 = vsel %vm6871_vm5, 0, %v197_v36  ;;  %v682_v2 = vld [vmem:[#allocation3 + $0x20] sm:$0x1]  ;;  %s9577_s15 = scalar_lea.sflag [#allocation5], %s175_s5 }
  0x3e   : > { %v373_v55 = vor.u32 %v371_v47, %v370_v45  ;;  %v374_v57 = vrot.slane %v370_v45, 4  ;;  %6279 = vmatmul.mubr.msk.bf16.vlgmr.msra.gmra.mxu0 %vm1270_vm14, %v5709_v48  ;;  %v1041_v56 = vsel %vm6978_vm13, %v1036_v50, %v1040_v25  ;;  %199 = vst [vmem:[#allocation3 + $0x24] sm:$0x1] %v198_v59  ;;  %v254_v62 = vsel %vm6879_vm7, 0, %v253_v43  ;;  %v218_v23 = vld [vmem:[#allocation3 + $0x78] sm:$0x1] }
  0x3f   : > { %v1046_v39 = vrot.slane %v1045_v51, 4  ;;  %v803_v60 = vld [vmem:[#allocation3 + $0x70] sm:$0xf]  ;;  %v378_v61 = vrot.slane %v376_v52, 7  ;;  %6345 = vmatpush3.bf16.msra.mxu0 %v6921_v27  ;;  %255 = vst [vmem:[#allocation3 + $0x2c] sm:$0x1] %v254_v62 }
  0x40   : > { %v1062_v63 = vshll.u32 %v803_v60, 16  ;;  %v1066_v0 = vshrl.u32 %v803_v60, 16  ;;  %v679_v1 = vsel %vm6902_vm8, %v373_v55, %v678_v53  ;;  %v385_v3 = vshrl.u32 %v320_v54, 16  ;;  %v274_v44 = vld [vmem:[#allocation3 + $0x80] sm:$0x1]  ;;  %s6707_s23 = scalar_lea.vmem %s9569_s11, 2048 }
  0x41   : > { %v1051_v6 = vsel %vm6978_vm13, %v1046_v39, %v1050_v34  ;;  %v381_v7 = vor.u32 %v379_v58, %v378_v61  ;;  %v383_v8 = vrot.slane %v378_v61, 4  ;;  %680 = vst [vmem:[#allocation3 + $0x18] sm:$0xf] %v679_v1  ;;  %v388_v11 = vshll.u32 %v320_v54, 16  ;;  %v334_v33 = vld [vmem:[%s6909_s7 + $0x48] sm:$0xf]  ;;  %p6708_p12 = scmp.ne.s32.totalorder %s9569_s11, %s6707_s23 }
  0x42   : > { %v5716_v12 = vcombine.low %v1041_v56, %v1051_v6  ;;  %v802_v13 = vld [vmem:[#allocation3 + $0x6c] sm:$0xf]  ;;  %v1064_v14 = vrot.slane %v1062_v63, 5  ;;  %v1068_v15 = vrot.slane %v1066_v0, 4  ;;  %v387_v27 = vrot.slane %v385_v3, 7  ;;  %s6787_s26 = smov [#allocation4]  }
  0x43   : > { %v1053_v16 = vshrl.u32 %v802_v13, 16  ;;  %v1056_v17 = vshll.u32 %v802_v13, 16  ;;  %v382_v18 = vsel %vm6938_vm12, %v374_v57, %v381_v7  ;;  %v683_v20 = vsel %vm6871_vm5, %v383_v8, %v682_v2  ;;  %v826_v25 = vld [vmem:[#allocation3 + $0x74] sm:$0x1]  ;;  %v335_v45 = vld [vmem:[%s6909_s7 + $0x4c] sm:$0xf]  ;;  %p6709_p13 = pnand %p6708_p12, %p6850_p4 }
  0x44   : > { %6294 = vmatprep.mubr.msk.bf16.mxu1 %vm1270_vm14, %v5716_v12  ;;  %v1069_v29 = vor.u32 %v1068_v15, %v1064_v14  ;;  %681 = vst.msk [vmem:[#allocation3 + $0x1c] sm:$0xf] %vm298_vm4, %v382_v18  ;;  %684 = vst [vmem:[#allocation3 + $0x20] sm:$0x1] %v683_v20  ;;  %v390_v30 = vor.u32 %v388_v11, %v387_v27  ;;  %v391_v31 = vrot.slane %v387_v27, 4  ;;  %v393_v32 = vshrl.u32 %v321_v10, 16 }
  0x45   : > { %v1055_v34 = vrot.slane %v1053_v16, 4  ;;  %v1058_v36 = vrot.slane %v1056_v17, 5  ;;  %v1072_v37 = vshll.u32 %v826_v25, 16  ;;  %v396_v40 = vshll.u32 %v321_v10, 16  ;;  %v685_v48 = vld [vmem:[#allocation3 + $0x24] sm:$0xf]  ;;  %p6710_p0 = pneg %p6709_p13 }
  0x46   : > { %v1070_v47 = vrot.slane %v1069_v29, 4  ;;  %v395_v43 = vrot.slane %v393_v32, 7  ;;  %v219_v50 = vsel %vm6871_vm5, 0, %v218_v23  ;;  %v275_v51 = vsel %vm6879_vm7, 0, %v274_v44  ;;  %v689_v55 = vld [vmem:[#allocation3 + $0x2c] sm:$0x1] }
  0x47   : > { %v1059_v52 = vor.u32 %v1058_v36, %v1055_v34  ;;  %v1074_v53 = vrot.slane %v1072_v37, 5  ;;  %v686_v54 = vsel %vm6902_vm8, %v390_v30, %v685_v48  ;;  %220 = vst [vmem:[#allocation3 + $0x78] sm:$0x1] %v219_v50  ;;  %276 = vst [vmem:[#allocation3 + $0x80] sm:$0x1] %v275_v51  ;;  %v504_v57 = vshrl.u32 %v334_v33, 16 }
  0x48   : > { %v788_v58 = vld [vmem:[#allocation3 + $0x18] sm:$0xf]  ;;  %v398_v59 = vor.u32 %v396_v40, %v395_v43  ;;  %v400_v56 = vrot.slane %v395_v43, 4  ;;  %687 = vst [vmem:[#allocation3 + $0x24] sm:$0xf] %v686_v54  ;;  %v507_v39 = vshll.u32 %v334_v33, 16 }
  0x49   : > { %v512_v60 = vshrl.u32 %v335_v45, 16  ;;  %v1060_v61 = vrot.slane %v1059_v52, 4  ;;  %v1075_v62 = vsel %vm6978_vm13, %v1070_v47, %v1074_v53  ;;  %v885_v63 = vshrl.u32 %v788_v58, 16  ;;  %v221_v18 = vld [vmem:[#allocation3 + $0x84] sm:$0x1]  ;;  %s6711_s27 = sshll.u32 %s6787_s26, 4  ;;  %s6712_s27 = int_to_ptr.vmem [resolvable:$false] %s6711_s27 }
  0x4a   : > { %v888_v0 = vshll.u32 %v788_v58, 16  ;;  %v399_v1 = vsel %vm6938_vm12, %v391_v31, %v398_v59  ;;  %v690_v2 = vsel %vm6871_vm5, %v400_v56, %v689_v55  ;;  %v506_v3 = vrot.slane %v504_v57, 7  ;;  %v277_v25 = vld [vmem:[#allocation3 + $0x8c] sm:$0x1]  ;;  %v336_v29 = vld [vmem:[%s6909_s7 + $0x50] sm:$0xf]  ;;  %p6714_p1 = scmp.lt.s32.totalorder %s9569_s11, %s6712_s27 }
  0x4b   : > { %v514_v6 = vrot.slane %v512_v60, 7  ;;  %v1065_v7 = vsel %vm6978_vm13, %v1060_v61, %v1064_v14  ;;  %v789_v8 = vld [vmem:[#allocation3 + $0x1c] sm:$0xf]  ;;  %v819_v10 = vld [vmem:[#allocation3 + $0x20] sm:$0x1]  ;;  %v887_v11 = vrot.slane %v885_v63, 4 }
  0x4c   : > { %v890_v12 = vrot.slane %v888_v0, 5  ;;  %688 = vst.msk [vmem:[#allocation3 + $0x28] sm:$0xf] %vm298_vm4, %v399_v1  ;;  %691 = vst [vmem:[#allocation3 + $0x2c] sm:$0x1] %v690_v2  ;;  %v5717_v15 = vcombine.low %v1065_v7, %v1075_v62  ;;  %v894_v27 = vshll.u32 %v789_v8, 16  ;;  %v509_v23 = vor.u32 %v507_v39, %v506_v3 }
  0x4d   : > { %v898_v16 = vshrl.u32 %v789_v8, 16  ;;  %v904_v17 = vshll.u32 %v819_v10, 16  ;;  %v510_v44 = vrot.slane %v506_v3, 4  ;;  %v515_v14 = vshll.u32 %v335_v45, 16  ;;  %v337_v55 = vld [vmem:[%s6909_s7 + $0x54] sm:$0xf] }
  0x4e   : > { %v891_v20 = vor.u32 %v890_v12, %v887_v11  ;;  %6295 = vmatmul.mubr.msk.bf16.vlgmr.msra.gmra.mxu1 %vm1270_vm14, %v5717_v15  ;;  %v896_v30 = vrot.slane %v894_v27, 5  ;;  %v519_v33 = vrot.slane %v514_v6, 4  ;;  %v734_v34 = vld [vmem:[#allocation3 + $0x78] sm:$0xf]  ;;  %v738_v43 = vld [vmem:[#allocation3 + $0x80] sm:$0x1] }
  0x4f   : > { %v900_v31 = vrot.slane %v898_v16, 4  ;;  %v906_v32 = vrot.slane %v904_v17, 5  ;;  %6311 = vmatpush3.bf16.msra.mxu1 %v6912_v22  ;;  %v790_v37 = vld [vmem:[#allocation3 + $0x24] sm:$0xf]  ;;  %v517_v40 = vor.u32 %v515_v14, %v514_v6  ;;  %v735_v47 = vsel %vm6902_vm8, %v509_v23, %v734_v34  ;;  %s6713_s28 = scalar_lea.vmem %s6712_s27, 4096 }
  0x50   : > { %v892_v36 = vrot.slane %v891_v20, 4  ;;  %v222_v45 = vsel %vm6871_vm5, 0, %v221_v18  ;;  %v909_v50 = vshrl.u32 %v790_v37, 16  ;;  %v912_v51 = vshll.u32 %v790_v37, 16  ;;  %736 = vst [vmem:[#allocation3 + $0x78] sm:$0xf] %v735_v47  ;;  %p6715_p2 = scmp.lt.s32.totalorder %s6713_s28, %s6707_s23 }
  0x51   : > { %v901_v48 = vor.u32 %v900_v31, %v896_v30  ;;  %v739_v52 = vsel %vm6871_vm5, %v519_v33, %v738_v43  ;;  %223 = vst [vmem:[#allocation3 + $0x84] sm:$0x1] %v222_v45  ;;  %v518_v53 = vsel %vm6938_vm12, %v510_v44, %v517_v40  ;;  %v278_v54 = vsel %vm6879_vm7, 0, %v277_v25  ;;  %v256_v33 = vld [vmem:[#allocation3 + $0x38] sm:$0x1] }
  0x52   : > { %740 = vst [vmem:[#allocation3 + $0x80] sm:$0x1] %v739_v52  ;;  %v521_v57 = vshrl.u32 %v336_v29, 16  ;;  %v897_v58 = vsel %vm6978_vm13, %v892_v36, %v896_v30  ;;  %v911_v60 = vrot.slane %v909_v50, 4  ;;  %737 = vst.msk [vmem:[#allocation3 + $0x7c] sm:$0xf] %vm298_vm4, %v518_v53  ;;  %p6716_p3 = por %p6715_p2, %p6714_p1 }
  0x53   : > { %v902_v59 = vrot.slane %v901_v48, 4  ;;  %v7076_v56 = vld [vmem:[#allocation3 + $0x28] sm:$0xf]  ;;  %v7078_v39 = vld [vmem:[#allocation3 + $0x2c] sm:$0x1]  ;;  %v914_v61 = vrot.slane %v912_v51, 5 }
  0x54   : > { %279 = vst [vmem:[#allocation3 + $0x8c] sm:$0x1] %v278_v54  ;;  %v918_v62 = vshll.u32 %v7076_v56, 16  ;;  %v922_v63 = vshrl.u32 %v7076_v56, 16  ;;  %v928_v0 = vshll.u32 %v7078_v39, 16  ;;  %v523_v2 = vrot.slane %v521_v57, 7  ;;  %p6717_p5 = pnand %p6716_p3, %p6710_p0 }
  0x55   : > { %v907_v1 = vsel %vm6978_vm13, %v902_v59, %v906_v32  ;;  %v524_v3 = vshll.u32 %v336_v29, 16  ;;  %v529_v6 = vshrl.u32 %v337_v55, 16  ;;  %v915_v8 = vor.u32 %v914_v61, %v911_v60  ;;  %v200_v32 = vld [vmem:[#allocation3 + $0x30] sm:$0x1]  ;;  %v322_v52 = vld [vmem:[%s6909_s7 + $0x18] sm:$0xf] }
  0x56   : > { %v5710_v7 = vcombine.low %v897_v58, %v907_v1  ;;  %v920_v10 = vrot.slane %v918_v62, 5  ;;  %v924_v11 = vrot.slane %v922_v63, 4  ;;  %v930_v12 = vrot.slane %v928_v0, 5  ;;  %v323_v58 = vld [vmem:[%s6909_s7 + $0x1c] sm:$0xf] }
  0x57   : > { %v526_v15 = vor.u32 %v524_v3, %v523_v2  ;;  %v527_v27 = vrot.slane %v523_v2, 4  ;;  %v531_v16 = vrot.slane %v529_v6, 7  ;;  %v916_v17 = vrot.slane %v915_v8, 4  ;;  %v804_v20 = vld [vmem:[#allocation3 + $0x78] sm:$0xf] }
  0x58   : > { %6282 = vmatprep.mubr.msk.bf16.mxu0 %vm1270_vm14, %v5710_v7  ;;  %v925_v18 = vor.u32 %v924_v11, %v920_v10  ;;  %v532_v23 = vshll.u32 %v337_v55, 16  ;;  %v741_v44 = vld [vmem:[#allocation3 + $0x84] sm:$0xf]  ;;  %v1077_v25 = vshrl.u32 %v804_v20, 16  ;;  %v1080_v30 = vshll.u32 %v804_v20, 16 }
  0x59   : > { %v827_v14 = vld [vmem:[#allocation3 + $0x80] sm:$0x1]  ;;  %v536_v29 = vrot.slane %v531_v16, 4  ;;  %v742_v31 = vsel %vm6902_vm8, %v526_v15, %v741_v44  ;;  %v921_v34 = vsel %vm6978_vm13, %v916_v17, %v920_v10  ;;  %v805_v37 = vld [vmem:[#allocation3 + $0x7c] sm:$0xf]  ;;  %v201_v2 = vsel %vm6871_vm5, 0, %v200_v32 }
  0x5a   : > { %v926_v36 = vrot.slane %v925_v18, 4  ;;  %v1096_v40 = vshll.u32 %v827_v14, 16  ;;  %v534_v47 = vor.u32 %v532_v23, %v531_v16  ;;  %743 = vst [vmem:[#allocation3 + $0x84] sm:$0xf] %v742_v31  ;;  %v1079_v45 = vrot.slane %v1077_v25, 4 }
  0x5b   : > { %v745_v43 = vld [vmem:[#allocation3 + $0x8c] sm:$0x1]  ;;  %v1082_v48 = vrot.slane %v1080_v30, 5  ;;  %v1086_v50 = vshll.u32 %v805_v37, 16  ;;  %v1090_v51 = vshrl.u32 %v805_v37, 16  ;;  %v257_v3 = vsel %vm6879_vm7, 0, %v256_v33 }
  0x5c   : > { %v931_v53 = vsel %vm6978_vm13, %v926_v36, %v930_v12  ;;  %v1098_v54 = vrot.slane %v1096_v40, 5  ;;  %v535_v55 = vsel %vm6938_vm12, %v527_v27, %v534_v47  ;;  %v746_v57 = vsel %vm6871_vm5, %v536_v29, %v745_v43  ;;  %v203_v59 = vld [vmem:[#allocation3 + $0x3c] sm:$0x1]  ;;  %v259_v0 = vld [vmem:[#allocation3 + $0x44] sm:$0x1] }
  0x5d   : > { %v5711_v60 = vcombine.low %v921_v34, %v931_v53  ;;  %v1083_v61 = vor.u32 %v1082_v48, %v1079_v45  ;;  %v1088_v62 = vrot.slane %v1086_v50, 5  ;;  %v1092_v63 = vrot.slane %v1090_v51, 4  ;;  %744 = vst.msk [vmem:[#allocation3 + $0x88] sm:$0xf] %vm298_vm4, %v535_v55  ;;  %747 = vst [vmem:[#allocation3 + $0x8c] sm:$0x1] %v746_v57 }
  0x5e   : > { %v324_v1 = vld [vmem:[%s6909_s7 + $0x20] sm:$0xf]  ;;  %v402_v6 = vshrl.u32 %v322_v52, 16  ;;  %v405_v7 = vshll.u32 %v322_v52, 16  ;;  %202 = vst [vmem:[#allocation3 + $0x30] sm:$0x1] %v201_v2 }
  0x5f   : > { %6283 = vmatmul.mubr.msk.bf16.gmra.mxu0 %vm1270_vm14, %v5711_v60  ;;  %v1084_v8 = vrot.slane %v1083_v61, 4  ;;  %v1093_v10 = vor.u32 %v1092_v63, %v1088_v62  ;;  %258 = vst [vmem:[#allocation3 + $0x38] sm:$0x1] %v257_v3  ;;  %v410_v11 = vshrl.u32 %v323_v58, 16  ;;  %v413_v12 = vshll.u32 %v323_v58, 16 }
  0x60   : > { %v404_v15 = vrot.slane %v402_v6, 7  ;;  %v204_v27 = vsel %vm6871_vm5, 0, %v203_v59  ;;  %v260_v16 = vsel %vm6879_vm7, 0, %v259_v0  ;;  %v419_v17 = vshrl.u32 %v324_v1, 16  ;;  %v325_v36 = vld [vmem:[%s6909_s7 + $0x24] sm:$0xf] }
  0x61   : > { %v1089_v18 = vsel %vm6978_vm13, %v1084_v8, %v1088_v62  ;;  %v1094_v20 = vrot.slane %v1093_v10, 4  ;;  %v806_v23 = vld [vmem:[#allocation3 + $0x84] sm:$0xf]  ;;  %v412_v44 = vrot.slane %v410_v11, 7  ;;  %205 = vst [vmem:[#allocation3 + $0x3c] sm:$0x1] %v204_v27 }
  0x62   : > { %261 = vst [vmem:[#allocation3 + $0x44] sm:$0x1] %v260_v16  ;;  %v422_v14 = vshll.u32 %v324_v1, 16  ;;  %v1101_v25 = vshrl.u32 %v806_v23, 16  ;;  %v1104_v30 = vshll.u32 %v806_v23, 16  ;;  %v407_v29 = vor.u32 %v405_v7, %v404_v15 }
  0x63   : > { %v408_v31 = vrot.slane %v404_v15, 4  ;;  %v1099_v32 = vsel %vm6978_vm13, %v1094_v20, %v1098_v54  ;;  %v415_v33 = vor.u32 %v413_v12, %v412_v44  ;;  %v417_v34 = vrot.slane %v412_v44, 4  ;;  %v224_v50 = vld [vmem:[#allocation3 + $0x90] sm:$0x1]  ;;  %v280_v51 = vld [vmem:[#allocation3 + $0x98] sm:$0x1] }
  0x64   : > { %v421_v37 = vrot.slane %v419_v17, 7  ;;  %v5718_v40 = vcombine.low %v1089_v18, %v1099_v32  ;;  %v7115_v47 = vld [vmem:[#allocation3 + $0x88] sm:$0xf]  ;;  %v7117_v43 = vld [vmem:[#allocation3 + $0x8c] sm:$0x1]  ;;  %v1103_v45 = vrot.slane %v1101_v25, 4 }
  0x65   : > { %v1106_v48 = vrot.slane %v1104_v30, 5  ;;  %v1110_v53 = vshll.u32 %v7115_v47, 16  ;;  %v1114_v54 = vshrl.u32 %v7115_v47, 16  ;;  %v1120_v55 = vshll.u32 %v7117_v43, 16  ;;  %v338_v58 = vld [vmem:[%s6909_s7 + $0x58] sm:$0xf] }
  0x66   : > { %v416_v57 = vsel %vm6938_vm12, %v408_v31, %v415_v33  ;;  %6298 = vmatprep.mubr.msk.bf16.mxu1 %vm1270_vm14, %v5718_v40  ;;  %v692_v60 = vld [vmem:[#allocation3 + $0x30] sm:$0xf]  ;;  %v696_v61 = vld [vmem:[#allocation3 + $0x38] sm:$0x1]  ;;  %v424_v62 = vor.u32 %v422_v14, %v421_v37  ;;  %v425_v63 = vrot.slane %v421_v37, 4  ;;  %v427_v0 = vshrl.u32 %v325_v36, 16 }
  0x67   : > { %v1107_v59 = vor.u32 %v1106_v48, %v1103_v45  ;;  %695 = vst.msk [vmem:[#allocation3 + $0x34] sm:$0xf] %vm298_vm4, %v416_v57  ;;  %v1112_v1 = vrot.slane %v1110_v53, 5  ;;  %v1116_v2 = vrot.slane %v1114_v54, 4  ;;  %v1122_v3 = vrot.slane %v1120_v55, 5 }
  0x68   : > { %v693_v6 = vsel %vm6902_vm8, %v407_v29, %v692_v60  ;;  %v339_v7 = vld [vmem:[%s6909_s7 + $0x5c] sm:$0xf]  ;;  %v697_v10 = vsel %vm6871_vm5, %v417_v34, %v696_v61  ;;  %v429_v11 = vrot.slane %v427_v0, 7  ;;  %v430_v12 = vshll.u32 %v325_v36, 16  ;;  %v283_v29 = vld [vmem:[#allocation3 + $0xa4] sm:$0x1] }
  0x69   : > { %v1108_v8 = vrot.slane %v1107_v59, 4  ;;  %694 = vst [vmem:[#allocation3 + $0x30] sm:$0xf] %v693_v6  ;;  %v699_v15 = vld [vmem:[#allocation3 + $0x3c] sm:$0xf]  ;;  %v1117_v27 = vor.u32 %v1116_v2, %v1112_v1  ;;  %v225_v18 = vsel %vm6871_vm5, 0, %v224_v50 }
  0x6a   : > { %698 = vst [vmem:[#allocation3 + $0x38] sm:$0x1] %v697_v10  ;;  %v700_v16 = vsel %vm6902_vm8, %v424_v62, %v699_v15  ;;  %v703_v17 = vld [vmem:[#allocation3 + $0x44] sm:$0x1]  ;;  %v281_v20 = vsel %vm6879_vm7, 0, %v280_v51  ;;  %v432_v14 = vor.u32 %v430_v12, %v429_v11  ;;  %v434_v25 = vrot.slane %v429_v11, 4 }
  0x6b   : > { %v227_v23 = vld [vmem:[#allocation3 + $0x9c] sm:$0x1]  ;;  %v1113_v44 = vsel %vm6978_vm13, %v1108_v8, %v1112_v1  ;;  %701 = vst [vmem:[#allocation3 + $0x3c] sm:$0xf] %v700_v16  ;;  %226 = vst [vmem:[#allocation3 + $0x90] sm:$0x1] %v225_v18 }
  0x6c   : > { %282 = vst [vmem:[#allocation3 + $0x98] sm:$0x1] %v281_v20  ;;  %v538_v30 = vshrl.u32 %v338_v58, 16  ;;  %v340_v31 = vld [vmem:[%s6909_s7 + $0x60] sm:$0xf]  ;;  %v1118_v32 = vrot.slane %v1117_v27, 4  ;;  %v433_v37 = vsel %vm6938_vm12, %v425_v63, %v432_v14  ;;  %v704_v40 = vsel %vm6871_vm5, %v434_v25, %v703_v17 }
  0x6d   : > { %v541_v33 = vshll.u32 %v338_v58, 16  ;;  %v546_v34 = vshrl.u32 %v339_v7, 16  ;;  %v549_v36 = vshll.u32 %v339_v7, 16  ;;  %v228_v48 = vsel %vm6871_vm5, 0, %v227_v23  ;;  %702 = vst.msk [vmem:[#allocation3 + $0x40] sm:$0xf] %vm298_vm4, %v433_v37 }
  0x6e   : > { %v540_v45 = vrot.slane %v538_v30, 7  ;;  %v1123_v50 = vsel %vm6978_vm13, %v1118_v32, %v1122_v3  ;;  %v7151_v51 = vld [vmem:[#allocation3 + $0x34] sm:$0xf]  ;;  %705 = vst [vmem:[#allocation3 + $0x44] sm:$0x1] %v704_v40  ;;  %v284_v54 = vsel %vm6879_vm7, 0, %v283_v29 }
  0x6f   : > { %v548_v53 = vrot.slane %v546_v34, 7  ;;  %229 = vst [vmem:[#allocation3 + $0x9c] sm:$0x1] %v228_v48  ;;  %v555_v55 = vshrl.u32 %v340_v31, 16  ;;  %v5719_v57 = vcombine.low %v1113_v44, %v1123_v50  ;;  %v942_v58 = vshll.u32 %v7151_v51, 16 }
  0x70   : > { %v946_v59 = vshrl.u32 %v7151_v51, 16  ;;  %v543_v60 = vor.u32 %v541_v33, %v540_v45  ;;  %285 = vst [vmem:[#allocation3 + $0xa4] sm:$0x1] %v284_v54  ;;  %v5822_v61 = vld [vmem:[%s9623_s1 + $0x8] sm:$0x3]  ;;  %v544_v63 = vrot.slane %v540_v45, 4 }
  0x71   : > { %v7161_v62 = vld [vmem:[#allocation3 + $0x30] sm:$0xf]  ;;  %v551_v0 = vor.u32 %v549_v36, %v548_v53  ;;  %v553_v1 = vrot.slane %v548_v53, 4  ;;  %v7163_v2 = vrot.slane %v555_v55, 7  ;;  %6299 = vmatmul.mubr.msk.bf16.gmra.mxu1 %vm1270_vm14, %v5719_v57  ;;  %v7166_v3 = vld [vmem:[#allocation3 + $0x38] sm:$0x1]  ;;  %v7176_v17 = vand.u32 %v5822_v61, %v6868_v4 }
  0x72   : > { %v933_v6 = vshrl.u32 %v7161_v62, 16  ;;  %v936_v7 = vshll.u32 %v7161_v62, 16  ;;  %v944_v8 = vrot.slane %v942_v58, 5  ;;  %v948_v10 = vrot.slane %v946_v59, 4  ;;  %v7171_v12 = vld [vmem:[#allocation3 + $0x3c] sm:$0xf] }
  0x73   : > { %v952_v11 = vshll.u32 %v7166_v3, 16  ;;  %v552_v15 = vsel %vm6938_vm12, %v544_v63, %v551_v0  ;;  %v748_v27 = vld [vmem:[#allocation3 + $0x90] sm:$0xf]  ;;  %v558_v16 = vshll.u32 %v340_v31, 16  ;;  %v957_v44 = vshrl.u32 %v7171_v12, 16  ;;  %6378 = vmatprep.subr.bf16.mxu1 %v7176_v17 }
  0x74   : > { %v935_v18 = vrot.slane %v933_v6, 4  ;;  %v938_v20 = vrot.slane %v936_v7, 5  ;;  %v949_v23 = vor.u32 %v948_v10, %v944_v8  ;;  %751 = vst.msk [vmem:[#allocation3 + $0x94] sm:$0xf] %vm298_vm4, %v552_v15  ;;  %v752_v14 = vld [vmem:[#allocation3 + $0x98] sm:$0x1]  ;;  %v749_v29 = vsel %vm6902_vm8, %v543_v60, %v748_v27 }
  0x75   : > { %v954_v25 = vrot.slane %v952_v11, 5  ;;  %v960_v30 = vshll.u32 %v7171_v12, 16  ;;  %v753_v31 = vsel %vm6871_vm5, %v553_v1, %v752_v14  ;;  %v341_v32 = vld [vmem:[%s6909_s7 + $0x64] sm:$0xf]  ;;  %v7187_v36 = vld [vmem:[#allocation3 + $0x40] sm:$0xf]  ;;  %v560_v45 = vor.u32 %v558_v16, %v7163_v2 }
  0x76   : > { %v939_v33 = vor.u32 %v938_v20, %v935_v18  ;;  %v950_v34 = vrot.slane %v949_v23, 4  ;;  %v7189_v37 = vld [vmem:[#allocation3 + $0x44] sm:$0x1]  ;;  %v959_v40 = vrot.slane %v957_v44, 4  ;;  %750 = vst [vmem:[#allocation3 + $0x90] sm:$0xf] %v749_v29 }
  0x77   : > { %754 = vst [vmem:[#allocation3 + $0x98] sm:$0x1] %v753_v31  ;;  %v962_v48 = vrot.slane %v960_v30, 5  ;;  %v966_v50 = vshll.u32 %v7187_v36, 16  ;;  %v970_v53 = vshrl.u32 %v7187_v36, 16  ;;  %v976_v54 = vshll.u32 %v7189_v37, 16 }
  0x78   : > { %v755_v55 = vld [vmem:[#allocation3 + $0x9c] sm:$0xf]  ;;  %v940_v57 = vrot.slane %v939_v33, 4  ;;  %v955_v58 = vsel %vm6978_vm13, %v950_v34, %v954_v25  ;;  %v561_v59 = vrot.slane %v7163_v2, 4  ;;  %v563_v60 = vshrl.u32 %v341_v32, 16 }
  0x79   : > { %v206_v61 = vld [vmem:[#allocation3 + $0x48] sm:$0x1]  ;;  %v963_v63 = vor.u32 %v962_v48, %v959_v40  ;;  %v968_v0 = vrot.slane %v966_v50, 5  ;;  %v972_v1 = vrot.slane %v970_v53, 4  ;;  %v978_v6 = vrot.slane %v976_v54, 5 }
  0x7a   : > { %v945_v7 = vsel %vm6978_vm13, %v940_v57, %v944_v8  ;;  %v565_v10 = vrot.slane %v563_v60, 7  ;;  %v566_v11 = vshll.u32 %v341_v32, 16  ;;  %v756_v15 = vsel %vm6902_vm8, %v560_v45, %v755_v55  ;;  %v262_v27 = vld [vmem:[#allocation3 + $0x50] sm:$0x1]  ;;  %v5821_v2 = vld [vmem:[%s9623_s1 + $0x6] sm:$0x3] }
  0x7b   : > { %v5712_v16 = vcombine.low %v945_v7, %v955_v58  ;;  %v964_v18 = vrot.slane %v963_v63, 4  ;;  %v973_v20 = vor.u32 %v972_v1, %v968_v0  ;;  %v7205_v23 = vld [vmem:[#allocation3 + $0x94] sm:$0xf]  ;;  %757 = vst [vmem:[#allocation3 + $0x9c] sm:$0xf] %v756_v15  ;;  %v207_v8 = vsel %vm6871_vm5, 0, %v206_v61 }
  0x7c   : > { %v1134_v44 = vshll.u32 %v7205_v23, 16  ;;  %v1138_v14 = vshrl.u32 %v7205_v23, 16  ;;  %v568_v25 = vor.u32 %v566_v11, %v565_v10  ;;  %v570_v30 = vrot.slane %v565_v10, 4  ;;  %v759_v29 = vld [vmem:[#allocation3 + $0xa4] sm:$0x1] }
  0x7d   : > { %208 = vst [vmem:[#allocation3 + $0x48] sm:$0x1] %v207_v8  ;;  %v326_v31 = vld [vmem:[%s6909_s7 + $0x28] sm:$0xf]  ;;  %6286 = vmatprep.mubr.msk.bf16.mxu0 %vm1270_vm14, %v5712_v16  ;;  %v969_v32 = vsel %vm6978_vm13, %v964_v18, %v968_v0  ;;  %v974_v33 = vrot.slane %v973_v20, 4  ;;  %v263_v45 = vsel %vm6879_vm7, 0, %v262_v27  ;;  %v7222_v48 = vand.u32 %v5821_v2, %v6868_v4 }
  0x7e   : > { %v7215_v34 = vld [vmem:[#allocation3 + $0x90] sm:$0xf]  ;;  %v7217_v40 = vld [vmem:[#allocation3 + $0x98] sm:$0x1]  ;;  %v1136_v54 = vrot.slane %v1134_v44, 5  ;;  %v1140_v55 = vrot.slane %v1138_v14, 4  ;;  %v569_v61 = vsel %vm6938_vm12, %v561_v59, %v568_v25  ;;  %v760_v63 = vsel %vm6871_vm5, %v570_v30, %v759_v29 }
  0x7f   : > { %v1125_v50 = vshrl.u32 %v7215_v34, 16  ;;  %v1128_v53 = vshll.u32 %v7215_v34, 16  ;;  %264 = vst [vmem:[#allocation3 + $0x50] sm:$0x1] %v263_v45  ;;  %v327_v57 = vld [vmem:[%s6909_s7 + $0x2c] sm:$0xf]  ;;  %v979_v58 = vsel %vm6978_vm13, %v974_v33, %v978_v6  ;;  %6412 = vmatprep.subr.bf16.mxu0 %v7222_v48 }
  0x80   : > { %v1144_v60 = vshll.u32 %v7217_v40, 16  ;;  %v209_v0 = vld [vmem:[#allocation3 + $0x54] sm:$0x1]  ;;  %v5713_v1 = vcombine.low %v969_v32, %v979_v58  ;;  %v1141_v11 = vor.u32 %v1140_v55, %v1136_v54  ;;  %758 = vst.msk [vmem:[#allocation3 + $0xa0] sm:$0xf] %vm298_vm4, %v569_v61  ;;  %v436_v27 = vshrl.u32 %v326_v31, 16 }
  0x81   : > { %v1127_v7 = vrot.slane %v1125_v50, 4  ;;  %v1130_v10 = vrot.slane %v1128_v53, 5  ;;  %761 = vst [vmem:[#allocation3 + $0xa4] sm:$0x1] %v760_v63  ;;  %v265_v6 = vld [vmem:[#allocation3 + $0x5c] sm:$0x1] }
  0x82   : > { %v1146_v15 = vrot.slane %v1144_v60, 5  ;;  %v439_v2 = vshll.u32 %v326_v31, 16  ;;  %v444_v16 = vshrl.u32 %v327_v57, 16  ;;  %v328_v18 = vld [vmem:[%s6909_s7 + $0x30] sm:$0xf]  ;;  %6287 = vmatmul.mubr.msk.bf16.gmra.mxu0 %vm1270_vm14, %v5713_v1  ;;  %v1142_v20 = vrot.slane %v1141_v11, 4 }
  0x83   : > { %v1131_v59 = vor.u32 %v1130_v10, %v1127_v7  ;;  %v7238_v8 = vld [vmem:[#allocation3 + $0x9c] sm:$0xf]  ;;  %v447_v44 = vshll.u32 %v327_v57, 16  ;;  %v210_v14 = vsel %vm6871_vm5, 0, %v209_v0  ;;  %v438_v29 = vrot.slane %v436_v27, 7 }
  0x84   : > { %v1149_v25 = vshrl.u32 %v7238_v8, 16  ;;  %v1152_v30 = vshll.u32 %v7238_v8, 16  ;;  %v446_v32 = vrot.slane %v444_v16, 7  ;;  %211 = vst [vmem:[#allocation3 + $0x54] sm:$0x1] %v210_v14  ;;  %v1147_v33 = vsel %vm6978_vm13, %v1142_v20, %v1146_v15 }
  0x85   : > { %v1132_v31 = vrot.slane %v1131_v59, 4  ;;  %v706_v45 = vld [vmem:[#allocation3 + $0x48] sm:$0xf]  ;;  %v266_v50 = vsel %vm6879_vm7, 0, %v265_v6  ;;  %v453_v53 = vshrl.u32 %v328_v18, 16  ;;  %v441_v58 = vor.u32 %v439_v2, %v438_v29 }
  0x86   : > { %v1151_v55 = vrot.slane %v1149_v25, 4  ;;  %v1154_v57 = vrot.slane %v1152_v30, 5  ;;  %v442_v60 = vrot.slane %v438_v29, 4  ;;  %267 = vst [vmem:[#allocation3 + $0x5c] sm:$0x1] %v266_v50  ;;  %v449_v0 = vor.u32 %v447_v44, %v446_v32 }
  0x87   : > { %v329_v61 = vld [vmem:[%s6909_s7 + $0x34] sm:$0xf]  ;;  %v1137_v63 = vsel %vm6978_vm13, %v1132_v31, %v1136_v54  ;;  %v451_v1 = vrot.slane %v446_v32, 4  ;;  %v710_v7 = vld [vmem:[#allocation3 + $0x50] sm:$0x1]  ;;  %v7251_v10 = vrot.slane %v453_v53, 7  ;;  %v707_v59 = vsel %vm6902_vm8, %v441_v58, %v706_v45 }
  0x88   : > { %v230_v11 = vld [vmem:[#allocation3 + $0xa8] sm:$0x1]  ;;  %v286_v15 = vld [vmem:[#allocation3 + $0xb0] sm:$0x1]  ;;  %v5720_v27 = vcombine.low %v1137_v63, %v1147_v33  ;;  %v7253_v6 = vld [vmem:[#allocation3 + $0xa0] sm:$0xf]  ;;  %v1155_v2 = vor.u32 %v1154_v57, %v1151_v55  ;;  %v450_v25 = vsel %vm6938_vm12, %v442_v60, %v449_v0 }
  0x89   : > { %v7255_v16 = vld [vmem:[#allocation3 + $0xa4] sm:$0x1]  ;;  %v456_v20 = vshll.u32 %v328_v18, 16  ;;  %v1158_v54 = vshll.u32 %v7253_v6, 16  ;;  %v1162_v44 = vshrl.u32 %v7253_v6, 16  ;;  %v711_v32 = vsel %vm6871_vm5, %v451_v1, %v710_v7 }
  0x8a   : > { %v1168_v14 = vshll.u32 %v7255_v16, 16  ;;  %708 = vst [vmem:[#allocation3 + $0x48] sm:$0xf] %v707_v59  ;;  %v342_v30 = vld [vmem:[%s6909_s7 + $0x68] sm:$0xf]  ;;  %6302 = vmatprep.mubr.msk.bf16.mxu1 %vm1270_vm14, %v5720_v27  ;;  %v1156_v29 = vrot.slane %v1155_v2, 4 }
  0x8b   : > { %709 = vst.msk [vmem:[#allocation3 + $0x4c] sm:$0xf] %vm298_vm4, %v450_v25  ;;  %v458_v18 = vor.u32 %v456_v20, %v7251_v10  ;;  %v459_v31 = vrot.slane %v7251_v10, 4  ;;  %v343_v33 = vld [vmem:[%s6909_s7 + $0x6c] sm:$0xf]  ;;  %v1160_v50 = vrot.slane %v1158_v54, 5 }
  0x8c   : > { %v233_v45 = vld [vmem:[#allocation3 + $0xb4] sm:$0x1]  ;;  %v1164_v53 = vrot.slane %v1162_v44, 4  ;;  %v1170_v55 = vrot.slane %v1168_v14, 5  ;;  %712 = vst [vmem:[#allocation3 + $0x50] sm:$0x1] %v711_v32 }
  0x8d   : > { %v461_v57 = vshrl.u32 %v329_v61, 16  ;;  %v713_v58 = vld [vmem:[#allocation3 + $0x54] sm:$0xf]  ;;  %v464_v60 = vshll.u32 %v329_v61, 16  ;;  %v231_v0 = vsel %vm6871_vm5, 0, %v230_v11  ;;  %v287_v1 = vsel %vm6879_vm7, 0, %v286_v15 }
  0x8e   : > { %v714_v63 = vsel %vm6902_vm8, %v458_v18, %v713_v58  ;;  %v1161_v7 = vsel %vm6978_vm13, %v1156_v29, %v1160_v50  ;;  %v1165_v10 = vor.u32 %v1164_v53, %v1160_v50  ;;  %232 = vst [vmem:[#allocation3 + $0xa8] sm:$0x1] %v231_v0  ;;  %288 = vst [vmem:[#allocation3 + $0xb0] sm:$0x1] %v287_v1  ;;  %v572_v2 = vshrl.u32 %v342_v30, 16 }
  0x8f   : > { %v463_v27 = vrot.slane %v461_v57, 7  ;;  %715 = vst [vmem:[#allocation3 + $0x54] sm:$0xf] %v714_v63  ;;  %v289_v59 = vld [vmem:[#allocation3 + $0xbc] sm:$0x1]  ;;  %v575_v20 = vshll.u32 %v342_v30, 16 }
  0x90   : > { %v7281_v61 = vld [vmem:[%s6909_s7 + $0x70] sm:$0xf]  ;;  %v580_v54 = vshrl.u32 %v343_v33, 16  ;;  %v583_v44 = vshll.u32 %v343_v33, 16  ;;  %v234_v11 = vsel %vm6871_vm5, 0, %v233_v45  ;;  %v1166_v14 = vrot.slane %v1165_v10, 4 }
  0x91   : > { %v466_v15 = vor.u32 %v464_v60, %v463_v27  ;;  %v468_v25 = vrot.slane %v463_v27, 4  ;;  %v717_v32 = vld [vmem:[#allocation3 + $0x5c] sm:$0x1]  ;;  %v574_v29 = vrot.slane %v572_v2, 7  ;;  %235 = vst [vmem:[#allocation3 + $0xb4] sm:$0x1] %v234_v11 }
  0x92   : > { %v7285_v18 = vld [vmem:[#allocation3 + $0x48] sm:$0xf]  ;;  %v582_v50 = vrot.slane %v580_v54, 7  ;;  %v290_v53 = vsel %vm6879_vm7, 0, %v289_v59  ;;  %v589_v57 = vshrl.u32 %v7281_v61, 16  ;;  %v592_v30 = vshll.u32 %v7281_v61, 16 }
  0x93   : > { %v1171_v33 = vsel %vm6978_vm13, %v1166_v14, %v1170_v55  ;;  %v7293_v45 = vld [vmem:[#allocation3 + $0x4c] sm:$0xf]  ;;  %v981_v58 = vshrl.u32 %v7285_v18, 16  ;;  %v984_v60 = vshll.u32 %v7285_v18, 16  ;;  %v467_v63 = vsel %vm6938_vm12, %v459_v31, %v466_v15  ;;  %291 = vst [vmem:[#allocation3 + $0xbc] sm:$0x1] %v290_v53 }
  0x94   : > { %v5721_v0 = vcombine.low %v1161_v7, %v1171_v33  ;;  %v7299_v1 = vld [vmem:[#allocation3 + $0x50] sm:$0x1]  ;;  %v990_v10 = vshll.u32 %v7293_v45, 16  ;;  %v994_v27 = vshrl.u32 %v7293_v45, 16  ;;  %716 = vst.msk [vmem:[#allocation3 + $0x58] sm:$0xf] %vm298_vm4, %v467_v63  ;;  %v718_v55 = vsel %vm6871_vm5, %v468_v25, %v717_v32 }
  0x95   : > { %v983_v2 = vrot.slane %v981_v58, 4  ;;  %v986_v59 = vrot.slane %v984_v60, 5  ;;  %v1000_v61 = vshll.u32 %v7299_v1, 16  ;;  %719 = vst [vmem:[#allocation3 + $0x5c] sm:$0x1] %v718_v55  ;;  %v577_v54 = vor.u32 %v575_v20, %v574_v29 }
  0x96   : > { %v345_v31 = vld [vmem:[%s6909_s7 + $0x74] sm:$0xf]  ;;  %6303 = vmatmul.mubr.msk.bf16.gmra.mxu1 %vm1270_vm14, %v5721_v0  ;;  %v992_v7 = vrot.slane %v990_v10, 5  ;;  %v996_v11 = vrot.slane %v994_v27, 4  ;;  %v578_v15 = vrot.slane %v574_v29, 4  ;;  %v585_v53 = vor.u32 %v583_v44, %v582_v50 }
  0x97   : > { %v7309_v14 = vld [vmem:[#allocation3 + $0x54] sm:$0xf]  ;;  %v987_v33 = vor.u32 %v986_v59, %v983_v2  ;;  %v1002_v63 = vrot.slane %v1000_v61, 5  ;;  %v762_v32 = vld [vmem:[#allocation3 + $0xa8] sm:$0xf]  ;;  %v587_v60 = vrot.slane %v582_v50, 4 }
  0x98   : > { %v1005_v13 = vshrl.u32 %v7309_v14, 16  ;;  %v1008_v25 = vshll.u32 %v7309_v14, 16  ;;  %v997_v58 = vor.u32 %v996_v11, %v992_v7  ;;  %v586_v20 = vsel %vm6938_vm12, %v578_v15, %v585_v53  ;;  %v766_v10 = vld [vmem:[#allocation3 + $0xb0] sm:$0x1]  ;;  %v769_v52 = vld [vmem:[#allocation3 + $0xb4] sm:$0xf] }
  0x99   : > { %v763_v0 = vsel %vm6902_vm8, %v577_v54, %v762_v32  ;;  %v988_v27 = vrot.slane %v987_v33, 4  ;;  %765 = vst.msk [vmem:[#allocation3 + $0xac] sm:$0xf] %vm298_vm4, %v586_v20  ;;  %v591_v44 = vrot.slane %v589_v57, 7  ;;  %v767_v59 = vsel %vm6871_vm5, %v587_v60, %v766_v10  ;;  %v1779_v33 = vld [vmem:[#allocation3] sm:$0xe] }
  0x9a   : > { %v1007_v55 = vrot.slane %v1005_v13, 4  ;;  %v1010_v29 = vrot.slane %v1008_v25, 5  ;;  %764 = vst [vmem:[#allocation3 + $0xa8] sm:$0xf] %v763_v0  ;;  %v998_v2 = vrot.slane %v997_v58, 4  ;;  %v597_v61 = vshrl.u32 %v345_v31, 16 }
  0x9b   : > { %v600_v11 = vshll.u32 %v345_v31, 16  ;;  %v993_v50 = vsel %vm6978_vm13, %v988_v27, %v992_v7  ;;  %v7322_v15 = vld [vmem:[#allocation3 + $0x58] sm:$0xf]  ;;  %768 = vst [vmem:[#allocation3 + $0xb0] sm:$0x1] %v767_v59  ;;  %v594_v13 = vor.u32 %v592_v30, %v591_v44  ;;  %v595_v53 = vrot.slane %v591_v44, 4 }
  0x9c   : > { %v1011_v54 = vor.u32 %v1010_v29, %v1007_v55  ;;  %v1003_v57 = vsel %vm6978_vm13, %v998_v2, %v1002_v63  ;;  %v7326_v25 = vld [vmem:[#allocation3 + $0x5c] sm:$0x1]  ;;  %v1014_v32 = vshll.u32 %v7322_v15, 16  ;;  %v1018_v31 = vshrl.u32 %v7322_v15, 16  ;;  %v1780_v2 = vld [vmem:[#allocation3 + $0xc] sm:$0xe] }
  0x9d   : > { %v599_v58 = vrot.slane %v597_v61, 7  ;;  %v5714_v20 = vcombine.low %v993_v50, %v1003_v57  ;;  %v1024_v7 = vshll.u32 %v7326_v25, 16  ;;  %v770_v0 = vsel %vm6902_vm8, %v594_v13, %v769_v52  ;;  %v773_v30 = vld [vmem:[#allocation3 + $0xbc] sm:$0x1]  ;;  %v1789_v21 = vld [vmem:[#allocation3 + $0x78] sm:$0xe] }
  0x9e   : > { %v1012_v60 = vrot.slane %v1011_v54, 4  ;;  %v1016_v10 = vrot.slane %v1014_v32, 5  ;;  %v1020_v27 = vrot.slane %v1018_v31, 4  ;;  %771 = vst [vmem:[#allocation3 + $0xb4] sm:$0xf] %v770_v0  ;;  %vm1827_vm15 = vcmask 1042432  }
  0x9f   : > { %v602_v55 = vor.u32 %v600_v11, %v599_v58  ;;  %v604_v29 = vrot.slane %v599_v58, 4  ;;  %6290 = vmatprep.mubr.msk.bf16.mxu0 %vm1270_vm14, %v5714_v20  ;;  %v1026_v63 = vrot.slane %v1024_v7, 5  ;;  %vm1828_vm0 = vcmask 1046532   ;;  %v6661_v20 = vld [vmem:[#allocation3 + $0x4] sm:$0xf] }
  0xa0   : > { %v5772_v44 = vrot.slane %v1779_v33, 9  ;;  %v1017_v59 = vsel %vm6978_vm13, %v1012_v60, %v1016_v10  ;;  %v1021_v61 = vor.u32 %v1020_v27, %v1016_v10  ;;  %v7338_v52 = vld [vmem:[#allocation3 + $0xac] sm:$0xf]  ;;  %vm7351_vm1 = vmor %vm1827_vm15, %vm1828_vm0  ;;  %v1832_v60 = vrot.slane %v6661_v20, 5 }
  0xa1   : > { %v7336_v50 = vld [vmem:[#allocation3 + $0xa8] sm:$0xf]  ;;  %v603_v11 = vsel %vm6938_vm12, %v595_v53, %v602_v55  ;;  %v774_v54 = vsel %vm6871_vm5, %v604_v29, %v773_v30  ;;  %v1182_v33 = vshll.u32 %v7338_v52, 16  ;;  %v1186_v32 = vshrl.u32 %v7338_v52, 16 }
  0xa2   : > { %v1173_v13 = vshrl.u32 %v7336_v50, 16  ;;  %v1176_v57 = vshll.u32 %v7336_v50, 16  ;;  %772 = vst.msk [vmem:[#allocation3 + $0xb8] sm:$0xf] %vm298_vm4, %v603_v11  ;;  %775 = vst [vmem:[#allocation3 + $0xbc] sm:$0x1] %v774_v54 }
  0xa3   : > { %v1022_v53 = vrot.slane %v1021_v61, 4  ;;  %v7355_v58 = vld [vmem:[#allocation3 + $0xb0] sm:$0x1]  ;;  %v5773_v7 = vrot.slane %v1780_v2, 9  ;;  %v1841_v0 = vrot.slane %v1839_v24, 4  ;;  %v1184_v27 = vrot.slane %v1182_v33, 5 }
  0xa4   : > { %v1175_v30 = vrot.slane %v1173_v13, 4  ;;  %v1178_v10 = vrot.slane %v1176_v57, 5  ;;  %v1188_v55 = vrot.slane %v1186_v32, 4  ;;  %v1192_v11 = vshll.u32 %v7355_v58, 16 }
  0xa5   : > { %v1027_v29 = vsel %vm6978_vm13, %v1022_v53, %v1026_v63  ;;  %v1833_v61 = vsel %vm7351_vm1, %v5772_v44, %v1832_v60  ;;  %v1834_v54 = vrot.slane %v1832_v60, 4  ;;  %v7364_v2 = vld [vmem:[#allocation3 + $0xb4] sm:$0xf]  ;;  %v1840_v13 = vsel %vm7351_vm1, %v5773_v7, %v1839_v24  ;;  %v1781_v7 = vld [vmem:[#allocation3 + $0x18] sm:$0xe] }
  0xa6   : > { %v5715_v22 = vcombine.low %v1017_v59, %v1027_v29  ;;  %v1179_v38 = vor.u32 %v1178_v10, %v1175_v30  ;;  %v1189_v20 = vor.u32 %v1188_v55, %v1184_v27  ;;  %v1194_v57 = vrot.slane %v1192_v11, 5 }
  0xa7   : > { %v1197_v33 = vshrl.u32 %v7364_v2, 16  ;;  %v1200_v63 = vshll.u32 %v7364_v2, 16  ;;  %v9685_v32 = vrot.slane %v6966_v26, 5  ;;  %v9686_v30 = vrot.slane %v6991_v49, 5 }
  0xa8   : > { %6291 = vmatmul.mubr.msk.bf16.gmra.mxu0 %vm1270_vm14, %v5715_v22  ;;  %v1180_v59 = vrot.slane %v1179_v38, 4  ;;  %v1190_v53 = vrot.slane %v1189_v20, 4  ;;  %vm2236_vm2 = vcmask 523264   ;;  %vm5576_vm3 = vcmask 519168  }
  0xa9   : > { %v1836_v44 = vsel %vm7351_vm1, %v1834_v54, %v9685_v32  ;;  %v1843_v24 = vsel %vm7351_vm1, %v1841_v0, %v9686_v30  ;;  %v7381_v10 = vld [vmem:[#allocation3 + $0xb8] sm:$0xf]  ;;  %v7383_v55 = vld [vmem:[#allocation3 + $0xbc] sm:$0x1]  ;;  %v1199_v29 = vrot.slane %v1197_v33, 4  ;;  %v1202_v26 = vrot.slane %v1200_v63, 5 }
  0xaa   : > { %v5789_v60 = vcombine.low %v1833_v61, %v1836_v44  ;;  %9687 = vst [vmem:[#allocation11_spill] sm:$0xff] %v7381_v10  ;;  %v5790_v11 = vcombine.low %v1840_v13, %v1843_v24  ;;  %v1185_v38 = vsel %vm6978_vm13, %v1180_v59, %v1184_v27  ;;  %v1195_v49 = vsel %vm6978_vm13, %v1190_v53, %v1194_v57  ;;  %v1782_v61 = vld [vmem:[#allocation3 + $0x24] sm:$0xe]  ;;  %v7395_v30 = vld [vmem:[#allocation3 + $0x1c] sm:$0xf] }
  0xab   : > { %v1206_v22 = vshll.u32 %v7381_v10, 16  ;;  %v1210_v0 = vshrl.u32 %v7381_v10, 16  ;;  %v5722_v20 = vcombine.low %v1185_v38, %v1195_v49  ;;  %v1203_v33 = vor.u32 %v1202_v26, %v1199_v29  ;;  %v6663_v59 = vld [vmem:[#allocation3 + $0x20] sm:$0x1]  ;;  %v1783_v53 = vld [vmem:[#allocation3 + $0x30] sm:$0xe] }
  0xac   : > { %6346 = vmatprep.mubr.msk.bf16.mxu0 %vm1270_vm14, %v5789_v60  ;;  %v1216_v13 = vshll.u32 %v7383_v55, 16  ;;  %v5774_v63 = vrot.slane %v1781_v7, 9  ;;  %v1846_v27 = vrot.slane %v7395_v30, 5  ;;  %v1849_v57 = vrot.slane %v6663_v59, 5 }
  0xad   : > { %v1208_v32 = vrot.slane %v1206_v22, 5  ;;  %v1212_v44 = vrot.slane %v1210_v0, 4  ;;  %6306 = vmatprep.mubr.msk.bf16.mxu1 %vm1270_vm14, %v5722_v20  ;;  %v1204_v24 = vrot.slane %v1203_v33, 4  ;;  %v5775_v60 = vrot.slane %v1782_v61, 9 }
  0xae   : > { %v1218_v54 = vrot.slane %v1216_v13, 5  ;;  %v1853_v38 = vrot.slane %v7076_v56, 5  ;;  %v1847_v7 = vsel %vm7351_vm1, %v5774_v63, %v1846_v27  ;;  %v1848_v26 = vrot.slane %v1846_v27, 4  ;;  %v1784_v63 = vld [vmem:[#allocation3 + $0x3c] sm:$0xe] }
  0xaf   : > { %v1213_v29 = vor.u32 %v1212_v44, %v1208_v32  ;;  %v1856_v49 = vrot.slane %v7078_v39, 5  ;;  %v1209_v22 = vsel %vm6978_vm13, %v1204_v24, %v1208_v32  ;;  %v5776_v20 = vrot.slane %v1783_v53, 9  ;;  %v7412_v39 = vld [vmem:[#allocation3 + $0x68] sm:$0x1]  ;;  %v7421_v53 = vld [vmem:[#allocation3 + $0x18] sm:$0xf] }
  0xb0   : > { %v1854_v0 = vsel %vm7351_vm1, %v5775_v60, %v1853_v38  ;;  %v1855_v59 = vrot.slane %v1853_v38, 4  ;;  %6347 = vmatmul.mubr.msk.bf16.vlgmr.msra.gmra.mxu0 %vm1270_vm14, %v5790_v11  ;;  %v1850_v56 = vsel %vm7351_vm1, %v1848_v26, %v1849_v57  ;;  %v1860_v61 = vrot.slane %v7151_v51, 5  ;;  %v1785_v38 = vld [vmem:[#allocation3 + $0x48] sm:$0xe] }
  0xb1   : > { %v1214_v33 = vrot.slane %v1213_v29, 4  ;;  %v1863_v13 = vrot.slane %v7166_v3, 5  ;;  %6413 = vmatpush3.bf16.msra.mxu0 %v7222_v48  ;;  %v5791_v44 = vcombine.low %v1847_v7, %v1850_v56  ;;  %v1867_v11 = vrot.slane %v7187_v36, 5 }
  0xb2   : > { %v1857_v27 = vsel %vm7351_vm1, %v1855_v59, %v1856_v49  ;;  %v1861_v24 = vsel %vm7351_vm1, %v5776_v20, %v1860_v61  ;;  %v1862_v60 = vrot.slane %v1860_v61, 4  ;;  %v5777_v7 = vrot.slane %v1784_v63, 9  ;;  %v1786_v49 = vld [vmem:[#allocation3 + $0x54] sm:$0xe]  ;;  %v1787_v20 = vld [vmem:[#allocation3 + $0x60] sm:$0xe] }
  0xb3   : > { %v1219_v57 = vsel %vm6978_vm13, %v1214_v33, %v1218_v54  ;;  %6350 = vmatprep.mubr.msk.bf16.mxu0 %vm1270_vm14, %v5791_v44  ;;  %v5792_v29 = vcombine.low %v1854_v0, %v1857_v27  ;;  %v1869_v26 = vrot.slane %v1867_v11, 4  ;;  %v1870_v59 = vrot.slane %v7189_v37, 5  ;;  %v7436_v63 = vld [vmem:[#allocation3 + $0x60] sm:$0xf]  ;;  %v7438_v44 = vld [vmem:[#allocation3 + $0x64] sm:$0xf] }
  0xb4   : > { %v5723_v48 = vcombine.low %v1209_v22, %v1219_v57  ;;  %v1864_v54 = vsel %vm7351_vm1, %v1862_v60, %v1863_v13  ;;  %v1874_v56 = vrot.slane %v7293_v45, 5  ;;  %v5778_v61 = vrot.slane %v1785_v38, 9  ;;  %v1788_v37 = vld [vmem:[#allocation3 + $0x6c] sm:$0xe]  ;;  %v7446_v57 = vld [vmem:[#allocation3 + $0x24] sm:$0xf] }
  0xb5   : > { %v5793_v22 = vcombine.low %v1861_v24, %v1864_v54  ;;  %v1877_v0 = vrot.slane %v7299_v1, 5  ;;  %v9688_v27 = vcombine.low %v6958_v19, %v6923_v28  ;;  %v7448_v60 = vld [vmem:[#allocation3 + $0x28] sm:$0xf]  ;;  %v5779_v38 = vrot.slane %v1786_v49, 9  ;;  %v7454_v54 = vld [vmem:[#allocation3 + $0x6c] sm:$0xf] }
  0xb6   : > { %6307 = vmatmul.mubr.msk.bf16.gmra.mxu1 %vm1270_vm14, %v5723_v48  ;;  %v1876_v24 = vrot.slane %v1874_v56, 4  ;;  %v7452_v48 = vld [vmem:[#allocation3 + $0x70] sm:$0xf]  ;;  %v1868_v28 = vsel %vm7351_vm1, %v5777_v7, %v1867_v11  ;;  %v1881_v19 = vrot.slane %v7322_v15, 5  ;;  %v5780_v33 = vrot.slane %v1787_v20, 9 }
  0xb7   : > { %6312 = vmatprep.mubr.msk.bf16.mxu1 %vm1270_vm14, %v9688_v27  ;;  %v1884_v27 = vrot.slane %v7326_v25, 5  ;;  %v1871_v49 = vsel %vm7351_vm1, %v1869_v26, %v1870_v59  ;;  %v1888_v1 = vrot.slane %v7438_v44, 5  ;;  %v5781_v3 = vrot.slane %v1788_v37, 9  ;;  %v6672_v20 = vld [vmem:[#allocation3 + $0x74] sm:$0x1] }
  0xb8   : > { %6351 = vmatmul.mubr.msk.bf16.gmra.mxu0 %vm1270_vm14, %v5792_v29  ;;  %v1895_v32 = vrot.slane %v7452_v48, 5  ;;  %v1875_v11 = vsel %vm7351_vm1, %v5778_v61, %v1874_v56  ;;  %v1878_v7 = vsel %vm7351_vm1, %v1876_v24, %v1877_v0  ;;  %v1883_v25 = vrot.slane %v1881_v19, 4  ;;  %v7486_v0 = vld [vmem:[#allocation3 + $0x7c] sm:$0xf] }
  0xb9   : > { %6354 = vmatprep.mubr.msk.bf16.mxu0 %vm1270_vm14, %v5793_v22  ;;  %v1898_v13 = vrot.slane %v6672_v20, 5  ;;  %v7476_v26 = vsel %vm7351_vm1, %v5779_v38, %v1881_v19  ;;  %v1890_v59 = vrot.slane %v1888_v1, 4  ;;  %v5794_v22 = vcombine.low %v1868_v28, %v1871_v49 }
  0xba   : > { %v1897_v37 = vrot.slane %v1895_v32, 4  ;;  %v7480_v56 = vsel %vm7351_vm1, %v1883_v25, %v1884_v27  ;;  %v7484_v61 = vsel %vm7351_vm1, %v5780_v33, %v1888_v1  ;;  %v1902_v24 = vrot.slane %v7486_v0, 5  ;;  %v1790_v33 = vld [vmem:[#allocation3 + $0x84] sm:$0xe]  ;;  %v1791_v1 = vld [vmem:[#allocation3 + $0x90] sm:$0xe] }
  0xbb   : > { %v5795_v20 = vcombine.low %v1875_v11, %v1878_v7  ;;  %v9689_v19 = vrot.slane %v7412_v39, 5  ;;  %v7499_v27 = vsel %vm7351_vm1, %v5781_v3, %v1895_v32  ;;  %v9690_v49 = vcombine.low %v6986_v41, %v6988_v42  ;;  %v6674_v25 = vld [vmem:[#allocation3 + $0x80] sm:$0x1]  ;;  %v7518_v3 = vld [vmem:[#allocation3 + $0x78] sm:$0xf] }
  0xbc   : > { %v5796_v11 = vcombine.low %v7476_v26, %v7480_v56  ;;  %v7509_v39 = vsel %vm7351_vm1, %v1897_v37, %v1898_v13  ;;  %v5782_v7 = vrot.slane %v1789_v21, 9  ;;  %v9691_v32 = vcombine.low %v7421_v53, %v7395_v30  ;;  %v1792_v26 = vld [vmem:[#allocation3 + $0x9c] sm:$0xe] }
  0xbd   : > { %v7495_v28 = vsel %vm7351_vm1, %v1890_v59, %v9689_v19  ;;  %v1905_v59 = vrot.slane %v6674_v25, 5  ;;  %v1904_v42 = vrot.slane %v1902_v24, 4  ;;  %v1909_v21 = vrot.slane %v7115_v47, 5 }
  0xbe   : > { %6313 = vmatmul.mubr.msk.bf16.vlgmr.msra.gmra.mxu1 %vm1270_vm14, %v9690_v49  ;;  %v5797_v41 = vcombine.low %v7484_v61, %v7495_v28  ;;  %v5783_v37 = vrot.slane %v1790_v33, 9  ;;  %v5784_v56 = vrot.slane %v1791_v1, 9  ;;  %v1919_v30 = vrot.slane %v7217_v40, 5 }
  0xbf   : > { %6379 = vmatpush3.bf16.msra.mxu1 %v7176_v17  ;;  %6316 = vmatprep.mubr.msk.bf16.mxu1 %vm1270_vm14, %v9691_v32  ;;  %v1916_v17 = vrot.slane %v7205_v23, 5  ;;  %v1911_v61 = vrot.slane %v1909_v21, 4  ;;  %v1912_v19 = vrot.slane %v7117_v43, 5  ;;  %v5785_v49 = vrot.slane %v1792_v26, 9  ;;  %v1793_v32 = vld [vmem:[#allocation3 + $0xa8] sm:$0xe] }
  0xc0   : > { %6355 = vmatmul.mubr.msk.bf16.gmra.mxu0 %vm1270_vm14, %v5794_v22  ;;  %v1923_v40 = vrot.slane %v7253_v6, 5  ;;  %v7539_v22 = vsel %vm7351_vm1, %v5782_v7, %v1902_v24  ;;  %v7543_v43 = vsel %vm7351_vm1, %v1904_v42, %v1905_v59  ;;  %v1926_v25 = vrot.slane %v7255_v16, 5 }
  0xc1   : > { %6358 = vmatprep.mubr.msk.bf16.mxu0 %vm1270_vm14, %v5795_v20  ;;  %v7534_v33 = vsel %vm7351_vm1, %v5784_v56, %v1916_v17  ;;  %v1918_v1 = vrot.slane %v1916_v17, 4  ;;  %v1794_v56 = vld [vmem:[#allocation3 + $0xb4] sm:$0xe]  ;;  %v7550_v26 = vsel %vm7351_vm1, %v5783_v37, %v1909_v21  ;;  %v7562_v16 = vsel %vm7351_vm1, %v1911_v61, %v1912_v19  ;;  %v7569_v37 = vld [vmem:[#allocation3 + $0xc] sm:$0xf] }
  0xc2   : > { %v7558_v24 = vsel %vm7351_vm1, %v5785_v49, %v1923_v40  ;;  %v1925_v7 = vrot.slane %v1923_v40, 4  ;;  %v1930_v42 = vrot.slane %v7338_v52, 5  ;;  %v5786_v49 = vrot.slane %v1793_v32, 9  ;;  %v7583_v20 = vld [vmem:[#allocation3 + $0x10] sm:$0xf] }
  0xc3   : > { %v7554_v17 = vsel %vm7351_vm1, %v1918_v1, %v1919_v30  ;;  %v9692_v30 = vcombine.low %v7446_v57, %v7448_v60  ;;  %v7575_v1 = vld [vmem:[#allocation3 + $0x84] sm:$0xf]  ;;  %v5787_v40 = vrot.slane %v1794_v56, 9  ;;  %v9693_v21 = vcombine.low %v7161_v62, %v7151_v51  ;;  %v7596_v32 = vld [vmem:[#allocation3 + $0x14] sm:$0x1] }
  0xc4   : > { %v7581_v19 = vsel %vm7351_vm1, %v1925_v7, %v1926_v25  ;;  %v5799_v57 = vcombine.low %v7539_v22, %v7543_v43  ;;  %9694 = vst [vmem:[#allocation12_spill] sm:$0xff] %v7596_v32  ;;  %v1933_v51 = vrot.slane %v7355_v58, 5  ;;  %v2320_v62 = vshrl.u32 %v7569_v37, 16  ;;  %v7603_v22 = vld [vmem:[#allocation3 + $0x18] sm:$0xf] }
  0xc5   : > { %v2323_v7 = vshll.u32 %v7569_v37, 16  ;;  %v1932_v43 = vrot.slane %v1930_v42, 4  ;;  %v2333_v25 = vshrl.u32 %v7583_v20, 16  ;;  %v2329_v28 = vshll.u32 %v7583_v20, 16  ;;  %v7609_v61 = vld [vmem:[#allocation3 + $0x1c] sm:$0xf] }
  0xc6   : > { %6317 = vmatmul.mubr.msk.bf16.gmra.mxu1 %vm1270_vm14, %v9692_v30  ;;  %v1937_v30 = vrot.slane %v7381_v10, 5  ;;  %v7614_v58 = vsel %vm7351_vm1, %v5786_v49, %v1930_v42  ;;  %v2339_v53 = vshll.u32 %v7596_v32, 16  ;;  %v2344_v42 = vshrl.u32 %v7603_v22, 16  ;;  %v7646_v10 = vld [vmem:[#allocation3 + $0x28] sm:$0xf] }
  0xc7   : > { %6320 = vmatprep.mubr.msk.bf16.mxu1 %vm1270_vm14, %v9693_v21  ;;  %v1940_v21 = vrot.slane %v7383_v55, 5  ;;  %v2325_v13 = vrot.slane %v2323_v7, 5  ;;  %v5903_v55 = vld [vmem:[%s9623_s1 + $0xa] sm:$0x3]  ;;  %v2331_v56 = vrot.slane %v2329_v28, 5  ;;  %v2335_v38 = vrot.slane %v2333_v25, 4 }
  0xc8   : > { %6359 = vmatmul.mubr.msk.bf16.gmra.mxu0 %vm1270_vm14, %v5796_v11  ;;  %v7618_v60 = vsel %vm7351_vm1, %v5787_v40, %v1937_v30  ;;  %v2322_v11 = vrot.slane %v2320_v62, 4  ;;  %v1939_v59 = vrot.slane %v1937_v30, 4  ;;  %v2347_v49 = vshll.u32 %v7603_v22, 16  ;;  %v5937_v62 = vld [vmem:[%s9623_s1 + $0xe] sm:$0x3] }
  0xc9   : > { %6362 = vmatprep.mubr.msk.bf16.mxu0 %vm1270_vm14, %v5797_v41  ;;  %v7624_v41 = vld [vmem:[#allocation3 + $0x20] sm:$0x1]  ;;  %v2357_v40 = vshrl.u32 %v7609_v61, 16  ;;  %v7634_v30 = vsel %vm7351_vm1, %v1932_v43, %v1933_v51  ;;  %v2336_v28 = vor.u32 %v2335_v38, %v2331_v56  ;;  %v2341_v25 = vrot.slane %v2339_v53, 5 }
  0xca   : > { %9695 = vst [vmem:[#allocation13_spill] sm:$0xff] %v7624_v41  ;;  %v2326_v29 = vor.u32 %v2325_v13, %v2322_v11  ;;  %v7637_v7 = vand.u32 %v5903_v55, %v6868_v4  ;;  %v7639_v13 = vld [vmem:[#allocation3 + $0x24] sm:$0xf]  ;;  %v9696_v11 = vcombine.low %v7171_v12, %v7187_v36  ;;  %v2346_v46 = vrot.slane %v2344_v42, 4 }
  0xcb   : > { %v2349_v9 = vrot.slane %v2347_v49, 5  ;;  %v2353_v5 = vshll.u32 %v7609_v61, 16  ;;  %v9697_v38 = vcombine.low %v7285_v18, %v7293_v45  ;;  %v2337_v53 = vrot.slane %v2336_v28, 4 }
  0xcc   : > { %v2327_v32 = vrot.slane %v2326_v29, 4  ;;  %6446 = vmatprep.subr.bf16.mxu1 %v7637_v7  ;;  %v2359_v51 = vrot.slane %v2357_v40, 4  ;;  %v2363_v12 = vshll.u32 %v7624_v41, 16  ;;  %v7655_v36 = vand.u32 %v5937_v62, %v6868_v4  ;;  %v7680_v62 = vld [vmem:[#allocation3 + $0x34] sm:$0xf] }
  0xcd   : > { %v2350_v43 = vor.u32 %v2349_v9, %v2346_v46  ;;  %v2355_v55 = vrot.slane %v2353_v5, 5  ;;  %v2368_v42 = vshrl.u32 %v7639_v13, 16  ;;  %v9698_v18 = vcombine.low %v7499_v27, %v7509_v39  ;;  %v7673_v9 = vld [vmem:[#allocation3 + $0x2c] sm:$0x1]  ;;  %v7675_v46 = vld [vmem:[#allocation3 + $0x30] sm:$0xf] }
  0xce   : > { %6321 = vmatmul.mubr.msk.bf16.gmra.mxu1 %vm1270_vm14, %v9696_v11  ;;  %v7666_v45 = vsel %vm7351_vm1, %v1939_v59, %v1940_v21  ;;  %v2332_v49 = vsel %vm6978_vm13, %v2327_v32, %v2331_v56  ;;  %6480 = vmatprep.subr.bf16.mxu0 %v7655_v36  ;;  %v2371_v40 = vshll.u32 %v7639_v13, 16  ;;  %v2381_v5 = vshrl.u32 %v7646_v10, 16 }
  0xcf   : > { %6324 = vmatprep.mubr.msk.bf16.mxu1 %vm1270_vm14, %v9697_v38  ;;  %v2342_v27 = vsel %vm6978_vm13, %v2337_v53, %v2341_v25  ;;  %v2360_v39 = vor.u32 %v2359_v51, %v2355_v55  ;;  %v2365_v59 = vrot.slane %v2363_v12, 5  ;;  %v2370_v21 = vrot.slane %v2368_v42, 4  ;;  %v7689_v12 = vld [vmem:[#allocation3 + $0x3c] sm:$0xf]  ;;  %v7767_v38 = vld [vmem:[#allocation3 + $0x58] sm:$0xf] }
  0xd0   : > { %6363 = vmatmul.mubr.msk.bf16.gmra.mxu0 %vm1270_vm14, %v9698_v18  ;;  %v2351_v32 = vrot.slane %v2350_v43, 4  ;;  %v2373_v56 = vrot.slane %v2371_v40, 5  ;;  %v2377_v28 = vshll.u32 %v7646_v10, 16  ;;  %v2383_v11 = vrot.slane %v2381_v5, 4 }
  0xd1   : > { %6366 = vmatprep.mubr.msk.bf16.mxu0 %vm1270_vm14, %v5799_v57  ;;  %v2361_v18 = vrot.slane %v2360_v39, 4  ;;  %v2387_v29 = vshll.u32 %v7673_v9, 16  ;;  %v2392_v57 = vshrl.u32 %v7675_v46, 16  ;;  %v2395_v53 = vshll.u32 %v7675_v46, 16 }
  0xd2   : > { %v2374_v41 = vor.u32 %v2373_v56, %v2370_v21  ;;  %v2379_v25 = vrot.slane %v2377_v28, 5  ;;  %v2405_v51 = vshrl.u32 %v7680_v62, 16  ;;  %v9699_v43 = vcombine.low %v7309_v14, %v7322_v15 }
  0xd3   : > { %v7697_v40 = vcombine.low %v2332_v49, %v2342_v27  ;;  %v2394_v39 = vrot.slane %v2392_v57, 4  ;;  %v9700_v21 = vcombine.low %v7436_v63, %v7438_v44  ;;  %v2356_v56 = vsel %vm6978_vm13, %v2351_v32, %v2355_v55  ;;  %v7711_v27 = vld [vmem:[#allocation3 + $0x38] sm:$0x1] }
  0xd4   : > { %v2366_v14 = vsel %vm6978_vm13, %v2361_v18, %v2365_v59  ;;  %v2384_v15 = vor.u32 %v2383_v11, %v2379_v25  ;;  %v2397_v28 = vrot.slane %v2395_v53, 5  ;;  %v2375_v49 = vrot.slane %v2374_v41, 4 }
  0xd5   : > { %v2401_v57 = vshll.u32 %v7680_v62, 16  ;;  %v2407_v5 = vrot.slane %v2405_v51, 4  ;;  %v2416_v63 = vshrl.u32 %v7689_v12, 16  ;;  %v9701_v44 = vcombine.low %v7550_v26, %v7562_v16  ;;  %v7727_v26 = vld [vmem:[#allocation3 + $0x48] sm:$0xf] }
  0xd6   : > { %6325 = vmatmul.mubr.msk.bf16.gmra.mxu1 %vm1270_vm14, %v9699_v43  ;;  %v7709_v43 = vld [vmem:[#allocation3 + $0x40] sm:$0xf]  ;;  %v2385_v55 = vrot.slane %v2384_v15, 4  ;;  %v2389_v32 = vrot.slane %v2387_v29, 5  ;;  %v2398_v59 = vor.u32 %v2397_v28, %v2394_v39  ;;  %v2419_v11 = vshll.u32 %v7689_v12, 16 }
  0xd7   : > { %6328 = vmatprep.mubr.msk.bf16.mxu1 %vm1270_vm14, %v9700_v21  ;;  %v9702_v41 = vcombine.low %v7534_v33, %v7554_v17  ;;  %v2403_v53 = vrot.slane %v2401_v57, 5  ;;  %v2418_v51 = vrot.slane %v2416_v63, 4  ;;  %v2429_v21 = vshrl.u32 %v7709_v43, 16  ;;  %v7734_v33 = vld [vmem:[#allocation3 + $0x44] sm:$0x1] }
  0xd8   : > { %6367 = vmatmul.mubr.msk.bf16.gmra.mxu0 %vm1270_vm14, %v9701_v44  ;;  %v7729_v16 = vcombine.low %v2356_v56, %v2366_v14  ;;  %v2411_v39 = vshll.u32 %v7711_v27, 16  ;;  %v2421_v15 = vrot.slane %v2419_v11, 5  ;;  %v7736_v17 = vld [vmem:[#allocation3 + $0x4c] sm:$0xf]  ;;  %v2380_v28 = vsel %vm6978_vm13, %v2375_v49, %v2379_v25 }
  0xd9   : > { %6370 = vmatprep.mubr.msk.bf16.mxu0 %vm1270_vm14, %v9702_v41  ;;  %v2408_v57 = vor.u32 %v2407_v5, %v2403_v53  ;;  %v2425_v63 = vshll.u32 %v7709_v43, 16  ;;  %v2431_v44 = vrot.slane %v2429_v21, 4  ;;  %v2390_v56 = vsel %vm6978_vm13, %v2385_v55, %v2389_v32  ;;  %v7753_v21 = vld [vmem:[#allocation3 + $0x50] sm:$0x1] }
  0xda   : > { %v2399_v14 = vrot.slane %v2398_v59, 4  ;;  %v2422_v41 = vor.u32 %v2421_v15, %v2418_v51  ;;  %v2440_v29 = vshrl.u32 %v7727_v26, 16  ;;  %v9703_v11 = vcombine.low %v7454_v54, %v7452_v48  ;;  %v7761_v51 = vld [vmem:[#allocation3 + $0x54] sm:$0xf] }
  0xdb   : > { %v7748_v18 = vrot.slane %v2425_v63, 5  ;;  %v2435_v25 = vshll.u32 %v7734_v33, 16  ;;  %v2443_v5 = vshll.u32 %v7727_v26, 16  ;;  %v2453_v49 = vshrl.u32 %v7736_v17, 16 }
  0xdc   : > { %v9704_v55 = vcombine.low %v7518_v3, %v7486_v0  ;;  %v2409_v32 = vrot.slane %v2408_v57, 4  ;;  %v2413_v59 = vrot.slane %v2411_v39, 5  ;;  %v2442_v54 = vrot.slane %v2440_v29, 4 }
  0xdd   : > { %v7763_v15 = vcombine.low %v2380_v28, %v2390_v56  ;;  %v2432_v63 = vor.u32 %v2431_v44, %v7748_v18  ;;  %v2449_v42 = vshll.u32 %v7736_v17, 16  ;;  %v9705_v0 = vcombine.low %v7558_v24, %v7581_v19 }
  0xde   : > { %6329 = vmatmul.mubr.msk.bf16.gmra.mxu1 %vm1270_vm14, %v9703_v11  ;;  %v2445_v11 = vrot.slane %v2443_v5, 5  ;;  %v2404_v3 = vsel %vm6978_vm13, %v2399_v14, %v2403_v53  ;;  %v2423_v29 = vrot.slane %v2422_v41, 4  ;;  %v2455_v39 = vrot.slane %v2453_v49, 4  ;;  %v7787_v41 = vld [vmem:[#allocation3 + $0x5c] sm:$0x1] }
  0xdf   : > { %6332 = vmatprep.mubr.msk.bf16.mxu1 %vm1270_vm14, %v9704_v55  ;;  %v2459_v28 = vshll.u32 %v7753_v21, 16  ;;  %v9706_v57 = vcombine.low %v7614_v58, %v7634_v30  ;;  %v2437_v44 = vrot.slane %v2435_v25, 5  ;;  %v2451_v5 = vrot.slane %v2449_v42, 5  ;;  %9707 = vst [vmem:[#allocation14_spill] sm:$0xff] %v7787_v41  ;;  %v7789_v58 = vld [vmem:[#allocation3 + $0x60] sm:$0xf] }
  0xe0   : > { %6371 = vmatmul.mubr.msk.bf16.gmra.mxu0 %vm1270_vm14, %v9705_v0  ;;  %v2446_v56 = vor.u32 %v2445_v11, %v2442_v54  ;;  %v2464_v55 = vshrl.u32 %v7761_v51, 16  ;;  %v2414_v24 = vsel %vm6978_vm13, %v2409_v32, %v2413_v59  ;;  %v2467_v53 = vshll.u32 %v7761_v51, 16  ;;  %v7791_v54 = vld [vmem:[#allocation3 + $0x64] sm:$0xf] }
  0xe1   : > { %6374 = vmatprep.mubr.msk.bf16.mxu0 %vm1270_vm14, %v9706_v57  ;;  %v2477_v14 = vshrl.u32 %v7767_v38, 16  ;;  %v2433_v30 = vrot.slane %v2432_v63, 4  ;;  %v2456_v25 = vor.u32 %v2455_v39, %v2451_v5  ;;  %v2461_v49 = vrot.slane %v2459_v28, 5 }
  0xe2   : > { %v2466_v42 = vrot.slane %v2464_v55, 4  ;;  %v2447_v11 = vrot.slane %v2446_v56, 4  ;;  %v2469_v0 = vrot.slane %v2467_v53, 5  ;;  %v2473_v32 = vshll.u32 %v7767_v38, 16 }
  0xe3   : > { %v2479_v59 = vrot.slane %v2477_v14, 4  ;;  %v9708_v57 = vcombine.low %v7575_v1, %v7115_v47  ;;  %v7798_v19 = vcombine.low %v2404_v3, %v2414_v24  ;;  %v2457_v48 = vrot.slane %v2456_v25, 4  ;;  %v7810_v1 = vld [vmem:[#allocation3 + $0x6c] sm:$0xf] }
  0xe4   : > { %v2483_v63 = vshll.u32 %v7787_v41, 16  ;;  %v2488_v39 = vshrl.u32 %v7789_v58, 16  ;;  %v9709_v28 = vcombine.low %v7215_v34, %v7205_v23  ;;  %v2470_v56 = vor.u32 %v2469_v0, %v2466_v42  ;;  %v7828_v0 = vld [vmem:[#allocation3 + $0x70] sm:$0xf] }
  0xe5   : > { %v7806_v55 = vrot.slane %v2473_v32, 5  ;;  %v2491_v53 = vshll.u32 %v7789_v58, 16  ;;  %v2501_v47 = vshrl.u32 %v7791_v54, 16  ;;  %v2428_v3 = vsel %vm6978_vm13, %v2423_v29, %v7748_v18 }
  0xe6   : > { %6333 = vmatmul.mubr.msk.bf16.gmra.mxu1 %vm1270_vm14, %v9708_v57  ;;  %v2438_v24 = vsel %vm6978_vm13, %v2433_v30, %v2437_v44  ;;  %v2490_v34 = vrot.slane %v2488_v39, 4  ;;  %v9710_v14 = vcombine.low %v7618_v60, %v7666_v45  ;;  %v2452_v25 = vsel %vm6978_vm13, %v2447_v11, %v2451_v5  ;;  %v7834_v60 = vld [vmem:[#allocation3 + $0x68] sm:$0x1]  ;;  %v7841_v57 = vld [vmem:[#allocation3 + $0x74] sm:$0x1] }
  0xe7   : > { %6336 = vmatprep.mubr.msk.bf16.mxu1 %vm1270_vm14, %v9709_v28  ;;  %v2462_v42 = vsel %vm6978_vm13, %v2457_v48, %v2461_v49  ;;  %v2480_v18 = vor.u32 %v2479_v59, %v7806_v55  ;;  %v2493_v29 = vrot.slane %v2491_v53, 5  ;;  %v9711_v44 = vcombine.low %v7569_v37, %v7583_v20  ;;  %9712 = vst [vmem:[#allocation15_spill] sm:$0xff] %v7834_v60  ;;  %v7846_v53 = vld [vmem:[#allocation3 + $0x78] sm:$0xf] }
  0xe8   : > { %6375 = vmatmul.mubr.msk.bf16.gmra.mxu0 %vm1270_vm14, %v9710_v14  ;;  %v2471_v30 = vrot.slane %v2470_v56, 4  ;;  %v2497_v45 = vshll.u32 %v7791_v54, 16  ;;  %v2503_v32 = vrot.slane %v2501_v47, 4  ;;  %v2512_v5 = vshrl.u32 %v7810_v1, 16  ;;  %9713 = vst [vmem:[#allocation16_spill] sm:$0xff] %v7841_v57 }
  0xe9   : > { %6414 = vmatprep.mubr.msk.bf16.mxu0 %vm1270_vm14, %v9711_v44  ;;  %v7838_v11 = vcombine.low %v2428_v3, %v2438_v24  ;;  %v2485_v48 = vrot.slane %v2483_v63, 5  ;;  %v2494_v49 = vor.u32 %v2493_v29, %v2490_v34  ;;  %v2515_v59 = vshll.u32 %v7810_v1, 16  ;;  %v7853_v24 = vld [vmem:[#allocation3 + $0x7c] sm:$0xf]  ;;  %v7886_v47 = vld [vmem:[#allocation3 + $0x88] sm:$0xf] }
  0xea   : > { %v2481_v39 = vrot.slane %v2480_v18, 4  ;;  %v7843_v37 = vrot.slane %v2497_v45, 5  ;;  %v2514_v28 = vrot.slane %v2512_v5, 4  ;;  %v2525_v56 = vshrl.u32 %v7828_v0, 16 }
  0xeb   : > { %v7848_v14 = vcombine.low %v2452_v25, %v2462_v42  ;;  %v2507_v63 = vshll.u32 %v7834_v60, 16  ;;  %v2517_v3 = vrot.slane %v2515_v59, 5  ;;  %v9714_v34 = vcombine.low %v7238_v8, %v7253_v6 }
  0xec   : > { %v2476_v18 = vsel %vm6978_vm13, %v2471_v30, %v7806_v55  ;;  %v2504_v25 = vor.u32 %v2503_v32, %v7843_v37  ;;  %v2521_v42 = vshll.u32 %v7828_v0, 16  ;;  %v2527_v29 = vrot.slane %v2525_v56, 4  ;;  %v2312_v56 = vld [vmem:[#allocation3 + $0x80] sm:$0x1] }
  0xed   : > { %v9715_v44 = vcombine.low %v7336_v50, %v7338_v52  ;;  %v2495_v45 = vrot.slane %v2494_v49, 4  ;;  %v2518_v5 = vor.u32 %v2517_v3, %v2514_v28  ;;  %v2531_v8 = vshll.u32 %v7841_v57, 16 }
  0xee   : > { %6337 = vmatmul.mubr.msk.bf16.gmra.mxu1 %vm1270_vm14, %v9714_v34  ;;  %v2536_v6 = vshrl.u32 %v7846_v53, 16  ;;  %v2486_v59 = vsel %vm6978_vm13, %v2481_v39, %v2485_v48  ;;  %v2523_v55 = vrot.slane %v2521_v42, 5  ;;  %v2539_v30 = vshll.u32 %v7846_v53, 16  ;;  %v7878_v34 = vld [vmem:[#allocation3 + $0x84] sm:$0xf] }
  0xef   : > { %6340 = vmatprep.mubr.msk.bf16.mxu1 %vm1270_vm14, %v9715_v44  ;;  %v2549_v32 = vshrl.u32 %v7853_v24, 16  ;;  %v9716_v50 = vcombine.low %v7603_v22, %v7609_v61  ;;  %v2505_v52 = vrot.slane %v2504_v25, 4  ;;  %v2509_v49 = vrot.slane %v2507_v63, 5 }
  0xf0   : > { %v2519_v28 = vrot.slane %v2518_v5, 4  ;;  %v2533_v3 = vrot.slane %v2531_v8, 5  ;;  %v9717_v48 = vcombine.low %v7639_v13, %v7646_v10  ;;  %v2528_v39 = vor.u32 %v2527_v29, %v2523_v55 }
  0xf1   : > { %6415 = vmatmul.mubr.msk.bf16.vlgmr.msra.gmra.mxu0 %vm1270_vm14, %v9716_v50  ;;  %v2538_v42 = vrot.slane %v2536_v6, 4  ;;  %v2541_v44 = vrot.slane %v2539_v30, 5  ;;  %v2545_v22 = vshll.u32 %v7853_v24, 16  ;;  %v7888_v25 = vcombine.low %v2476_v18, %v2486_v59  ;;  %v7904_v50 = vld [vmem:[#allocation3 + $0x90] sm:$0xf] }
  0xf2   : > { %6481 = vmatpush3.bf16.msra.mxu0 %v7655_v36  ;;  %6418 = vmatprep.mubr.msk.bf16.mxu0 %vm1270_vm14, %v9717_v48  ;;  %v2500_v63 = vsel %vm6978_vm13, %v2495_v45, %v7843_v37  ;;  %v2551_v5 = vrot.slane %v2549_v32, 4  ;;  %v2529_v13 = vrot.slane %v2528_v39, 4  ;;  %v2555_v29 = vshll.u32 %v2312_v56, 16  ;;  %v2313_v45 = vld [vmem:[#allocation3 + $0x8c] sm:$0x1]  ;;  %v9718_v32 = vld [vmem:[#allocation11_spill] sm:$0xff] }
  0xf3   : > { %v7895_v8 = vrot.slane %v2545_v22, 5  ;;  %v2560_v6 = vshrl.u32 %v7878_v34, 16  ;;  %v2510_v30 = vsel %vm6978_vm13, %v2505_v52, %v2509_v49  ;;  %v2563_v59 = vshll.u32 %v7878_v34, 16  ;;  %v7914_v22 = vld [vmem:[#allocation3 + $0x94] sm:$0xf] }
  0xf4   : > { %v2573_v37 = vshrl.u32 %v7886_v47, 16  ;;  %v9719_v48 = vcombine.low %v7364_v2, %v9718_v32  ;;  %v2524_v56 = vsel %vm6978_vm13, %v2519_v28, %v2523_v55  ;;  %v2534_v52 = vsel %vm6978_vm13, %v2529_v13, %v2533_v3  ;;  %v2314_v3 = vld [vmem:[#allocation3 + $0x98] sm:$0x1] }
  0xf5   : > { %v2542_v49 = vor.u32 %v2541_v44, %v2538_v42  ;;  %v2562_v39 = vrot.slane %v2560_v6, 4  ;;  %v2552_v18 = vor.u32 %v2551_v5, %v7895_v8  ;;  %v2565_v36 = vrot.slane %v2563_v59, 5 }
  0xf6   : > { %6341 = vmatmul.mubr.msk.bf16.gmra.mxu1 %vm1270_vm14, %v9719_v48  ;;  %v2569_v2 = vshll.u32 %v7886_v47, 16  ;;  %v2575_v32 = vrot.slane %v2573_v37, 4  ;;  %v7920_v48 = vcombine.low %v2500_v63, %v2510_v30  ;;  %v7922_v23 = vrot.slane %v2555_v29, 5  ;;  %v7933_v63 = vld [vmem:[#allocation3 + $0x9c] sm:$0xf] }
  0xf7   : > { %6380 = vmatprep.mubr.msk.bf16.mxu1 %vm1270_vm14, %v7697_v40  ;;  %v2579_v55 = vshll.u32 %v2313_v45, 16  ;;  %v2584_v28 = vshrl.u32 %v7904_v50, 16  ;;  %v9720_v42 = vcombine.low %v7675_v46, %v7680_v62  ;;  %v2566_v40 = vor.u32 %v2565_v36, %v2562_v39  ;;  %v2315_v46 = vld [vmem:[#allocation3 + $0xa4] sm:$0x1] }
  0xf8   : > { %v7929_v44 = vrot.slane %v2569_v2, 5  ;;  %v2587_v5 = vshll.u32 %v7904_v50, 16  ;;  %v2597_v13 = vshrl.u32 %v7914_v22, 16  ;;  %v9721_v29 = vcombine.low %v7689_v12, %v7709_v43  ;;  %v7944_v2 = vld [vmem:[#allocation3 + $0xa0] sm:$0xf] }
  0xf9   : > { %6419 = vmatmul.mubr.msk.bf16.gmra.mxu0 %vm1270_vm14, %v9720_v42  ;;  %v7939_v6 = vcombine.low %v2524_v56, %v2534_v52  ;;  %v2543_v30 = vrot.slane %v2542_v49, 4  ;;  %v2586_v36 = vrot.slane %v2584_v28, 4  ;;  %v2553_v59 = vrot.slane %v2552_v18, 4 }
  0xfa   : > { %6422 = vmatprep.mubr.msk.bf16.mxu0 %vm1270_vm14, %v9721_v29  ;;  %v2567_v37 = vrot.slane %v2566_v40, 4  ;;  %v2576_v45 = vor.u32 %v2575_v32, %v7929_v44  ;;  %v2589_v39 = vrot.slane %v2587_v5, 5  ;;  %v2593_v42 = vshll.u32 %v7914_v22, 16 }
  0xfb   : > { %v2599_v57 = vrot.slane %v2597_v13, 4  ;;  %v2603_v12 = vshll.u32 %v2314_v3, 16  ;;  %v2608_v29 = vshrl.u32 %v7933_v63, 16  ;;  %v2581_v52 = vrot.slane %v2579_v55, 5  ;;  %v7955_v3 = vld [vmem:[#allocation3 + $0xa8] sm:$0xf] }
  0xfc   : > { %v2577_v56 = vrot.slane %v2576_v45, 4  ;;  %v2590_v49 = vor.u32 %v2589_v39, %v2586_v36  ;;  %v2611_v60 = vshll.u32 %v7933_v63, 16  ;;  %v2548_v18 = vsel %vm6978_vm13, %v2543_v30, %v7895_v8  ;;  %v7966_v13 = vld [vmem:[#allocation3 + $0xac] sm:$0xf] }
  0xfd   : > { %v2595_v32 = vrot.slane %v2593_v42, 5  ;;  %v2610_v28 = vrot.slane %v2608_v29, 4  ;;  %v2621_v40 = vshrl.u32 %v7944_v2, 16  ;;  %v2558_v55 = vsel %vm6978_vm13, %v2553_v59, %v7922_v23 }
  0xfe   : > { %6381 = vmatmul.mubr.msk.bf16.vlgmr.msra.gmra.mxu1 %vm1270_vm14, %v7729_v16  ;;  %v2572_v16 = vsel %vm6978_vm13, %v2567_v37, %v7929_v44  ;;  %v2591_v8 = vrot.slane %v2590_v49, 4  ;;  %v2613_v5 = vrot.slane %v2611_v60, 5  ;;  %v2605_v36 = vrot.slane %v2603_v12, 5 }
  0xff   : > { %6447 = vmatpush3.bf16.msra.mxu1 %v7637_v7  ;;  %6384 = vmatprep.mubr.msk.bf16.mxu1 %vm1270_vm14, %v7763_v15  ;;  %v2600_v30 = vor.u32 %v2599_v57, %v2595_v32  ;;  %v2617_v45 = vshll.u32 %v7944_v2, 16  ;;  %v2623_v7 = vrot.slane %v2621_v40, 4  ;;  %v9722_v15 = vcombine.low %v7727_v26, %v7736_v17 }
 0x100   : > { %v2582_v23 = vsel %vm6978_vm13, %v2577_v56, %v2581_v52  ;;  %v2614_v59 = vor.u32 %v2613_v5, %v2610_v28  ;;  %v2627_v39 = vshll.u32 %v2315_v46, 16  ;;  %v2632_v44 = vshrl.u32 %v7955_v3, 16  ;;  %v2316_v52 = vld [vmem:[#allocation3 + $0xb0] sm:$0x1] }
 0x101   : > { %6423 = vmatmul.mubr.msk.bf16.gmra.mxu0 %vm1270_vm14, %v9722_v15  ;;  %v9723_v60 = vcombine.low %v7761_v51, %v7767_v38  ;;  %v2601_v57 = vrot.slane %v2600_v30, 4  ;;  %v7980_v37 = vrot.slane %v2617_v45, 5  ;;  %v2635_v42 = vshll.u32 %v7955_v3, 16  ;;  %v7990_v51 = vld [vmem:[#allocation3 + $0xb4] sm:$0xf] }
 0x102   : > { %v2645_v26 = vshrl.u32 %v7966_v13, 16  ;;  %v2596_v46 = vsel %vm6978_vm13, %v2591_v8, %v2595_v32  ;;  %v7988_v29 = vrot.slane %v2614_v59, 4  ;;  %v2634_v56 = vrot.slane %v2632_v44, 4  ;;  %v7996_v30 = vld [vmem:[#allocation3 + $0xb8] sm:$0xf] }
 0x103   : > { %6426 = vmatprep.mubr.msk.bf16.mxu0 %vm1270_vm14, %v9723_v60  ;;  %v2606_v49 = vsel %vm6978_vm13, %v2601_v57, %v2605_v36  ;;  %v2624_v28 = vor.u32 %v2623_v7, %v7980_v37  ;;  %v2637_v40 = vrot.slane %v2635_v42, 5  ;;  %v2641_v5 = vshll.u32 %v7966_v13, 16  ;;  %v347_v32 = vld [vmem:[%s6909_s7 + $0x7c] sm:$0xf] }
 0x104   : > { %v7998_v45 = vcombine.low %v2548_v18, %v2558_v55  ;;  %v8000_v15 = vcombine.low %v2572_v16, %v2582_v23  ;;  %v2647_v8 = vrot.slane %v2645_v26, 4  ;;  %v2629_v36 = vrot.slane %v2627_v39, 5  ;;  %v2317_v23 = vld [vmem:[#allocation3 + $0xbc] sm:$0x1]  ;;  %v236_v39 = vld [vmem:[#allocation3 + $0xc0] sm:$0x1] }
 0x105   : > { %v8006_v59 = vrot.slane %v2641_v5, 5  ;;  %v2651_v7 = vshll.u32 %v2316_v52, 16  ;;  %v2656_v44 = vshrl.u32 %v7990_v51, 16  ;;  %v8011_v18 = vcombine.low %v2596_v46, %v2606_v49  ;;  %v346_v26 = vld [vmem:[%s6909_s7 + $0x78] sm:$0xf] }
 0x106   : > { %6385 = vmatmul.mubr.msk.bf16.gmra.mxu1 %vm1270_vm14, %v7798_v19  ;;  %v2659_v16 = vshll.u32 %v7990_v51, 16  ;;  %v2669_v19 = vshrl.u32 %v7996_v30, 16  ;;  %v2620_v60 = vsel %vm6978_vm13, %v7988_v29, %v7980_v37  ;;  %v2625_v57 = vrot.slane %v2624_v28, 4  ;;  %v292_v28 = vld [vmem:[#allocation3 + $0xc8] sm:$0x1] }
 0x107   : > { %6388 = vmatprep.mubr.msk.bf16.mxu1 %vm1270_vm14, %v7838_v11  ;;  %v2638_v42 = vor.u32 %v2637_v40, %v2634_v56  ;;  %v2658_v11 = vrot.slane %v2656_v44, 4  ;;  %v9724_v46 = vcombine.low %v7789_v58, %v7791_v54  ;;  %v2648_v52 = vor.u32 %v2647_v8, %v8006_v59 }
 0x108   : > { %v2661_v49 = vrot.slane %v2659_v16, 5  ;;  %v2665_v5 = vshll.u32 %v7996_v30, 16  ;;  %v2671_v55 = vrot.slane %v2669_v19, 4  ;;  %v9725_v12 = vcombine.low %v7810_v1, %v7828_v0  ;;  %v3808_v19 = vld [vmem:[#allocation3 + $0x18] sm:$0xf] }
 0x109   : > { %6427 = vmatmul.mubr.msk.bf16.gmra.mxu0 %vm1270_vm14, %v9724_v46  ;;  %v8033_v37 = vrot.slane %v2651_v7, 5  ;;  %v2675_v58 = vshll.u32 %v2317_v23, 16  ;;  %v237_v56 = vsel %vm6871_vm5, 0, %v236_v39  ;;  %v606_v44 = vshrl.u32 %v346_v26, 16 }
 0x10a   : > { %6430 = vmatprep.mubr.msk.bf16.mxu0 %vm1270_vm14, %v9725_v12  ;;  %v2662_v40 = vor.u32 %v2661_v49, %v2658_v11  ;;  %v8039_v8 = vrot.slane %v2665_v5, 5  ;;  %238 = vst [vmem:[#allocation3 + $0xc0] sm:$0x1] %v237_v56  ;;  %v609_v16 = vshll.u32 %v346_v26, 16  ;;  %v2630_v1 = vsel %vm6978_vm13, %v2625_v57, %v2629_v36  ;;  %v3809_v5 = vld [vmem:[#allocation3 + $0x1c] sm:$0xf] }
 0x10b   : > { %v2639_v0 = vrot.slane %v2638_v42, 4  ;;  %v614_v12 = vshrl.u32 %v347_v32, 16  ;;  %v617_v7 = vshll.u32 %v347_v32, 16  ;;  %v2649_v46 = vrot.slane %v2648_v52, 4 }
 0x10c   : > { %v8043_v29 = vrot.slane %v2662_v40, 4  ;;  %v2672_v23 = vor.u32 %v2671_v55, %v8039_v8  ;;  %v608_v39 = vrot.slane %v606_v44, 7  ;;  %v293_v26 = vsel %vm6879_vm7, 0, %v292_v28 }
 0x10d   : > { %v616_v11 = vrot.slane %v614_v12, 7  ;;  %v3859_v56 = vshrl.u32 %v3808_v19, 16  ;;  %v3862_v41 = vshll.u32 %v3808_v19, 16  ;;  %v2677_v36 = vrot.slane %v2675_v58, 5  ;;  %294 = vst [vmem:[#allocation3 + $0xc8] sm:$0x1] %v293_v26 }
 0x10e   : > { %6389 = vmatmul.mubr.msk.bf16.gmra.mxu1 %vm1270_vm14, %v7848_v14  ;;  %v2673_v32 = vrot.slane %v2672_v23, 4  ;;  %v611_v57 = vor.u32 %v609_v16, %v608_v39  ;;  %v612_v42 = vrot.slane %v608_v39, 4  ;;  %v8052_v55 = vcombine.low %v2620_v60, %v2630_v1  ;;  %v3842_v58 = vld [vmem:[#allocation3 + $0x20] sm:$0x1]  ;;  %v3810_v19 = vld [vmem:[#allocation3 + $0x24] sm:$0xf] }
 0x10f   : > { %6392 = vmatprep.mubr.msk.bf16.mxu1 %vm1270_vm14, %v7888_v25  ;;  %v619_v52 = vor.u32 %v617_v7, %v616_v11  ;;  %v3861_v40 = vrot.slane %v3859_v56, 4  ;;  %v3864_v14 = vrot.slane %v3862_v41, 5  ;;  %v9728_v44 = vcombine.low %v7846_v53, %v7853_v24  ;;  %v3811_v12 = vld [vmem:[#allocation3 + $0x28] sm:$0xf]  ;;  %v3257_v39 = vld [vmem:[#allocation3 + $0xc] sm:$0xe] }
 0x110   : > { %v2644_v28 = vsel %vm6978_vm13, %v2639_v0, %v8006_v59  ;;  %v2654_v25 = vsel %vm6978_vm13, %v2649_v46, %v8033_v37  ;;  %v3868_v16 = vshll.u32 %v3809_v5, 16  ;;  %v3872_v60 = vshrl.u32 %v3809_v5, 16  ;;  %v3843_v26 = vld [vmem:[#allocation3 + $0x2c] sm:$0x1] }
 0x111   : > { %6431 = vmatmul.mubr.msk.bf16.gmra.mxu0 %vm1270_vm14, %v9728_v44  ;;  %v9729_v41 = vcombine.low %v7878_v34, %v7886_v47  ;;  %v2668_v53 = vsel %vm6978_vm13, %v8043_v29, %v8039_v8  ;;  %v620_v59 = vsel %vm6938_vm12, %v612_v42, %v619_v52  ;;  %v621_v1 = vrot.slane %v616_v11, 4  ;;  %v776_v0 = vld [vmem:[#allocation3 + $0xc0] sm:$0xf] }
 0x112   : > { %v3865_v37 = vor.u32 %v3864_v14, %v3861_v40  ;;  %v2678_v7 = vsel %vm6978_vm13, %v2673_v32, %v2677_v36  ;;  %v777_v47 = vsel %vm6902_vm8, %v611_v57, %v776_v0  ;;  %779 = vst.msk [vmem:[#allocation3 + $0xc4] sm:$0xf] %vm298_vm4, %v620_v59  ;;  %v8079_v34 = vrot.slane %v3868_v16, 5  ;;  %v5936_v57 = vld [vmem:[%s9623_s1 + $0xc] sm:$0x3]  ;;  %v9732_v44 = vld [vmem:[#allocation12_spill] sm:$0xff] }
 0x113   : > { %6434 = vmatprep.mubr.msk.bf16.mxu0 %vm1270_vm14, %v9729_v41  ;;  %v3874_v23 = vrot.slane %v3872_v60, 4  ;;  %778 = vst [vmem:[#allocation3 + $0xc0] sm:$0xf] %v777_v47  ;;  %v3878_v8 = vshll.u32 %v3842_v58, 16  ;;  %v3307_v11 = vrot.slane %v7583_v20, 5  ;;  %v3883_v5 = vshrl.u32 %v3810_v19, 16 }
 0x114   : > { %v8081_v29 = vrot.slane %v3865_v37, 4  ;;  %v3886_v32 = vshll.u32 %v3810_v19, 16  ;;  %v3892_v36 = vshll.u32 %v3811_v12, 16  ;;  %v3896_v42 = vshrl.u32 %v3811_v12, 16  ;;  %v780_v52 = vld [vmem:[#allocation3 + $0xc8] sm:$0x1] }
 0x115   : > { %v3875_v56 = vor.u32 %v3874_v23, %v8079_v34  ;;  %v5887_v40 = vrot.slane %v3257_v39, 9  ;;  %v3309_v14 = vrot.slane %v3307_v11, 4  ;;  %v3310_v58 = vrot.slane %v9732_v44, 5 }
 0x116   : > { %6393 = vmatmul.mubr.msk.bf16.gmra.mxu1 %vm1270_vm14, %v7920_v48  ;;  %v3885_v20 = vrot.slane %v3883_v5, 4  ;;  %v8093_v16 = vcombine.low %v2644_v28, %v2654_v25  ;;  %v781_v60 = vsel %vm6871_vm5, %v621_v1, %v780_v52  ;;  %v3888_v19 = vrot.slane %v3886_v32, 5 }
 0x117   : > { %6396 = vmatprep.mubr.msk.bf16.mxu1 %vm1270_vm14, %v7939_v6  ;;  %v3894_v41 = vrot.slane %v3892_v36, 5  ;;  %782 = vst [vmem:[#allocation3 + $0xc8] sm:$0x1] %v781_v60  ;;  %v3876_v24 = vrot.slane %v3875_v56, 4  ;;  %v3880_v59 = vrot.slane %v3878_v8, 5  ;;  %v3898_v48 = vrot.slane %v3896_v42, 4 }
 0x118   : > { %v3902_v0 = vshll.u32 %v3843_v26, 16  ;;  %v9733_v37 = vcombine.low %v7904_v50, %v7914_v22  ;;  %v8101_v12 = vcombine.low %v2668_v53, %v2678_v7  ;;  %v3871_v6 = vsel %vm6978_vm13, %v8081_v29, %v8079_v34  ;;  %v3258_v34 = vld [vmem:[#allocation3 + $0x18] sm:$0xe]  ;;  %v6018_v56 = vld [vmem:[%s9623_s1 + $0x10] sm:$0x3] }
 0x119   : > { %v3889_v28 = vor.u32 %v3888_v19, %v3885_v20  ;;  %v8108_v25 = vand.u32 %v5936_v57, %v6868_v4  ;;  %v9734_v1 = vcombine.low %v7933_v63, %v7944_v2  ;;  %v8114_v47 = vld [vmem:[#allocation3 + $0xc4] sm:$0xf]  ;;  %v8118_v50 = vsel %vm7351_vm1, %v5887_v40, %v3307_v11 }
 0x11a   : > { %6435 = vmatmul.mubr.msk.bf16.gmra.mxu0 %vm1270_vm14, %v9733_v37  ;;  %v8122_v22 = vsel %vm7351_vm1, %v3309_v14, %v3310_v58  ;;  %v3899_v53 = vor.u32 %v3898_v48, %v3894_v41  ;;  %v3904_v7 = vrot.slane %v3902_v0, 5  ;;  %v8124_v23 = vld [vmem:[#allocation3 + $0xc0] sm:$0xf]  ;;  %v2693_v39 = vshrl.u32 %v8114_v47, 16  ;;  %v8145_v58 = vld [vmem:[#allocation3 + $0x34] sm:$0xf] }
 0x11b   : > { %6438 = vmatprep.mubr.msk.bf16.mxu0 %vm1270_vm14, %v9734_v1  ;;  %v2689_v63 = vshll.u32 %v8114_v47, 16  ;;  %v3890_v2 = vrot.slane %v3889_v28, 4  ;;  %6514 = vmatprep.subr.bf16.mxu1 %v8108_v25  ;;  %v3314_v29 = vrot.slane %v7609_v61, 5  ;;  %v2680_v8 = vshrl.u32 %v8124_v23, 16  ;;  %v3812_v61 = vld [vmem:[#allocation3 + $0x30] sm:$0xf] }
 0x11c   : > { %v2683_v11 = vshll.u32 %v8124_v23, 16  ;;  %v3881_v26 = vsel %vm6978_vm13, %v3876_v24, %v3880_v59  ;;  %v3900_v5 = vrot.slane %v3899_v53, 4  ;;  %v2695_v36 = vrot.slane %v2693_v39, 4  ;;  %v9735_v24 = vld [vmem:[#allocation13_spill] sm:$0xff]  ;;  %v3844_v0 = vld [vmem:[#allocation3 + $0x38] sm:$0x1] }
 0x11d   : > { %v8137_v32 = vrot.slane %v2689_v63, 5  ;;  %v5904_v42 = vcombine.low %v8118_v50, %v8122_v22  ;;  %v5888_v57 = vrot.slane %v3258_v34, 9  ;;  %v2682_v52 = vrot.slane %v2680_v8, 4 }
 0x11e   : > { %6397 = vmatmul.mubr.msk.bf16.gmra.mxu1 %vm1270_vm14, %v7998_v45  ;;  %v2685_v40 = vrot.slane %v2683_v11, 5  ;;  %v3895_v14 = vsel %vm6978_vm13, %v3890_v2, %v3894_v41  ;;  %v3316_v44 = vrot.slane %v3314_v29, 4  ;;  %v8149_v20 = vld [vmem:[#allocation3 + $0xc8] sm:$0x1]  ;;  %v3905_v19 = vsel %vm6978_vm13, %v3900_v5, %v3904_v7 }
 0x11f   : > { %6400 = vmatprep.mubr.msk.bf16.mxu1 %vm1270_vm14, %v8000_v15  ;;  %v2696_v60 = vor.u32 %v2695_v36, %v8137_v32  ;;  %v3317_v45 = vrot.slane %v9735_v24, 5  ;;  %v8156_v59 = vand.u32 %v6018_v56, %v6868_v4  ;;  %v2699_v41 = vshll.u32 %v8149_v20, 16  ;;  %v8189_v56 = vld [vmem:[#allocation3 + $0x40] sm:$0xf] }
 0x120   : > { %v2686_v48 = vor.u32 %v2685_v40, %v2682_v52  ;;  %v3907_v37 = vshrl.u32 %v3812_v61, 16  ;;  %v3910_v28 = vshll.u32 %v3812_v61, 16  ;;  %v9736_v15 = vcombine.low %v7955_v3, %v7966_v13  ;;  %v8193_v40 = vld [vmem:[#allocation3 + $0x44] sm:$0x1] }
 0x121   : > { %v5870_v1 = vcombine.low %v8124_v23, %v8114_v47  ;;  %v5938_v53 = vcombine.low %v3871_v6, %v3881_v26  ;;  %6548 = vmatprep.subr.bf16.mxu0 %v8156_v59  ;;  %v3916_v4 = vshll.u32 %v8145_v58, 16  ;;  %v3920_v7 = vshrl.u32 %v8145_v58, 16  ;;  %v3259_v23 = vld [vmem:[#allocation3 + $0x24] sm:$0xe]  ;;  %v3814_v26 = vld [vmem:[#allocation3 + $0x3c] sm:$0xf] }
 0x122   : > { %6439 = vmatmul.mubr.msk.bf16.gmra.mxu0 %vm1270_vm14, %v9736_v15  ;;  %v9737_v34 = vcombine.low %v7990_v51, %v7996_v30  ;;  %v8172_v39 = vcombine.low %v3895_v14, %v3905_v19  ;;  %v8176_v3 = vsel %vm7351_vm1, %v5888_v57, %v3314_v29  ;;  %v8180_v13 = vsel %vm7351_vm1, %v3316_v44, %v3317_v45 }
 0x123   : > { %v3909_v6 = vrot.slane %v3907_v37, 4  ;;  %v3912_v63 = vrot.slane %v3910_v28, 5  ;;  %v3918_v2 = vrot.slane %v3916_v4, 5  ;;  %v3922_v8 = vrot.slane %v3920_v7, 4  ;;  %v8220_v4 = vld [vmem:[#allocation3 + $0x48] sm:$0xf] }
 0x124   : > { %6442 = vmatprep.mubr.msk.bf16.mxu0 %vm1270_vm14, %v9737_v34  ;;  %v3926_v11 = vshll.u32 %v3844_v0, 16  ;;  %v8182_v51 = vrot.slane %v2686_v48, 4  ;;  %v8184_v30 = vrot.slane %v2696_v60, 4  ;;  %v8186_v5 = vrot.slane %v2699_v41, 5 }
 0x125   : > { %v3321_v29 = vrot.slane %v7646_v10, 5  ;;  %v5905_v36 = vcombine.low %v8176_v3, %v8180_v13  ;;  %v3913_v57 = vor.u32 %v3912_v63, %v3909_v6  ;;  %v3923_v61 = vor.u32 %v3922_v8, %v3918_v2 }
 0x126   : > { %v5889_v52 = vrot.slane %v3259_v23, 9  ;;  %6401 = vmatmul.mubr.msk.bf16.gmra.mxu1 %vm1270_vm14, %v8011_v18  ;;  %v3928_v14 = vrot.slane %v3926_v11, 5  ;;  %v3324_v60 = vrot.slane %v7673_v9, 5  ;;  %v3931_v19 = vshrl.u32 %v3814_v26, 16  ;;  %v3260_v9 = vld [vmem:[#allocation3 + $0x30] sm:$0xe] }
 0x127   : > { %v3323_v44 = vrot.slane %v3321_v29, 4  ;;  %6404 = vmatprep.mubr.msk.bf16.mxu1 %vm1270_vm14, %v8052_v55  ;;  %v3914_v10 = vrot.slane %v3913_v57, 4  ;;  %v3924_v24 = vrot.slane %v3923_v61, 4  ;;  %v3934_v45 = vshll.u32 %v3814_v26, 16  ;;  %v8227_v23 = vld [vmem:[#allocation3 + $0x4c] sm:$0xf] }
 0x128   : > { %v3940_v48 = vshll.u32 %v8189_v56, 16  ;;  %v2692_v41 = vsel %vm6978_vm13, %v8182_v51, %v8137_v32  ;;  %v3933_v0 = vrot.slane %v3931_v19, 4  ;;  %v3944_v18 = vshrl.u32 %v8189_v56, 16 }
 0x129   : > { %v3950_v37 = vshll.u32 %v8193_v40, 16  ;;  %v2702_v55 = vsel %vm6978_vm13, %v8184_v30, %v8186_v5  ;;  %v8214_v28 = vsel %vm7351_vm1, %v5889_v52, %v3321_v29  ;;  %v8218_v32 = vsel %vm7351_vm1, %v3323_v44, %v3324_v60  ;;  %v8231_v5 = vld [vmem:[#allocation3 + $0x50] sm:$0x1] }
 0x12a   : > { %6443 = vmatmul.mubr.msk.bf16.gmra.mxu0 %vm1270_vm14, %v5870_v1  ;;  %v3936_v15 = vrot.slane %v3934_v45, 5  ;;  %v3919_v1 = vsel %vm6978_vm13, %v3914_v10, %v3918_v2  ;;  %v3929_v7 = vsel %vm6978_vm13, %v3924_v24, %v3928_v14  ;;  %v3942_v34 = vrot.slane %v3940_v48, 5 }
 0x12b   : > { %6482 = vmatprep.mubr.msk.bf16.mxu0 %vm1270_vm14, %v5938_v53  ;;  %v3946_v6 = vrot.slane %v3944_v18, 4  ;;  %v3952_v8 = vrot.slane %v3950_v37, 5  ;;  %v5890_v11 = vrot.slane %v3260_v9, 9  ;;  %v3328_v26 = vrot.slane %v7680_v62, 5  ;;  %v8256_v37 = vld [vmem:[#allocation3 + $0x58] sm:$0xf] }
 0x12c   : > { %v3937_v63 = vor.u32 %v3936_v15, %v3933_v0  ;;  %v3331_v30 = vrot.slane %v7711_v27, 5  ;;  %v3955_v53 = vshrl.u32 %v8220_v4, 16  ;;  %v3958_v2 = vshll.u32 %v8220_v4, 16  ;;  %v3261_v27 = vld [vmem:[#allocation3 + $0x3c] sm:$0xe] }
 0x12d   : > { %v3947_v51 = vor.u32 %v3946_v6, %v3942_v34  ;;  %v5940_v29 = vcombine.low %v3919_v1, %v3929_v7  ;;  %v3330_v61 = vrot.slane %v3328_v26, 4  ;;  %v3964_v52 = vshll.u32 %v8227_v23, 16 }
 0x12e   : > { %v3938_v57 = vrot.slane %v3937_v63, 4  ;;  %6405 = vmatmul.mubr.msk.bf16.gmra.mxu1 %vm1270_vm14, %v8093_v16  ;;  %v3957_v44 = vrot.slane %v3955_v53, 4  ;;  %v3960_v62 = vrot.slane %v3958_v2, 5  ;;  %v3968_v60 = vshrl.u32 %v8227_v23, 16  ;;  %v8248_v16 = vld [vmem:[#allocation3 + $0x54] sm:$0xf] }
 0x12f   : > { %v3948_v14 = vrot.slane %v3947_v51, 4  ;;  %6408 = vmatprep.mubr.msk.bf16.mxu1 %vm1270_vm14, %v8101_v12  ;;  %v8245_v10 = vsel %vm7351_vm1, %v5890_v11, %v3328_v26  ;;  %v3966_v24 = vrot.slane %v3964_v52, 5  ;;  %v3974_v45 = vshll.u32 %v8231_v5, 16  ;;  %v8277_v52 = vld [vmem:[#allocation3 + $0x60] sm:$0xf] }
 0x130   : > { %v3943_v19 = vsel %vm6978_vm13, %v3938_v57, %v3942_v34  ;;  %v8254_v0 = vsel %vm7351_vm1, %v3330_v61, %v3331_v30  ;;  %v3961_v12 = vor.u32 %v3960_v62, %v3957_v44  ;;  %v3970_v18 = vrot.slane %v3968_v60, 4 }
 0x131   : > { %v3953_v48 = vsel %vm6978_vm13, %v3948_v14, %v3952_v8  ;;  %v5838_v9 = vcombine.low %v2692_v41, %v2702_v55  ;;  %v5906_v15 = vcombine.low %v8214_v28, %v8218_v32  ;;  %v3976_v1 = vrot.slane %v3974_v45, 5  ;;  %v8265_v8 = vld [vmem:[#allocation3 + $0x5c] sm:$0x1] }
 0x132   : > { %6483 = vmatmul.mubr.msk.bf16.vlgmr.msra.gmra.mxu0 %vm1270_vm14, %v8172_v39  ;;  %v5891_v7 = vrot.slane %v3261_v27, 9  ;;  %v3962_v34 = vrot.slane %v3961_v12, 4  ;;  %v3971_v6 = vor.u32 %v3970_v18, %v3966_v24  ;;  %v3335_v63 = vrot.slane %v7709_v43, 5  ;;  %v3262_v43 = vld [vmem:[#allocation3 + $0x48] sm:$0xe] }
 0x133   : > { %6549 = vmatpush3.bf16.msra.mxu0 %v8156_v59  ;;  %6486 = vmatprep.mubr.msk.bf16.mxu0 %vm1270_vm14, %v5940_v29  ;;  %v3979_v41 = vshrl.u32 %v8248_v16, 16  ;;  %v5941_v55 = vcombine.low %v3943_v19, %v3953_v48  ;;  %v5907_v39 = vcombine.low %v8245_v10, %v8254_v0  ;;  %v3982_v11 = vshll.u32 %v8248_v16, 16  ;;  %v8286_v27 = vld [vmem:[#allocation3 + $0x64] sm:$0xf] }
 0x134   : > { %v3988_v26 = vshll.u32 %v8256_v37, 16  ;;  %v3967_v59 = vsel %vm6978_vm13, %v3962_v34, %v3966_v24  ;;  %v3972_v51 = vrot.slane %v3971_v6, 4  ;;  %v3992_v53 = vshrl.u32 %v8256_v37, 16  ;;  %v8301_v34 = vpop.f32.mrf.mxu0 }
 0x135   : > { %v3981_v30 = vrot.slane %v3979_v41, 4  ;;  %v3338_v2 = vrot.slane %v7734_v33, 5  ;;  %v3984_v29 = vrot.slane %v3982_v11, 5  ;;  %v3998_v61 = vshll.u32 %v8265_v8, 16  ;;  %v3263_v41 = vld [vmem:[#allocation3 + $0x54] sm:$0xe] }
 0x136   : > { %v3990_v57 = vrot.slane %v3988_v26, 5  ;;  %6409 = vmatmul.mubr.msk.bf16.gmra.mxu1 %vm1270_vm14, %v5838_v9  ;;  %v3977_v14 = vsel %vm6978_vm13, %v3972_v51, %v3976_v1  ;;  %v8284_v44 = vsel %vm7351_vm1, %v5891_v7, %v3335_v63  ;;  %v3337_v62 = vrot.slane %v3335_v63, 4  ;;  %v8296_v7 = vld [vmem:[#allocation3 + $0x68] sm:$0x1]  ;;  %v8310_v51 = vld [vmem:[#allocation3 + $0x6c] sm:$0xf] }
 0x137   : > { %v3994_v60 = vrot.slane %v3992_v53, 4  ;;  %6448 = vmatprep.mubr.msk.bf16.mxu1 %vm1270_vm14, %v5904_v42  ;;  %v5942_v33 = vcombine.low %v3967_v59, %v3977_v14  ;;  %v3985_v19 = vor.u32 %v3984_v29, %v3981_v30  ;;  %v4000_v24 = vrot.slane %v3998_v61, 5  ;;  %9738 = vst [vmem:[#allocation11_spill] sm:$0xff] %v8310_v51  ;;  %v8323_v29 = vld [vmem:[#allocation3 + $0x70] sm:$0xf] }
 0x138   : > { %v5892_v45 = vrot.slane %v3262_v43, 9  ;;  %v3342_v12 = vrot.slane %v7736_v17, 5  ;;  %v3345_v18 = vrot.slane %v7753_v21, 5  ;;  %v4003_v9 = vshrl.u32 %v8277_v52, 16 }
 0x139   : > { %v3995_v48 = vor.u32 %v3994_v60, %v3990_v57  ;;  %v3986_v1 = vrot.slane %v3985_v19, 4  ;;  %v4006_v50 = vshll.u32 %v8277_v52, 16  ;;  %v4012_v22 = vshll.u32 %v8286_v27, 16  ;;  %v8325_v60 = vpop.f32.mrf.mxu0 }
 0x13a   : > { %6487 = vmatmul.mubr.msk.bf16.gmra.mxu0 %vm1270_vm14, %v5941_v55  ;;  %v4016_v42 = vshrl.u32 %v8286_v27, 16  ;;  %v8306_v17 = vsel %vm7351_vm1, %v3337_v62, %v3338_v2  ;;  %v3344_v6 = vrot.slane %v3342_v12, 4  ;;  %v4005_v63 = vrot.slane %v4003_v9, 4  ;;  %v3849_v9 = vld [vmem:[#allocation3 + $0x74] sm:$0x1] }
 0x13b   : > { %6490 = vmatprep.mubr.msk.bf16.mxu0 %vm1270_vm14, %v5942_v33  ;;  %v3996_v21 = vrot.slane %v3995_v48, 4  ;;  %v3991_v55 = vsel %vm6978_vm13, %v3986_v1, %v3990_v57  ;;  %v4008_v11 = vrot.slane %v4006_v50, 5  ;;  %v4014_v26 = vrot.slane %v4012_v22, 5 }
 0x13c   : > { %v4018_v59 = vrot.slane %v4016_v42, 4  ;;  %v8316_v53 = vsel %vm7351_vm1, %v5892_v45, %v3342_v12  ;;  %v8320_v43 = vsel %vm7351_vm1, %v3344_v6, %v3345_v18  ;;  %v4022_v2 = vshll.u32 %v8296_v7, 16  ;;  %v8349_v42 = vpop.f32.mrf.mxu0 }
 0x13d   : > { %v4001_v30 = vsel %vm6978_vm13, %v3996_v21, %v4000_v24  ;;  %v4009_v61 = vor.u32 %v4008_v11, %v4005_v63  ;;  %v5893_v62 = vrot.slane %v3263_v41, 9  ;;  %v3349_v19 = vrot.slane %v7767_v38, 5  ;;  %v9739_v24 = vld [vmem:[#allocation14_spill] sm:$0xff]  ;;  %v8353_v63 = vld [vmem:[#allocation3 + $0x78] sm:$0xf] }
 0x13e   : > { %v5943_v57 = vcombine.low %v3991_v55, %v4001_v30  ;;  %v4019_v14 = vor.u32 %v4018_v59, %v4014_v26  ;;  %6449 = vmatmul.mubr.msk.bf16.vlgmr.msra.gmra.mxu1 %vm1270_vm14, %v5905_v36  ;;  %v4024_v33 = vrot.slane %v4022_v2, 5  ;;  %v3352_v45 = vrot.slane %v9739_v24, 5  ;;  %9740 = vst [vmem:[#allocation7_spill] sm:$0xff] %v8353_v63  ;;  %v8355_v41 = vld [vmem:[#allocation3 + $0x7c] sm:$0xf] }
 0x13f   : > { %v4027_v48 = vshrl.u32 %v8310_v51, 16  ;;  %6515 = vmatpush3.bf16.msra.mxu1 %v8108_v25  ;;  %6452 = vmatprep.mubr.msk.bf16.mxu1 %vm1270_vm14, %v5906_v15  ;;  %v4010_v12 = vrot.slane %v4009_v61, 4  ;;  %v4030_v3 = vshll.u32 %v8310_v51, 16  ;;  %v4036_v13 = vshll.u32 %v8323_v29, 16  ;;  %v3264_v25 = vld [vmem:[#allocation3 + $0x60] sm:$0xe] }
 0x140   : > { %v4020_v18 = vrot.slane %v4019_v14, 4  ;;  %v5908_v38 = vcombine.low %v8284_v44, %v8306_v17  ;;  %v3351_v36 = vrot.slane %v3349_v19, 4  ;;  %v4040_v50 = vshrl.u32 %v8323_v29, 16  ;;  %9741 = vst [vmem:[#allocation8_spill] sm:$0xff] %v8355_v41  ;;  %v9742_v14 = vld [vmem:[#allocation15_spill] sm:$0xff] }
 0x141   : > { %v4029_v1 = vrot.slane %v4027_v48, 4  ;;  %v4015_v28 = vsel %vm6978_vm13, %v4010_v12, %v4014_v26  ;;  %v4032_v15 = vrot.slane %v4030_v3, 5  ;;  %v4038_v22 = vrot.slane %v4036_v13, 5  ;;  %v3850_v48 = vld [vmem:[#allocation3 + $0x80] sm:$0x1] }
 0x142   : > { %6491 = vmatmul.mubr.msk.bf16.gmra.mxu0 %vm1270_vm14, %v5943_v57  ;;  %v4025_v32 = vsel %vm6978_vm13, %v4020_v18, %v4024_v33  ;;  %v5909_v44 = vcombine.low %v8316_v53, %v8320_v43  ;;  %v4042_v21 = vrot.slane %v4040_v50, 4  ;;  %v4046_v6 = vshll.u32 %v3849_v9, 16  ;;  %v6677_v57 = vld [vmem:[#allocation3 + $0x64] sm:$0xf] }
 0x143   : > { %v5944_v17 = vcombine.low %v4015_v28, %v4025_v32  ;;  %v8359_v55 = vsel %vm7351_vm1, %v5893_v62, %v3349_v19  ;;  %v8363_v11 = vsel %vm7351_vm1, %v3351_v36, %v3352_v45  ;;  %v4033_v26 = vor.u32 %v4032_v15, %v4029_v1  ;;  %v8370_v45 = vpop.f32.mrf.mxu0  ;;  %v3265_v36 = vld [vmem:[#allocation3 + $0x6c] sm:$0xe]  ;;  %v8379_v1 = vpop.f32.mrf.mxu1 }
 0x144   : > { %v5894_v59 = vrot.slane %v3264_v25, 9  ;;  %v4043_v30 = vor.u32 %v4042_v21, %v4038_v22  ;;  %v4048_v2 = vrot.slane %v4046_v6, 5  ;;  %v3356_v61 = vrot.slane %v6677_v57, 5  ;;  %9743 = vst [vmem:[#allocation10_spill] sm:$0xff] %v8379_v1  ;;  %v8392_v21 = vld [vmem:[#allocation3 + $0x88] sm:$0xf] }
 0x145   : > { %6494 = vmatprep.mubr.msk.bf16.mxu0 %vm1270_vm14, %v5944_v17  ;;  %v3359_v33 = vrot.slane %v9742_v14, 5  ;;  %v4034_v24 = vrot.slane %v4033_v26, 4  ;;  %v4051_v12 = vshrl.u32 %v8353_v63, 16  ;;  %v4054_v62 = vshll.u32 %v8353_v63, 16  ;;  %v8390_v17 = vld [vmem:[#allocation3 + $0x84] sm:$0xf]  ;;  %v8401_v14 = vpop.f32.mrf.mxu1 }
 0x146   : > { %v4060_v19 = vshll.u32 %v8355_v41, 16  ;;  %6453 = vmatmul.mubr.msk.bf16.gmra.mxu1 %vm1270_vm14, %v5907_v39  ;;  %v5910_v18 = vcombine.low %v8359_v55, %v8363_v11  ;;  %v4044_v9 = vrot.slane %v4043_v30, 4  ;;  %v3358_v3 = vrot.slane %v3356_v61, 4  ;;  %9744 = vst [vmem:[#allocation9_spill] sm:$0xff] %v8390_v17  ;;  %9745 = vst [vmem:[#allocation12_spill] sm:$0xff] %v8392_v21  ;;  %v8398_v11 = vpop.f32.mrf.mxu0  ;;  %v9746_v57 = vld [vmem:[#allocation16_spill] sm:$0xff] }
 0x147   : > { %v4064_v13 = vshrl.u32 %v8355_v41, 16  ;;  %6456 = vmatprep.mubr.msk.bf16.mxu1 %vm1270_vm14, %v5908_v38  ;;  %v4039_v50 = vsel %vm6978_vm13, %v4034_v24, %v4038_v22  ;;  %v4053_v25 = vrot.slane %v4051_v12, 4  ;;  %v4056_v28 = vrot.slane %v4054_v62, 5  ;;  %9747 = vst [vmem:[#allocation13_spill] sm:$0xff] %v8401_v14  ;;  %v8485_v14 = vld [vmem:[#allocation3 + $0xa8] sm:$0xf] }
 0x148   : > { %v4062_v10 = vrot.slane %v4060_v19, 5  ;;  %v4049_v0 = vsel %vm6978_vm13, %v4044_v9, %v4048_v2  ;;  %v8388_v39 = vsel %vm7351_vm1, %v5894_v59, %v3356_v61  ;;  %v4070_v15 = vshll.u32 %v3850_v48, 16  ;;  %v6678_v2 = vld [vmem:[#allocation3 + $0x70] sm:$0xf]  ;;  %v3851_v48 = vld [vmem:[#allocation3 + $0x8c] sm:$0x1] }
 0x149   : > { %v4066_v32 = vrot.slane %v4064_v13, 4  ;;  %v5945_v38 = vcombine.low %v4039_v50, %v4049_v0  ;;  %v8396_v22 = vsel %vm7351_vm1, %v3358_v3, %v3359_v33  ;;  %v4057_v6 = vor.u32 %v4056_v28, %v4053_v25  ;;  %v3266_v0 = vld [vmem:[#allocation3 + $0x78] sm:$0xe]  ;;  %9755 = vst [vmem:[#allocation21_spill] sm:$0xff] %v8485_v14  ;;  %v8491_v41 = vld [vmem:[#allocation3 + $0xb0] sm:$0x1] }
 0x14a   : > { %v5895_v55 = vrot.slane %v3265_v36, 9  ;;  %v4072_v30 = vrot.slane %v4070_v15, 5  ;;  %v3363_v59 = vrot.slane %v6678_v2, 5  ;;  %v3366_v61 = vrot.slane %v9746_v57, 5  ;;  %9757 = vst [vmem:[#allocation23_spill] sm:$0xff] %v8491_v41 }
 0x14b   : > { %v4067_v26 = vor.u32 %v4066_v32, %v4062_v10  ;;  %6495 = vmatmul.mubr.msk.bf16.gmra.mxu0 %vm1270_vm14, %v5945_v38  ;;  %v4058_v24 = vrot.slane %v4057_v6, 4  ;;  %v4075_v12 = vshrl.u32 %v8390_v17, 16  ;;  %v4078_v33 = vshll.u32 %v8390_v17, 16  ;;  %v8414_v32 = vpop.f32.mrf.mxu0 }
 0x14c   : > { %v4084_v62 = vshll.u32 %v8392_v21, 16  ;;  %v8409_v9 = vsel %vm7351_vm1, %v5895_v55, %v3363_v59  ;;  %v3365_v3 = vrot.slane %v3363_v59, 4  ;;  %v4088_v13 = vshrl.u32 %v8392_v21, 16  ;;  %v8432_v59 = vld [vmem:[#allocation3 + $0x94] sm:$0xf] }
 0x14d   : > { %v4068_v19 = vrot.slane %v4067_v26, 4  ;;  %v4063_v36 = vsel %vm6978_vm13, %v4058_v24, %v4062_v10  ;;  %v4077_v50 = vrot.slane %v4075_v12, 4  ;;  %v4080_v25 = vrot.slane %v4078_v33, 5  ;;  %v8424_v10 = vpop.f32.mrf.mxu1  ;;  %v8426_v26 = vld [vmem:[#allocation3 + $0x90] sm:$0xf] }
 0x14e   : > { %v4086_v28 = vrot.slane %v4084_v62, 5  ;;  %6457 = vmatmul.mubr.msk.bf16.gmra.mxu1 %vm1270_vm14, %v5909_v44  ;;  %v3367_v38 = vsel %vm7351_vm1, %v3365_v3, %v3366_v61  ;;  %v4090_v6 = vrot.slane %v4088_v13, 4  ;;  %v4094_v55 = vshll.u32 %v3851_v48, 16  ;;  %9748 = vst [vmem:[#allocation14_spill] sm:$0xff] %v8424_v10  ;;  %v6679_v24 = vld [vmem:[#allocation3 + $0x7c] sm:$0xf] }
 0x14f   : > { %v4073_v15 = vsel %vm6978_vm13, %v4068_v19, %v4072_v30  ;;  %6460 = vmatprep.mubr.msk.bf16.mxu1 %vm1270_vm14, %v5910_v18  ;;  %v5911_v2 = vcombine.low %v8388_v39, %v8396_v22  ;;  %v5912_v43 = vcombine.low %v8409_v9, %v3367_v38  ;;  %v4081_v44 = vor.u32 %v4080_v25, %v4077_v50  ;;  %v6680_v33 = vld [vmem:[#allocation3 + $0x80] sm:$0x1]  ;;  %v8435_v18 = vld [vmem:[#allocation3 + $0x98] sm:$0x1]  ;;  %v8439_v19 = vpop.f32.mrf.mxu0 }
 0x150   : > { %v5946_v53 = vcombine.low %v4063_v36, %v4073_v15  ;;  %v4091_v30 = vor.u32 %v4090_v6, %v4086_v28  ;;  %v4096_v57 = vrot.slane %v4094_v55, 5  ;;  %v5896_v61 = vrot.slane %v3266_v0, 9  ;;  %v8445_v36 = vpop.f32.mrf.mxu1  ;;  %v3267_v6 = vld [vmem:[#allocation3 + $0x84] sm:$0xe] }
 0x151   : > { %v3370_v48 = vrot.slane %v6679_v24, 5  ;;  %v4082_v12 = vrot.slane %v4081_v44, 4  ;;  %v3373_v62 = vrot.slane %v6680_v33, 5  ;;  %v4099_v39 = vshrl.u32 %v8426_v26, 16  ;;  %9749 = vst [vmem:[#allocation15_spill] sm:$0xff] %v8445_v36 }
 0x152   : > { %6498 = vmatprep.mubr.msk.bf16.mxu0 %vm1270_vm14, %v5946_v53  ;;  %v4102_v22 = vshll.u32 %v8426_v26, 16  ;;  %v4092_v9 = vrot.slane %v4091_v30, 4  ;;  %v4108_v50 = vshll.u32 %v8432_v59, 16  ;;  %v4112_v38 = vshrl.u32 %v8432_v59, 16  ;;  %v8459_v33 = vld [vmem:[#allocation3 + $0xa0] sm:$0xf]  ;;  %v8464_v36 = vpop.f32.mrf.mxu1 }
 0x153   : > { %v8443_v3 = vsel %vm7351_vm1, %v5896_v61, %v3370_v48  ;;  %v3372_v13 = vrot.slane %v3370_v48, 4  ;;  %v4087_v25 = vsel %vm6978_vm13, %v4082_v12, %v4086_v28  ;;  %v4101_v0 = vrot.slane %v4099_v39, 4  ;;  %v8456_v61 = vld [vmem:[#allocation3 + $0x9c] sm:$0xf]  ;;  %9751 = vst [vmem:[#allocation17_spill] sm:$0xff] %v8459_v33  ;;  %v8461_v39 = vpop.f32.mrf.mxu0  ;;  %9752 = vst [vmem:[#allocation18_spill] sm:$0xff] %v8464_v36 }
 0x154   : > { %v4104_v15 = vrot.slane %v4102_v22, 5  ;;  %v4097_v55 = vsel %vm6978_vm13, %v4092_v9, %v4096_v57  ;;  %v4110_v44 = vrot.slane %v4108_v50, 5  ;;  %v4118_v30 = vshll.u32 %v8435_v18, 16  ;;  %9750 = vst [vmem:[#allocation16_spill] sm:$0xff] %v8456_v61  ;;  %v6681_v9 = vld [vmem:[#allocation3 + $0x88] sm:$0xf] }
 0x155   : > { %v3374_v53 = vsel %vm7351_vm1, %v3372_v13, %v3373_v62  ;;  %v5947_v24 = vcombine.low %v4087_v25, %v4097_v55  ;;  %v4114_v12 = vrot.slane %v4112_v38, 4  ;;  %v5897_v22 = vrot.slane %v3267_v6, 9  ;;  %v6682_v13 = vld [vmem:[#allocation3 + $0x8c] sm:$0x1] }
 0x156   : > { %v5913_v48 = vcombine.low %v8443_v3, %v3374_v53  ;;  %v4105_v28 = vor.u32 %v4104_v15, %v4101_v0  ;;  %6461 = vmatmul.mubr.msk.bf16.gmra.mxu1 %vm1270_vm14, %v5911_v2  ;;  %v4120_v57 = vrot.slane %v4118_v30, 5  ;;  %v3377_v62 = vrot.slane %v6681_v9, 5  ;;  %v8468_v0 = vld [vmem:[#allocation3 + $0xa4] sm:$0x1]  ;;  %v8478_v9 = vpop.f32.mrf.mxu0 }
 0x157   : > { %v3380_v50 = vrot.slane %v6682_v13, 5  ;;  %6464 = vmatprep.mubr.msk.bf16.mxu1 %vm1270_vm14, %v5912_v43  ;;  %6499 = vmatmul.mubr.msk.bf16.gmra.mxu0 %vm1270_vm14, %v5947_v24  ;;  %v4115_v25 = vor.u32 %v4114_v12, %v4110_v44  ;;  %9753 = vst [vmem:[#allocation19_spill] sm:$0xff] %v8468_v0  ;;  %v4123_v15 = vshrl.u32 %v8456_v61, 16  ;;  %v4126_v2 = vshll.u32 %v8456_v61, 16  ;;  %v3268_v12 = vld [vmem:[#allocation3 + $0x90] sm:$0xe] }
 0x158   : > { %v4106_v3 = vrot.slane %v4105_v28, 4  ;;  %v3378_v38 = vsel %vm7351_vm1, %v5897_v22, %v3377_v62  ;;  %v3379_v6 = vrot.slane %v3377_v62, 4  ;;  %v4132_v55 = vshll.u32 %v8459_v33, 16  ;;  %v8483_v62 = vpop.f32.mrf.mxu1  ;;  %v8494_v61 = vpop.f32.mrf.mxu0 }
 0x159   : > { %v4136_v53 = vshrl.u32 %v8459_v33, 16  ;;  %v4116_v30 = vrot.slane %v4115_v25, 4  ;;  %v4125_v24 = vrot.slane %v4123_v15, 4  ;;  %v4128_v28 = vrot.slane %v4126_v2, 5  ;;  %9754 = vst [vmem:[#allocation20_spill] sm:$0xff] %v8483_v62 }
 0x15a   : > { %v4111_v43 = vsel %vm6978_vm13, %v4106_v3, %v4110_v44  ;;  %v3381_v13 = vsel %vm7351_vm1, %v3379_v6, %v3380_v50  ;;  %v4134_v36 = vrot.slane %v4132_v55, 5  ;;  %v4142_v22 = vshll.u32 %v8468_v0, 16  ;;  %v8489_v15 = vld [vmem:[#allocation3 + $0xac] sm:$0xf]  ;;  %v6683_v6 = vld [vmem:[#allocation3 + $0x94] sm:$0xf] }
 0x15b   : > { %v4138_v10 = vrot.slane %v4136_v53, 4  ;;  %v4121_v44 = vsel %vm6978_vm13, %v4116_v30, %v4120_v57  ;;  %v5914_v3 = vcombine.low %v3378_v38, %v3381_v13  ;;  %v4129_v25 = vor.u32 %v4128_v28, %v4125_v24  ;;  %9756 = vst [vmem:[#allocation22_spill] sm:$0xff] %v8489_v15  ;;  %v6684_v53 = vld [vmem:[#allocation3 + $0x98] sm:$0x1]  ;;  %v8498_v38 = vpop.f32.mrf.mxu1  ;;  %v3269_v24 = vld [vmem:[#allocation3 + $0x9c] sm:$0xe] }
 0x15c   : > { %v5948_v2 = vcombine.low %v4111_v43, %v4121_v44  ;;  %v4144_v17 = vrot.slane %v4142_v22, 5  ;;  %v5898_v21 = vrot.slane %v3268_v12, 9  ;;  %v3384_v55 = vrot.slane %v6683_v6, 5  ;;  %9758 = vst [vmem:[#allocation24_spill] sm:$0xff] %v8498_v38 }
 0x15d   : > { %v4139_v1 = vor.u32 %v4138_v10, %v4134_v36  ;;  %v4130_v50 = vrot.slane %v4129_v25, 4  ;;  %v3387_v63 = vrot.slane %v6684_v53, 5  ;;  %v4147_v62 = vshrl.u32 %v8485_v14, 16 }
 0x15e   : > { %6465 = vmatmul.mubr.msk.bf16.gmra.mxu1 %vm1270_vm14, %v5913_v48  ;;  %6502 = vmatprep.mubr.msk.bf16.mxu0 %vm1270_vm14, %v5948_v2  ;;  %v4150_v10 = vshll.u32 %v8485_v14, 16  ;;  %v4156_v43 = vshll.u32 %v8489_v15, 16  ;;  %v4160_v30 = vshrl.u32 %v8489_v15, 16  ;;  %v3385_v48 = vsel %vm7351_vm1, %v5898_v21, %v3384_v55  ;;  %v8510_v2 = vld [vmem:[#allocation3 + $0xb4] sm:$0xf] }
 0x15f   : > { %v4140_v57 = vrot.slane %v4139_v1, 4  ;;  %6468 = vmatprep.mubr.msk.bf16.mxu1 %vm1270_vm14, %v5914_v3  ;;  %v4135_v28 = vsel %vm6978_vm13, %v4130_v50, %v4134_v36  ;;  %v3386_v12 = vrot.slane %v3384_v55, 4  ;;  %v4149_v13 = vrot.slane %v4147_v62, 4  ;;  %9759 = vst [vmem:[#allocation25_spill] sm:$0xff] %v8510_v2  ;;  %v8515_v50 = vpop.f32.mrf.mxu0  ;;  %v8517_v55 = vpop.f32.mrf.mxu1 }
 0x160   : > { %v4152_v22 = vrot.slane %v4150_v10, 5  ;;  %v4158_v44 = vrot.slane %v4156_v43, 5  ;;  %v4162_v25 = vrot.slane %v4160_v30, 4  ;;  %v4166_v53 = vshll.u32 %v8491_v41, 16  ;;  %9760 = vst [vmem:[#allocation26_spill] sm:$0xff] %v8515_v50  ;;  %9761 = vst [vmem:[#allocation27_spill] sm:$0xff] %v8517_v55 }
 0x161   : > { %v4145_v1 = vsel %vm6978_vm13, %v4140_v57, %v4144_v17  ;;  %v3388_v3 = vsel %vm7351_vm1, %v3386_v12, %v3387_v63  ;;  %v5899_v36 = vrot.slane %v3269_v24, 9  ;;  %v6685_v17 = vld [vmem:[#allocation3 + $0xa0] sm:$0xf]  ;;  %v8519_v10 = vld [vmem:[#allocation3 + $0xb8] sm:$0xf]  ;;  %v4171_v24 = vshrl.u32 %v8510_v2, 16 }
 0x162   : > { %v5949_v6 = vcombine.low %v4135_v28, %v4145_v1  ;;  %v5915_v21 = vcombine.low %v3385_v48, %v3388_v3  ;;  %v4153_v62 = vor.u32 %v4152_v22, %v4149_v13  ;;  %v4163_v38 = vor.u32 %v4162_v25, %v4158_v44  ;;  %9762 = vst [vmem:[#allocation28_spill] sm:$0xff] %v8519_v10  ;;  %v6686_v30 = vld [vmem:[#allocation3 + $0xa4] sm:$0x1]  ;;  %v8522_v63 = vld [vmem:[#allocation3 + $0xbc] sm:$0x1] }
 0x163   : > { %v3391_v57 = vrot.slane %v6685_v17, 5  ;;  %v4168_v43 = vrot.slane %v4166_v53, 5  ;;  %v3394_v28 = vrot.slane %v6686_v30, 5  ;;  %9763 = vst [vmem:[#allocation29_spill] sm:$0xff] %v8522_v63  ;;  %v4174_v12 = vshll.u32 %v8510_v2, 16  ;;  %v8530_v30 = vpop.f32.mrf.mxu0 }
 0x164   : > { %6503 = vmatmul.mubr.msk.bf16.gmra.mxu0 %vm1270_vm14, %v5949_v6  ;;  %v4154_v48 = vrot.slane %v4153_v62, 4  ;;  %v4164_v1 = vrot.slane %v4163_v38, 4  ;;  %v4173_v25 = vrot.slane %v4171_v24, 4  ;;  %v4180_v17 = vshll.u32 %v8519_v10, 16  ;;  %v3270_v53 = vld [vmem:[#allocation3 + $0xa8] sm:$0xe] }
 0x165   : > { %v3392_v13 = vsel %vm7351_vm1, %v5899_v36, %v3391_v57  ;;  %v3393_v22 = vrot.slane %v3391_v57, 4  ;;  %v4176_v3 = vrot.slane %v4174_v12, 5  ;;  %v4184_v6 = vshrl.u32 %v8519_v10, 16  ;;  %9764 = vst [vmem:[#allocation30_spill] sm:$0xff] %v8530_v30  ;;  %v8540_v57 = vpop.f32.mrf.mxu1  ;;  %v8542_v24 = vld [vmem:[#allocation3 + $0xc0] sm:$0xf] }
 0x166   : > { %6469 = vmatmul.mubr.msk.bf16.gmra.mxu1 %vm1270_vm14, %v5915_v21  ;;  %v4159_v55 = vsel %vm6978_vm13, %v4154_v48, %v4158_v44  ;;  %v4169_v38 = vsel %vm6978_vm13, %v4164_v1, %v4168_v43  ;;  %v4190_v62 = vshll.u32 %v8522_v63, 16  ;;  %9765 = vst [vmem:[#allocation31_spill] sm:$0xff] %v8540_v57  ;;  %9766 = vst [vmem:[#allocation32_spill] sm:$0xff] %v8542_v24  ;;  %v4182_v14 = vrot.slane %v4180_v17, 5  ;;  %v8544_v21 = vld [vmem:[#allocation3 + $0xc4] sm:$0xf] }
 0x167   : > { %v3395_v36 = vsel %vm7351_vm1, %v3393_v22, %v3394_v28  ;;  %v5950_v12 = vcombine.low %v4159_v55, %v4169_v38  ;;  %v4177_v10 = vor.u32 %v4176_v3, %v4173_v25  ;;  %9767 = vst [vmem:[#allocation33_spill] sm:$0xff] %v8544_v21  ;;  %v4186_v41 = vrot.slane %v4184_v6, 4  ;;  %v6687_v28 = vld [vmem:[#allocation3 + $0xac] sm:$0xf]  ;;  %v6688_v22 = vld [vmem:[#allocation3 + $0xb0] sm:$0x1]  ;;  %v8551_v3 = vpop.f32.mrf.mxu1 }
 0x168   : > { %v5916_v2 = vcombine.low %v3392_v13, %v3395_v36  ;;  %v4192_v44 = vrot.slane %v4190_v62, 5  ;;  %v5900_v48 = vrot.slane %v3270_v53, 9  ;;  %v3398_v1 = vrot.slane %v6687_v28, 5  ;;  %v8549_v55 = vpop.f32.mrf.mxu0  ;;  %v3271_v13 = vld [vmem:[#allocation3 + $0xb4] sm:$0xe]  ;;  %9769 = vst [vmem:[#allocation35_spill] sm:$0xff] %v8551_v3 }
 0x169   : > { %6506 = vmatprep.mubr.msk.bf16.mxu0 %vm1270_vm14, %v5950_v12  ;;  %v4178_v43 = vrot.slane %v4177_v10, 4  ;;  %v3401_v57 = vrot.slane %v6688_v22, 5  ;;  %v4195_v15 = vshrl.u32 %v8542_v24, 16  ;;  %9768 = vst [vmem:[#allocation34_spill] sm:$0xff] %v8549_v55  ;;  %v4187_v25 = vor.u32 %v4186_v41, %v4182_v14  ;;  %v8553_v17 = vld [vmem:[#allocation3 + $0xc8] sm:$0x1] }
 0x16a   : > { %6472 = vmatprep.mubr.msk.bf16.mxu1 %vm1270_vm14, %v5916_v2  ;;  %9770 = vst [vmem:[#allocation36_spill] sm:$0xff] %v8553_v17  ;;  %v4198_v6 = vshll.u32 %v8542_v24, 16  ;;  %v4204_v53 = vshll.u32 %v8544_v21, 16  ;;  %v4208_v2 = vshrl.u32 %v8544_v21, 16  ;;  %v3399_v38 = vsel %vm7351_vm1, %v5900_v48, %v3398_v1  ;;  %v8562_v12 = vpop.f32.mrf.mxu0  ;;  %v6689_v30 = vld [vmem:[#allocation3 + $0xb8] sm:$0xf] }
 0x16b   : > { %v4183_v10 = vsel %vm6978_vm13, %v4178_v43, %v4182_v14  ;;  %v3400_v36 = vrot.slane %v3398_v1, 4  ;;  %v4197_v62 = vrot.slane %v4195_v15, 4  ;;  %9771 = vst [vmem:[#allocation37_spill] sm:$0xff] %v8562_v12  ;;  %v4188_v41 = vrot.slane %v4187_v25, 4  ;;  %v239_v14 = vld [vmem:[#allocation3 + $0xcc] sm:$0x1]  ;;  %v8571_v1 = vpop.f32.mrf.mxu1 }
 0x16c   : > { %v4200_v28 = vrot.slane %v4198_v6, 5  ;;  %v4206_v22 = vrot.slane %v4204_v53, 5  ;;  %v4210_v3 = vrot.slane %v4208_v2, 4  ;;  %v4214_v55 = vshll.u32 %v8553_v17, 16  ;;  %v8567_v43 = vpop.f32.mrf.mxu0  ;;  %9773 = vst [vmem:[#allocation39_spill] sm:$0xff] %v8571_v1 }
 0x16d   : > { %v3402_v24 = vsel %vm7351_vm1, %v3400_v36, %v3401_v57  ;;  %v5901_v21 = vrot.slane %v3271_v13, 9  ;;  %v3405_v50 = vrot.slane %v6689_v30, 5  ;;  %9772 = vst [vmem:[#allocation38_spill] sm:$0xff] %v8567_v43  ;;  %v4193_v15 = vsel %vm6978_vm13, %v4188_v41, %v4192_v44  ;;  %v295_v53 = vld [vmem:[#allocation3 + $0xd4] sm:$0x1] }
 0x16e   : > { %v5917_v48 = vcombine.low %v3399_v38, %v3402_v24  ;;  %v4201_v25 = vor.u32 %v4200_v28, %v4197_v62  ;;  %v4211_v6 = vor.u32 %v4210_v3, %v4206_v22  ;;  %v3272_v2 = vld [vmem:[#allocation3 + $0xc0] sm:$0xe]  ;;  %v5951_v12 = vcombine.low %v4183_v10, %v4193_v15  ;;  %v8575_v30 = vpop.f32.mrf.mxu0  ;;  %v6690_v44 = vld [vmem:[#allocation3 + $0xbc] sm:$0x1]  ;;  %v8580_v3 = vld [vmem:[#allocation3 + $0xd0] sm:$0xf]  ;;  %v8587_v10 = vpop.f32.mrf.mxu1 }
 0x16f   : > { %v4216_v57 = vrot.slane %v4214_v55, 5  ;;  %v3406_v13 = vsel %vm7351_vm1, %v5901_v21, %v3405_v50  ;;  %v3407_v36 = vrot.slane %v3405_v50, 4  ;;  %9774 = vst [vmem:[#allocation40_spill] sm:$0xff] %v8575_v30  ;;  %v3408_v24 = vrot.slane %v6690_v44, 5  ;;  %9775 = vst [vmem:[#allocation41_spill] sm:$0xff] %v8580_v3  ;;  %v9819_v31 = vld [vmem:[#allocation35_spill] sm:$0xff] }
 0x170   : > { %6473 = vmatmul.mubr.msk.bf16.gmra.mxu1 %vm1270_vm14, %v5917_v48  ;;  %v4202_v43 = vrot.slane %v4201_v25, 4  ;;  %v4212_v17 = vrot.slane %v4211_v6, 4  ;;  %v240_v38 = vsel %vm6871_vm5, 0, %v239_v14  ;;  %6507 = vmatmul.mubr.msk.bf16.gmra.mxu0 %vm1270_vm14, %v5951_v12  ;;  %v296_v21 = vsel %vm6879_vm7, 0, %v295_v53  ;;  %v8585_v55 = vpop.f32.mrf.mxu0  ;;  %9776 = vst [vmem:[#allocation42_spill] sm:$0xff] %v8587_v10 }
 0x171   : > { %241 = vst [vmem:[#allocation3 + $0xcc] sm:$0x1] %v240_v38  ;;  %v5902_v50 = vrot.slane %v3272_v2, 9  ;;  %v3409_v28 = vsel %vm7351_vm1, %v3407_v36, %v3408_v24  ;;  %297 = vst [vmem:[#allocation3 + $0xd4] sm:$0x1] %v296_v21  ;;  %v3412_v12 = vrot.slane %v8114_v47, 5 }
 0x172   : > { %v4207_v62 = vsel %vm6978_vm13, %v4202_v43, %v4206_v22  ;;  %v4217_v41 = vsel %vm6978_vm13, %v4212_v17, %v4216_v57  ;;  %v5918_v49 = vcombine.low %v3406_v13, %v3409_v28  ;;  %v4228_v15 = vshll.u32 %v8580_v3, 16  ;;  %v8598_v25 = vpop.f32.mrf.mxu0  ;;  %v6691_v2 = vld [vmem:[#allocation3 + $0x18] sm:$0xf]  ;;  %v6692_v57 = vld [vmem:[#allocation3 + $0x1c] sm:$0xf] }
 0x173   : > { %v5952_v14 = vcombine.low %v4207_v62, %v4217_v41  ;;  %v4232_v48 = vshrl.u32 %v8580_v3, 16  ;;  %v3413_v22 = vsel %vm7351_vm1, %v5902_v50, %v3412_v12  ;;  %v3414_v43 = vrot.slane %v3412_v12, 4  ;;  %v4796_v38 = vld [vmem:[#allocation3 + $0x18] sm:$0xe]  ;;  %v4797_v41 = vld [vmem:[#allocation3 + $0x24] sm:$0xe] }
 0x174   : > { %v3415_v17 = vrot.slane %v8149_v20, 5  ;;  %6476 = vmatprep.mubr.msk.bf16.mxu1 %vm1270_vm14, %v5918_v49  ;;  %v8605_v6 = vpop.f32.mrf.mxu0  ;;  %v5970_v13 = vcombine.low %v6691_v2, %v6692_v57  ;;  %v8611_v36 = vrot.slane %v4228_v15, 5  ;;  %v4846_v62 = vrot.slane %v6692_v57, 5  ;;  %v6693_v28 = vld [vmem:[#allocation3 + $0x28] sm:$0xf] }
 0x175   : > { %6510 = vmatprep.mubr.msk.bf16.mxu0 %vm1270_vm14, %v5952_v14  ;;  %v4234_v44 = vrot.slane %v4232_v48, 4  ;;  %v4853_v12 = vrot.slane %v6693_v28, 5  ;;  %v6002_v2 = vrot.slane %v4796_v38, 9  ;;  %v6003_v57 = vrot.slane %v4797_v41, 9  ;;  %v6697_v1 = vld [vmem:[#allocation3 + $0x30] sm:$0xf] }
 0x176   : > { %v8607_v47 = vpop.f32.mrf.mxu1  ;;  %v3416_v53 = vsel %vm7351_vm1, %v3414_v43, %v3415_v17  ;;  %v8613_v20 = vpop.f32.mrf.mxu0  ;;  %v4798_v43 = vld [vmem:[#allocation3 + $0x30] sm:$0xe]  ;;  %v6694_v17 = vld [vmem:[#allocation3 + $0x2c] sm:$0x1]  ;;  %v8639_v3 = vld [vmem:[#allocation3 + $0x3c] sm:$0xe] }
 0x177   : > { %9777 = vst [vmem:[#allocation43_spill] sm:$0xff] %v8607_v47  ;;  %v5919_v24 = vcombine.low %v3413_v22, %v3416_v53  ;;  %v4856_v53 = vrot.slane %v6694_v17, 5  ;;  %v4235_v46 = vor.u32 %v4234_v44, %v8611_v36  ;;  %v6696_v17 = vld [vmem:[#allocation3 + $0x24] sm:$0xf]  ;;  %v6004_v10 = vrot.slane %v4798_v43, 9 }
 0x178   : > { %v309_v21 = vld [vmem:[#allocation3 + $0xcc] sm:$0xf]  ;;  %v8615_v50 = vpop.f32.mrf.mxu1  ;;  %v313_v49 = vld [vmem:[#allocation3 + $0xd4] sm:$0x1]  ;;  %v8620_v15 = vpop.f32.mrf.mxu0  ;;  %v8645_v47 = vsel %vm7351_vm1, %v6002_v2, %v4846_v62 }
 0x179   : > { %9778 = vst [vmem:[#allocation44_spill] sm:$0xff] %v8615_v50  ;;  %v310_v14 = vsel %vm6902_vm8, 0, %v309_v21  ;;  %6477 = vmatmul.mubr.msk.bf16.gmra.mxu1 %vm1270_vm14, %v5919_v24  ;;  %v314_v48 = vsel %vm6871_vm5, 0, %v313_v49  ;;  %v6695_v50 = vld [vmem:[#allocation3 + $0x20] sm:$0x1]  ;;  %v4855_v49 = vrot.slane %v4853_v12, 4 }
 0x17a   : > { %311 = vst [vmem:[#allocation3 + $0xcc] sm:$0xf] %v310_v14  ;;  %v8624_v22 = vpop.f32.mrf.mxu1  ;;  %6516 = vmatprep.mubr.msk.bf16.mxu1 %vm1270_vm14, %v5970_v13  ;;  %315 = vst [vmem:[#allocation3 + $0xd4] sm:$0x1] %v314_v48  ;;  %v8628_v21 = vpop.f32.mrf.mxu0  ;;  %v4848_v14 = vrot.slane %v4846_v62, 4  ;;  %v4849_v54 = vrot.slane %v6695_v50, 5  ;;  %v5971_v48 = vcombine.low %v6696_v17, %v6693_v28  ;;  %v8649_v28 = vsel %vm7351_vm1, %v6003_v57, %v4853_v12 }
 0x17b   : > { %9779 = vst [vmem:[#allocation45_spill] sm:$0xff] %v8624_v22  ;;  %v4860_v22 = vrot.slane %v8145_v58, 5  ;;  %v6698_v50 = vld [vmem:[#allocation3 + $0x34] sm:$0xf]  ;;  %v8641_v58 = vrot.slane %v4235_v46, 4 }
 0x17c   : > { %v8630_v24 = vpop.f32.mrf.mxu1  ;;  %v8635_v44 = vpop.f32.mrf.mxu0  ;;  %v5972_v30 = vcombine.low %v6697_v1, %v6698_v50  ;;  %v8656_v41 = vsel %vm7351_vm1, %v4848_v14, %v4849_v54  ;;  %v8660_v1 = vsel %vm7351_vm1, %v4855_v49, %v4856_v53  ;;  %v6699_v62 = vld [vmem:[#allocation3 + $0x38] sm:$0x1]  ;;  %v4800_v53 = vld [vmem:[#allocation3 + $0x48] sm:$0xe] }
 0x17d   : > { %9780 = vst [vmem:[#allocation46_spill] sm:$0xff] %v8630_v24  ;;  %v4862_v50 = vrot.slane %v4860_v22, 4  ;;  %v4863_v2 = vrot.slane %v6699_v62, 5  ;;  %v8669_v57 = vsel %vm7351_vm1, %v6004_v10, %v4860_v22  ;;  %v6006_v33 = vrot.slane %v4800_v53, 9 }
 0x17e   : > { %v6314_v24 = vpop.f32.mrf.mxu1  ;;  %v8652_v17 = vpop.f32.mrf.mxu0 }
 0x17f   : > { %v1661_v43 = vadd.f32 %v6314_v24, %v8301_v34  ;;  %v6005_v24 = vrot.slane %v8639_v3, 9  ;;  %v8690_v0 = vsel %vm7351_vm1, %v4862_v50, %v4863_v2  ;;  %v5974_v50 = vcombine.low %v8220_v4, %v8227_v23 }
 0x180   : > { %v1652_v46 = vpop.f32.mrf.mxu1  ;;  %v8672_v14 = vpop.f32.mrf.mxu0  ;;  %v6019_v2 = vcombine.low %v8645_v47, %v8656_v41  ;;  %v4881_v47 = vrot.slane %v8256_v37, 5  ;;  %v4802_v41 = vld [vmem:[#allocation3 + $0x60] sm:$0xe] }
 0x181   : > { %v8662_v38 = vld [vmem:[#allocation3 + $0xcc] sm:$0xf]  ;;  %v2206_v12 = vadd.f32 %v8585_v55, %v1661_v43  ;;  %6517 = vmatmul.mubr.msk.bf16.vlgmr.msra.gmra.mxu1 %vm1270_vm14, %v5971_v48  ;;  %v1653_v34 = vadd.f32 %v1652_v46, %v8325_v60  ;;  %v8674_v54 = vld [vmem:[#allocation3 + $0xd4] sm:$0x1]  ;;  %v4867_v60 = vrot.slane %v8189_v56, 5  ;;  %v4874_v48 = vrot.slane %v8227_v23, 5 }
 0x182   : > { %9781 = vst [vmem:[#allocation47_spill] sm:$0xff] %v8662_v38  ;;  %v4219_v49 = vshrl.u32 %v8662_v38, 16  ;;  %v4222_v62 = vshll.u32 %v8662_v38, 16  ;;  %v6315_v55 = vpop.f32.mrf.mxu1  ;;  %6520 = vmatprep.mubr.msk.bf16.mxu1 %vm1270_vm14, %v5972_v30  ;;  %v4238_v10 = vshll.u32 %v8674_v54, 16  ;;  %v6700_v43 = vld [vmem:[#allocation3 + $0x3c] sm:$0xf]  ;;  %v8686_v13 = vpop.f32.mrf.mxu0 }
 0x183   : > { %2239 = vst.msk [vmem:[#allocation2 + $0x10] sm:$0xff] %vm2236_vm2, %v2206_v12  ;;  %v2204_v3 = vadd.f32 %v8598_v25, %v1653_v34  ;;  %v1664_v22 = vadd.f32 %v6315_v55, %v8349_v42  ;;  %v5973_v46 = vcombine.low %v6700_v43, %v8189_v56  ;;  %v4877_v12 = vrot.slane %v8231_v5, 5  ;;  %v4801_v56 = vld [vmem:[#allocation3 + $0x54] sm:$0xe] }
 0x184   : > { %v4221_v38 = vrot.slane %v4219_v49, 4  ;;  %v4224_v63 = vrot.slane %v4222_v62, 5  ;;  %v1655_v30 = vpop.f32.mrf.mxu1  ;;  %v4240_v51 = vrot.slane %v4238_v10, 5  ;;  %v8696_v34 = vpop.f32.mrf.mxu0  ;;  %v4869_v62 = vrot.slane %v4867_v60, 4 }
 0x185   : > { %2237 = vst.msk [vmem:[#allocation2] sm:$0xff] %vm2236_vm2, %v2204_v3  ;;  %v2207_v25 = vadd.f32 %v8605_v6, %v1664_v22  ;;  %v1656_v42 = vadd.f32 %v1655_v30, %v8370_v45  ;;  %v4876_v43 = vrot.slane %v4874_v48, 4  ;;  %v6020_v6 = vcombine.low %v8649_v28, %v8660_v1  ;;  %v9793_v1 = vld [vmem:[#allocation19_spill] sm:$0xff] }
 0x186   : > { %v4225_v49 = vor.u32 %v4224_v63, %v4221_v38  ;;  %v6318_v55 = vpop.f32.mrf.mxu1  ;;  %v8707_v53 = vpop.f32.mrf.mxu0  ;;  %v4241_v38 = vsel %vm6978_vm13, %v8641_v58, %v4240_v51  ;;  %v6007_v23 = vrot.slane %v4801_v56, 9  ;;  %v6021_v10 = vcombine.low %v8669_v57, %v8690_v0  ;;  %v9797_v57 = vld [vmem:[#allocation34_spill] sm:$0xff] }
 0x187   : > { %2240 = vst.msk [vmem:[#allocation2 + $0x18] sm:$0xff] %vm2236_vm2, %v2207_v25  ;;  %v2205_v5 = vadd.f32 %v8613_v20, %v1656_v42  ;;  %v1677_v45 = vadd.f32 %v6318_v55, %v8398_v11  ;;  %v8718_v11 = vsel %vm7351_vm1, %v6005_v24, %v4867_v60  ;;  %v9782_v22 = vrot.slane %v8193_v40, 5  ;;  %v4806_v25 = vld [vmem:[#allocation3 + $0x90] sm:$0xe] }
 0x188   : > { %v4226_v63 = vrot.slane %v4225_v49, 4  ;;  %v1668_v4 = vpop.f32.mrf.mxu1  ;;  %v8723_v58 = vpop.f32.mrf.mxu0  ;;  %v4891_v56 = vrot.slane %v8296_v7, 5  ;;  %v6701_v7 = vld [vmem:[#allocation3 + $0x70] sm:$0xf] }
 0x189   : > { %2238 = vst.msk [vmem:[#allocation2 + $0x8] sm:$0xff] %vm2236_vm2, %v2205_v5  ;;  %v2210_v20 = vadd.f32 %v8620_v15, %v1677_v45  ;;  %6521 = vmatmul.mubr.msk.bf16.gmra.mxu1 %vm1270_vm14, %v5973_v46  ;;  %v1669_v51 = vadd.f32 %v1668_v4, %v8414_v32  ;;  %v8732_v30 = vsel %vm7351_vm1, %v4869_v62, %v9782_v22  ;;  %v9783_v4 = vrot.slane %v8265_v8, 5  ;;  %v9784_v22 = vld [vmem:[#allocation11_spill] sm:$0xff] }
 0x18a   : > { %v4231_v3 = vsel %vm6978_vm13, %v4226_v63, %v8611_v36  ;;  %v6319_v24 = vpop.f32.mrf.mxu1  ;;  %v8736_v15 = vsel %vm7351_vm1, %v6006_v33, %v4874_v48  ;;  %v8740_v32 = vsel %vm7351_vm1, %v4876_v43, %v4877_v12  ;;  %6524 = vmatprep.mubr.msk.bf16.mxu1 %vm1270_vm14, %v5974_v50  ;;  %v6008_v36 = vrot.slane %v4802_v41, 9  ;;  %v8746_v46 = vpop.f32.mrf.mxu0 }
 0x18b   : > { %v5953_v60 = vcombine.low %v4231_v3, %v4241_v38  ;;  %2243 = vst.msk [vmem:[#allocation2 + $0x30] sm:$0xff] %vm2236_vm2, %v2210_v20  ;;  %v2208_v35 = vadd.f32 %v8628_v21, %v1669_v51  ;;  %v1680_v40 = vadd.f32 %v6319_v24, %v8439_v19  ;;  %v4883_v33 = vrot.slane %v4881_v47, 4  ;;  %v4807_v38 = vld [vmem:[#allocation3 + $0x9c] sm:$0xe]  ;;  %v4808_v3 = vld [vmem:[#allocation3 + $0xa8] sm:$0xe] }
 0x18c   : > { %v1671_v42 = vpop.f32.mrf.mxu1  ;;  %v5975_v48 = vcombine.low %v8248_v16, %v8256_v37  ;;  %v4888_v12 = vrot.slane %v8286_v27, 5  ;;  %v6022_v21 = vcombine.low %v8718_v11, %v8732_v30  ;;  %v6023_v62 = vcombine.low %v8736_v15, %v8740_v32  ;;  %v8760_v55 = vpop.f32.mrf.mxu0  ;;  %v4804_v15 = vld [vmem:[#allocation3 + $0x78] sm:$0xe]  ;;  %v6702_v32 = vld [vmem:[#allocation3 + $0x7c] sm:$0xf] }
 0x18d   : > { %6511 = vmatmul.mubr.msk.bf16.gmra.mxu0 %vm1270_vm14, %v5953_v60  ;;  %2241 = vst.msk [vmem:[#allocation2 + $0x20] sm:$0xff] %vm2236_vm2, %v2208_v35  ;;  %v2211_v19 = vadd.f32 %v8635_v44, %v1680_v40  ;;  %v1672_v49 = vadd.f32 %v1671_v42, %v8461_v39  ;;  %v4954_v16 = vrot.slane %v8674_v54, 5  ;;  %v8766_v37 = vsel %vm7351_vm1, %v6007_v23, %v4881_v47  ;;  %v9786_v40 = vld [vmem:[#allocation16_spill] sm:$0xff] }
 0x18e   : > { %6550 = vmatprep.mubr.msk.bf16.mxu0 %vm1270_vm14, %v6019_v2  ;;  %v6322_v43 = vpop.f32.mrf.mxu1  ;;  %v5976_v50 = vcombine.low %v8277_v52, %v8286_v27  ;;  %v6012_v44 = vrot.slane %v4806_v25, 9  ;;  %v8775_v45 = vsel %vm7351_vm1, %v6008_v36, %v4888_v12  ;;  %v8777_v2 = vpop.f32.mrf.mxu0  ;;  %v4916_v63 = vrot.slane %v8432_v59, 5  ;;  %v9787_v25 = vld [vmem:[#allocation26_spill] sm:$0xff] }
 0x18f   : > { %2244 = vst.msk [vmem:[#allocation2 + $0x38] sm:$0xff] %vm2236_vm2, %v2211_v19  ;;  %v2209_v39 = vadd.f32 %v8652_v17, %v1672_v49  ;;  %v1693_v5 = vadd.f32 %v6322_v43, %v8478_v9  ;;  %v8784_v52 = vsel %vm7351_vm1, %v4883_v33, %v9783_v4  ;;  %v8786_v23 = vrot.slane %v4888_v12, 4  ;;  %v9788_v33 = vld [vmem:[#allocation8_spill] sm:$0xff]  ;;  %v4809_v49 = vld [vmem:[#allocation3 + $0xb4] sm:$0xe] }
 0x190   : > { %v1684_v27 = vpop.f32.mrf.mxu1  ;;  %v4919_v9 = vrot.slane %v8435_v18, 5  ;;  %v5980_v17 = vcombine.low %v8426_v26, %v8432_v59  ;;  %v8795_v41 = vpop.f32.mrf.mxu0  ;;  %v8799_v20 = vsel %vm7351_vm1, %v6012_v44, %v4916_v63  ;;  %v4918_v51 = vrot.slane %v4916_v63, 4  ;;  %v9790_v63 = vld [vmem:[#allocation30_spill] sm:$0xff]  ;;  %v9813_v26 = vld [vmem:[#allocation15_spill] sm:$0xff] }
 0x191   : > { %2242 = vst.msk [vmem:[#allocation2 + $0x28] sm:$0xff] %vm2236_vm2, %v2209_v39  ;;  %v2214_v47 = vadd.f32 %v8672_v14, %v1693_v5  ;;  %6525 = vmatmul.mubr.msk.bf16.gmra.mxu1 %vm1270_vm14, %v5975_v48  ;;  %v1685_v8 = vadd.f32 %v1684_v27, %v8494_v61  ;;  %v5977_v24 = vcombine.low %v9784_v22, %v8323_v29  ;;  %v6013_v60 = vrot.slane %v4807_v38, 9  ;;  %v9785_v14 = vld [vmem:[#allocation17_spill] sm:$0xff]  ;;  %v9789_v48 = vld [vmem:[#allocation7_spill] sm:$0xff]  ;;  %v9791_v27 = vld [vmem:[#allocation22_spill] sm:$0xff] }
 0x192   : > { %v6323_v18 = vpop.f32.mrf.mxu1  ;;  %6528 = vmatprep.mubr.msk.bf16.mxu1 %vm1270_vm14, %v5976_v50  ;;  %v4923_v35 = vrot.slane %v9785_v14, 5  ;;  %v5981_v61 = vcombine.low %v9786_v40, %v9785_v14  ;;  %v5978_v12 = vcombine.low %v9789_v48, %v9788_v33  ;;  %v8812_v19 = vpop.f32.mrf.mxu0  ;;  %v8816_v29 = vsel %vm7351_vm1, %v4918_v51, %v4919_v9  ;;  %v9796_v22 = vld [vmem:[#allocation28_spill] sm:$0xff] }
 0x193   : > { %2247 = vst.msk [vmem:[#allocation2 + $0x50] sm:$0xff] %vm2236_vm2, %v2214_v47  ;;  %v2212_v36 = vadd.f32 %v8686_v13, %v1685_v8  ;;  %v1696_v42 = vadd.f32 %v6323_v18, %v9787_v25  ;;  %v6014_v39 = vrot.slane %v4808_v3, 9  ;;  %v4930_v9 = vrot.slane %v9791_v27, 5  ;;  %v9792_v47 = vld [vmem:[#allocation23_spill] sm:$0xff]  ;;  %v9816_v40 = vld [vmem:[#allocation24_spill] sm:$0xff] }
 0x194   : > { %v1687_v43 = vpop.f32.mrf.mxu1  ;;  %v8822_v44 = vsel %vm7351_vm1, %v6013_v60, %v4923_v35  ;;  %v4925_v13 = vrot.slane %v4923_v35, 4  ;;  %v8831_v4 = vpop.f32.mrf.mxu0  ;;  %v4933_v8 = vrot.slane %v9792_v47, 5  ;;  %v6015_v18 = vrot.slane %v4809_v49, 9  ;;  %v4810_v35 = vld [vmem:[#allocation3 + $0xc0] sm:$0xe] }
 0x195   : > { %6551 = vmatmul.mubr.msk.bf16.vlgmr.msra.gmra.mxu0 %vm1270_vm14, %v6020_v6  ;;  %2245 = vst.msk [vmem:[#allocation2 + $0x40] sm:$0xff] %vm2236_vm2, %v2212_v36  ;;  %v2215_v5 = vadd.f32 %v8696_v34, %v1696_v42  ;;  %v1688_v38 = vadd.f32 %v1687_v43, %v9790_v63  ;;  %v9794_v6 = vrot.slane %v9793_v1, 5  ;;  %v9795_v34 = vld [vmem:[#allocation21_spill] sm:$0xff]  ;;  %v4937_v60 = vrot.slane %v9796_v22, 5 }
 0x196   : > { %6554 = vmatprep.mubr.msk.bf16.mxu0 %vm1270_vm14, %v6021_v10  ;;  %v6326_v28 = vpop.f32.mrf.mxu1  ;;  %v5982_v3 = vcombine.low %v9795_v34, %v9791_v27  ;;  %v8851_v36 = vpop.f32.mrf.mxu0  ;;  %v8857_v42 = vsel %vm7351_vm1, %v6014_v39, %v4930_v9  ;;  %v4932_v48 = vrot.slane %v4930_v9, 4  ;;  %v9799_v63 = vld [vmem:[#allocation37_spill] sm:$0xff]  ;;  %v6016_v47 = vrot.slane %v4810_v35, 9  ;;  %v9804_v35 = vld [vmem:[#allocation32_spill] sm:$0xff] }
 0x197   : > { %v8843_v51 = vsel %vm7351_vm1, %v4925_v13, %v9794_v6  ;;  %2248 = vst.msk [vmem:[#allocation2 + $0x58] sm:$0xff] %vm2236_vm2, %v2215_v5  ;;  %v2213_v0 = vadd.f32 %v8707_v53, %v1688_v38  ;;  %v1709_v10 = vadd.f32 %v6326_v28, %v9797_v57  ;;  %v8861_v49 = vsel %vm7351_vm1, %v6015_v18, %v4937_v60  ;;  %v9798_v53 = vld [vmem:[#allocation25_spill] sm:$0xff] }
 0x198   : > { %v1700_v33 = vpop.f32.mrf.mxu1  ;;  %v4939_v43 = vrot.slane %v4937_v60, 4  ;;  %v5983_v13 = vcombine.low %v9798_v53, %v9796_v22  ;;  %v8869_v39 = vpop.f32.mrf.mxu0  ;;  %v9800_v9 = vld [vmem:[#allocation33_spill] sm:$0xff]  ;;  %v8875_v18 = vsel %vm7351_vm1, %v4932_v48, %v4933_v8  ;;  %v4895_v11 = vrot.slane %v6701_v7, 5 }
 0x199   : > { %2246 = vst.msk [vmem:[#allocation2 + $0x48] sm:$0xff] %vm2236_vm2, %v2213_v0  ;;  %v2218_v5 = vadd.f32 %v8723_v58, %v1709_v10  ;;  %6529 = vmatmul.mubr.msk.bf16.gmra.mxu1 %vm1270_vm14, %v5977_v24  ;;  %v1701_v38 = vadd.f32 %v1700_v33, %v9799_v63  ;;  %v4944_v28 = vrot.slane %v9800_v9, 5  ;;  %v4811_v1 = vld [vmem:[#allocation3 + $0xcc] sm:$0xe]  ;;  %v9803_v24 = vld [vmem:[#allocation36_spill] sm:$0xff]  ;;  %v5984_v10 = vcombine.low %v9804_v35, %v9800_v9 }
 0x19a   : > { %v6327_v6 = vpop.f32.mrf.mxu1  ;;  %6532 = vmatprep.mubr.msk.bf16.mxu1 %vm1270_vm14, %v5978_v12  ;;  %v9801_v60 = vld [vmem:[#allocation29_spill] sm:$0xff]  ;;  %v4947_v57 = vrot.slane %v9803_v24, 5  ;;  %v9805_v12 = vld [vmem:[#allocation38_spill] sm:$0xff]  ;;  %v8889_v25 = vpop.f32.mrf.mxu0  ;;  %v6031_v8 = vcombine.low %v8857_v42, %v8875_v18  ;;  %v6017_v24 = vrot.slane %v4811_v1, 9  ;;  %v9808_v1 = vld [vmem:[#allocation12_spill] sm:$0xff] }
 0x19b   : > { %v9802_v0 = vrot.slane %v9801_v60, 5  ;;  %2251 = vst.msk [vmem:[#allocation2 + $0x70] sm:$0xff] %vm2236_vm2, %v2218_v5  ;;  %v2216_v33 = vadd.f32 %v8746_v46, %v1701_v38  ;;  %v1712_v63 = vadd.f32 %v6327_v6, %v9805_v12  ;;  %v8897_v60 = vsel %vm7351_vm1, %v6016_v47, %v4944_v28  ;;  %v9806_v5 = vld [vmem:[#allocation41_spill] sm:$0xff]  ;;  %v9807_v47 = vld [vmem:[#allocation40_spill] sm:$0xff] }
 0x19c   : > { %v4951_v50 = vrot.slane %v9806_v5, 5  ;;  %v4892_v46 = vsel %vm7351_vm1, %v8786_v23, %v4891_v56  ;;  %v9809_v6 = vld [vmem:[#allocation9_spill] sm:$0xff]  ;;  %v8914_v48 = vpop.f32.mrf.mxu0 }
 0x19d   : > { %v8881_v58 = vsel %vm7351_vm1, %v4939_v43, %v9802_v0  ;;  %v1703_v43 = vpop.f32.mrf.mxu1  ;;  %v4946_v0 = vrot.slane %v4944_v28, 4  ;;  %6555 = vmatmul.mubr.msk.bf16.gmra.mxu0 %vm1270_vm14, %v6022_v21  ;;  %2249 = vst.msk [vmem:[#allocation2 + $0x60] sm:$0xff] %vm2236_vm2, %v2216_v33  ;;  %v2219_v38 = vadd.f32 %v8760_v55, %v1712_v63  ;;  %v5979_v12 = vcombine.low %v9809_v6, %v9808_v1  ;;  %v4803_v23 = vld [vmem:[#allocation3 + $0x6c] sm:$0xe]  ;;  %v9810_v63 = vld [vmem:[#allocation10_spill] sm:$0xff] }
 0x19e   : > { %v1704_v28 = vadd.f32 %v1703_v43, %v9807_v47  ;;  %6558 = vmatprep.mubr.msk.bf16.mxu0 %vm1270_vm14, %v6023_v62  ;;  %v8926_v21 = vsel %vm7351_vm1, %v6017_v24, %v4951_v50  ;;  %v4953_v55 = vrot.slane %v4951_v50, 4  ;;  %v4902_v62 = vrot.slane %v6702_v32, 5  ;;  %v8931_v47 = vpop.f32.mrf.mxu0 }
 0x19f   : > { %v6330_v30 = vpop.f32.mrf.mxu1  ;;  %v8922_v56 = vsel %vm7351_vm1, %v4946_v0, %v4947_v57  ;;  %2252 = vst.msk [vmem:[#allocation2 + $0x78] sm:$0xff] %vm2236_vm2, %v2219_v38  ;;  %v6703_v0 = vld [vmem:[#allocation3 + $0x74] sm:$0x1]  ;;  %v6010_v32 = vrot.slane %v4804_v15, 9  ;;  %v6705_v15 = vld [vmem:[#allocation3 + $0x88] sm:$0xf]  ;;  %v9829_v18 = vcombine.low %v8861_v49, %v8881_v58 }
 0x1a0   : > { %v2217_v33 = vadd.f32 %v8777_v2, %v1704_v28  ;;  %v1725_v43 = vadd.f32 %v6330_v30, %v9810_v63  ;;  %v6033_v57 = vcombine.low %v8897_v60, %v8922_v56  ;;  %v4898_v1 = vrot.slane %v6703_v0, 5  ;;  %v9811_v28 = vld [vmem:[#allocation13_spill] sm:$0xff]  ;;  %v8947_v7 = vpop.f32.mrf.mxu0 }
 0x1a1   : > { %v1716_v24 = vpop.f32.mrf.mxu1  ;;  %v8939_v50 = vsel %vm7351_vm1, %v4953_v55, %v4954_v16  ;;  %v6024_v2 = vcombine.low %v8766_v37, %v8784_v52  ;;  %6533 = vmatmul.mubr.msk.bf16.gmra.mxu1 %vm1270_vm14, %v5979_v12  ;;  %v6025_v30 = vcombine.low %v8775_v45, %v4892_v46  ;;  %v6009_v16 = vrot.slane %v4803_v23, 9  ;;  %v6704_v52 = vld [vmem:[#allocation3 + $0x80] sm:$0x1] }
 0x1a2   : > { %2250 = vst.msk [vmem:[#allocation2 + $0x68] sm:$0xff] %vm2236_vm2, %v2217_v33  ;;  %v2222_v38 = vadd.f32 %v8795_v41, %v1725_v43  ;;  %v1717_v6 = vadd.f32 %v1716_v24, %v9811_v28  ;;  %v6034_v54 = vcombine.low %v8926_v21, %v8939_v50  ;;  %v4897_v55 = vrot.slane %v4895_v11, 4  ;;  %6536 = vmatprep.mubr.msk.bf16.mxu1 %vm1270_vm14, %v5980_v17  ;;  %v9812_v33 = vld [vmem:[#allocation14_spill] sm:$0xff]  ;;  %v2173_v0 = vpop.f32.mrf.mxu0  ;;  %v4805_v28 = vld [vmem:[#allocation3 + $0x84] sm:$0xe] }
 0x1a3   : > { %v6331_v63 = vpop.f32.mrf.mxu1  ;;  %v4904_v37 = vrot.slane %v4902_v62, 4  ;;  %v4905_v41 = vrot.slane %v6704_v52, 5  ;;  %v4896_v23 = vsel %vm7351_vm1, %v6009_v16, %v4895_v11  ;;  %v4909_v24 = vrot.slane %v6705_v15, 5 }
 0x1a4   : > { %2255 = vst.msk [vmem:[#allocation2 + $0x90] sm:$0xff] %vm2236_vm2, %v2222_v38  ;;  %v2220_v12 = vadd.f32 %v8812_v19, %v1717_v6  ;;  %v1728_v43 = vadd.f32 %v6331_v63, %v9812_v33  ;;  %v6373_v17 = vpop.f32.mrf.mxu0  ;;  %v4899_v19 = vsel %vm7351_vm1, %v4897_v55, %v4898_v1 }
 0x1a5   : > { %v1719_v45 = vpop.f32.mrf.mxu1  ;;  %6559 = vmatmul.mubr.msk.bf16.gmra.mxu0 %vm1270_vm14, %v6024_v2  ;;  %v4903_v2 = vsel %vm7351_vm1, %v6010_v32, %v4902_v62  ;;  %v6026_v52 = vcombine.low %v4896_v23, %v4899_v19  ;;  %v9815_v62 = vld [vmem:[#allocation20_spill] sm:$0xff]  ;;  %v4911_v33 = vrot.slane %v4909_v24, 4  ;;  %v9818_v19 = vld [vmem:[#allocation31_spill] sm:$0xff] }
 0x1a6   : > { %2253 = vst.msk [vmem:[#allocation2 + $0x80] sm:$0xff] %vm2236_vm2, %v2220_v12  ;;  %v2223_v46 = vadd.f32 %v8831_v4, %v1728_v43  ;;  %v1720_v59 = vadd.f32 %v1719_v45, %v9813_v26  ;;  %6562 = vmatprep.mubr.msk.bf16.mxu0 %vm1270_vm14, %v6025_v30  ;;  %v4906_v4 = vsel %vm7351_vm1, %v4904_v37, %v4905_v41  ;;  %v9814_v30 = vld [vmem:[#allocation18_spill] sm:$0xff]  ;;  %v2176_v11 = vpop.f32.mrf.mxu0  ;;  %v6706_v37 = vld [vmem:[#allocation3 + $0x8c] sm:$0x1]  ;;  %v6011_v12 = vrot.slane %v4805_v28, 9  ;;  %v9817_v26 = vld [vmem:[#allocation27_spill] sm:$0xff] }
 0x1a7   : > { %v6334_v38 = vpop.f32.mrf.mxu1  ;;  %v4912_v41 = vrot.slane %v6706_v37, 5 }
 0x1a8   : > { %2256 = vst.msk [vmem:[#allocation2 + $0x98] sm:$0xff] %vm2236_vm2, %v2223_v46  ;;  %v2221_v6 = vadd.f32 %v8851_v36, %v1720_v59  ;;  %v1741_v63 = vadd.f32 %v6334_v38, %v9814_v30  ;;  %v6376_v32 = vpop.f32.mrf.mxu0  ;;  %v6027_v36 = vcombine.low %v4903_v2, %v4906_v4  ;;  %v4910_v27 = vsel %vm7351_vm1, %v6011_v12, %v4909_v24  ;;  %v9820_v30 = vld [vmem:[#allocation39_spill] sm:$0xff] }
 0x1a9   : > { %v1732_v16 = vpop.f32.mrf.mxu1  ;;  %6537 = vmatmul.mubr.msk.bf16.gmra.mxu1 %vm1270_vm14, %v5981_v61  ;;  %v4913_v34 = vsel %vm7351_vm1, %v4911_v33, %v4912_v41  ;;  %v9826_v33 = vld [vmem:[#allocation45_spill] sm:$0xff] }
 0x1aa   : > { %2254 = vst.msk [vmem:[#allocation2 + $0x88] sm:$0xff] %vm2236_vm2, %v2221_v6  ;;  %v2226_v1 = vadd.f32 %v8869_v39, %v1741_v63  ;;  %v1733_v55 = vadd.f32 %v1732_v16, %v9815_v62  ;;  %6540 = vmatprep.mubr.msk.bf16.mxu1 %vm1270_vm14, %v5982_v3  ;;  %v2189_v39 = vpop.f32.mrf.mxu0  ;;  %v6028_v2 = vcombine.low %v4910_v27, %v4913_v34  ;;  %v9824_v62 = vld [vmem:[#allocation43_spill] sm:$0xff] }
 0x1ab   : > { %v6335_v43 = vpop.f32.mrf.mxu1 }
 0x1ac   : > { %2259 = vst.msk [vmem:[#allocation2 + $0xb0] sm:$0xff] %vm2236_vm2, %v2226_v1  ;;  %v2224_v14 = vadd.f32 %v8889_v25, %v1733_v55  ;;  %v1744_v61 = vadd.f32 %v6335_v43, %v9816_v40  ;;  %v6377_v23 = vpop.f32.mrf.mxu0  ;;  %v9827_v40 = vcombine.low %v8822_v44, %v8843_v51 }
 0x1ad   : > { %v1735_v45 = vpop.f32.mrf.mxu1  ;;  %6563 = vmatmul.mubr.msk.bf16.gmra.mxu0 %vm1270_vm14, %v6026_v52  ;;  %v9822_v52 = vld [vmem:[#allocation47_spill] sm:$0xff] }
 0x1ae   : > { %2257 = vst.msk [vmem:[#allocation2 + $0xa0] sm:$0xff] %vm2236_vm2, %v2224_v14  ;;  %v2227_v46 = vadd.f32 %v8914_v48, %v1744_v61  ;;  %v1736_v59 = vadd.f32 %v1735_v45, %v9817_v26  ;;  %6566 = vmatprep.mubr.msk.bf16.mxu0 %vm1270_vm14, %v6027_v36  ;;  %v2192_v38 = vpop.f32.mrf.mxu0  ;;  %v5985_v9 = vcombine.low %v9822_v52, %v9806_v5  ;;  %v9825_v5 = vld [vmem:[#allocation44_spill] sm:$0xff]  ;;  %v9828_v61 = vld [vmem:[#allocation46_spill] sm:$0xff] }
 0x1af   : > { %v6338_v3 = vpop.f32.mrf.mxu1 }
 0x1b0   : > { %2260 = vst.msk [vmem:[#allocation2 + $0xb8] sm:$0xff] %vm2236_vm2, %v2227_v46  ;;  %v2225_v25 = vadd.f32 %v8931_v47, %v1736_v59  ;;  %v1757_v15 = vadd.f32 %v6338_v3, %v9818_v19 }
 0x1b1   : > { %v1748_v48 = vpop.f32.mrf.mxu1  ;;  %6541 = vmatmul.mubr.msk.bf16.gmra.mxu1 %vm1270_vm14, %v5983_v13  ;;  %v9008_v28 = vpop.f32.mrf.mxu0  ;;  %v9821_v13 = vld [vmem:[#allocation42_spill] sm:$0xff] }
 0x1b2   : > { %2258 = vst.msk [vmem:[#allocation2 + $0xa8] sm:$0xff] %vm2236_vm2, %v2225_v25  ;;  %v2230_v4 = vadd.f32 %v8947_v7, %v1757_v15  ;;  %v1749_v24 = vadd.f32 %v1748_v48, %v9819_v31  ;;  %6544 = vmatprep.mubr.msk.bf16.mxu1 %vm1270_vm14, %v5984_v10  ;;  %v9823_v10 = vcombine.low %v8799_v20, %v8816_v29 }
 0x1b3   : > { %v6339_v6 = vpop.f32.mrf.mxu1  ;;  %v9016_v63 = vpop.f32.mrf.mxu0 }
 0x1b4   : > { %2263 = vst.msk [vmem:[#allocation2 + $0xd0] sm:$0xff] %vm2236_vm2, %v2230_v4  ;;  %v2228_v47 = vadd.f32 %v2173_v0, %v1749_v24  ;;  %v1760_v7 = vadd.f32 %v6339_v6, %v9820_v30 }
 0x1b5   : > { %v1751_v22 = vpop.f32.mrf.mxu1  ;;  %6567 = vmatmul.mubr.msk.bf16.gmra.mxu0 %vm1270_vm14, %v6028_v2  ;;  %v9023_v35 = vpop.f32.mrf.mxu0 }
 0x1b6   : > { %2261 = vst.msk [vmem:[#allocation2 + $0xc0] sm:$0xff] %vm2236_vm2, %v2228_v47  ;;  %v2231_v53 = vadd.f32 %v6373_v17, %v1760_v7  ;;  %v1752_v16 = vadd.f32 %v1751_v22, %v9821_v13  ;;  %6570 = vmatprep.mubr.msk.bf16.mxu0 %vm1270_vm14, %v9823_v10 }
 0x1b7   : > { %v6342_v0 = vpop.f32.mrf.mxu1  ;;  %v9031_v37 = vpop.f32.mrf.mxu0 }
 0x1b8   : > { %2264 = vst.msk [vmem:[#allocation2 + $0xd8] sm:$0xff] %vm2236_vm2, %v2231_v53  ;;  %v2229_v1 = vadd.f32 %v2176_v11, %v1752_v16  ;;  %v1773_v55 = vadd.f32 %v6342_v0, %v9824_v62 }
 0x1b9   : > { %v1764_v17 = vpop.f32.mrf.mxu1  ;;  %6545 = vmatmul.mubr.msk.bf16.gmra.mxu1 %vm1270_vm14, %v5985_v9  ;;  %v9036_v12 = vpop.f32.mrf.mxu0 }
 0x1ba   : > { %2262 = vst.msk [vmem:[#allocation2 + $0xc8] sm:$0xff] %vm2236_vm2, %v2229_v1  ;;  %v2234_v41 = vadd.f32 %v6376_v32, %v1773_v55  ;;  %v1765_v36 = vadd.f32 %v1764_v17, %v9825_v5 }
 0x1bb   : > { %v6343_v20 = vpop.f32.mrf.mxu1  ;;  %v9040_v43 = vpop.f32.mrf.mxu0 }
 0x1bc   : > { %2267 = vst.msk [vmem:[#allocation2 + $0xf0] sm:$0xff] %vm2236_vm2, %v2234_v41  ;;  %v2232_v29 = vadd.f32 %v2189_v39, %v1765_v36  ;;  %v1776_v11 = vadd.f32 %v6343_v20, %v9826_v33 }
 0x1bd   : > { %v1767_v14 = vpop.f32.mrf.mxu1  ;;  %6571 = vmatmul.mubr.msk.bf16.gmra.mxu0 %vm1270_vm14, %v9827_v40  ;;  %v9048_v46 = vpop.f32.mrf.mxu0 }
 0x1be   : > { %2265 = vst.msk [vmem:[#allocation2 + $0xe0] sm:$0xff] %vm2236_vm2, %v2232_v29  ;;  %v2235_v32 = vadd.f32 %v6377_v23, %v1776_v11  ;;  %v1768_v45 = vadd.f32 %v1767_v14, %v9828_v61  ;;  %6574 = vmatprep.mubr.msk.bf16.mxu0 %vm1270_vm14, %v6031_v8 }
 0x1bf   : > { %v9054_v39 = vpop.f32.mrf.mxu1  ;;  %v9057_v44 = vpop.f32.mrf.mxu0 }
 0x1c0   : > { %2268 = vst.msk [vmem:[#allocation2 + $0xf8] sm:$0xff] %vm2236_vm2, %v2235_v32  ;;  %v2233_v26 = vadd.f32 %v2192_v38, %v1768_v45 }
 0x1c1   : > { %v9059_v51 = vpop.f32.mrf.mxu1  ;;  %v9062_v59 = vpop.f32.mrf.mxu0 }
 0x1c2   : > { %2266 = vst.msk [vmem:[#allocation2 + $0xe8] sm:$0xff] %vm2236_vm2, %v2233_v26 }
 0x1c3   : > { %v9064_v23 = vpop.f32.mrf.mxu1  ;;  %v9066_v27 = vpop.f32.mrf.mxu0 }
 0x1c5   : > { %v9068_v42 = vpop.f32.mrf.mxu1  ;;  %6575 = vmatmul.mubr.msk.bf16.gmra.mxu0 %vm1270_vm14, %v9829_v18  ;;  %v9074_v8 = vpop.f32.mrf.mxu0 }
 0x1c6   : > { %6578 = vmatprep.mubr.msk.bf16.mxu0 %vm1270_vm14, %v6033_v57 }
 0x1c7   : > { %v9080_v34 = vpop.f32.mrf.mxu1  ;;  %v9082_v3 = vpop.f32.mrf.mxu0 }
 0x1c9   : > { %v9084_v25 = vpop.f32.mrf.mxu1  ;;  %v9086_v19 = vpop.f32.mrf.mxu0 }
 0x1cb   : > { %v9088_v15 = vpop.f32.mrf.mxu1  ;;  %v9090_v49 = vpop.f32.mrf.mxu0 }
 0x1cd   : > { %v9092_v58 = vpop.f32.mrf.mxu1  ;;  %6579 = vmatmul.mubr.msk.bf16.gmra.mxu0 %vm1270_vm14, %v6034_v54  ;;  %v9098_v60 = vpop.f32.mrf.mxu0 }
 0x1cf   : > { %v9100_v56 = vpop.f32.mrf.mxu1  ;;  %v9102_v57 = vpop.f32.mrf.mxu0 }
 0x1d1   : > { %v9104_v38 = vpop.f32.mrf.mxu1  ;;  %v9106_v48 = vpop.f32.mrf.mxu0 }
 0x1d3   : > { %v9108_v2 = vpop.f32.mrf.mxu1  ;;  %v9110_v4 = vpop.f32.mrf.mxu0 }
 0x1d5   : > { %v9112_v31 = vpop.f32.mrf.mxu1  ;;  %v9114_v24 = vpop.f32.mrf.mxu0 }
 0x1d7   : > { %v9116_v21 = vpop.f32.mrf.mxu1  ;;  %v9118_v50 = vpop.f32.mrf.mxu0 }
 0x1d9   : > { %v9120_v54 = vpop.f32.mrf.mxu1 }
 0x1da   : > { %v9122_v6 = vpop.f32.mrf.mxu0 }
 0x1db   : > { %v9124_v47 = vpop.f32.mrf.mxu1 }
 0x1dc   : > { %v9126_v30 = vpop.f32.mrf.mxu0 }
 0x1dd   : > { %v9128_v7 = vpop.f32.mrf.mxu1 }
 0x1de   : > { %v9130_v22 = vpop.f32.mrf.mxu0 }
 0x1df   : > { %v9132_v53 = vpop.f32.mrf.mxu1 }
 0x1e0   : > { %v9134_v13 = vpop.f32.mrf.mxu0 }
 0x1e1   : > { %v9136_v16 = vpop.f32.mrf.mxu1 }
 0x1e2   : > { %v9138_v52 = vpop.f32.mrf.mxu0 }
 0x1e3   : > { %v9140_v9 = vpop.f32.mrf.mxu1 }
 0x1e4   : > { %v9142_v10 = vpop.f32.mrf.mxu0 }
 0x1e5   : > { %9830 = vst [vmem:[#allocation11_spill] sm:$0xff] %v9142_v10  ;;  %v9144_v0 = vpop.f32.mrf.mxu1  ;;  %v3711_v10 = vld [vmem:[#allocation2] sm:$0xff] }
 0x1e6   : > { %v9146_v1 = vpop.f32.mrf.mxu0 }
 0x1e7   : > { %9831 = vst [vmem:[#allocation17_spill] sm:$0xff] %v9146_v1  ;;  %v9148_v62 = vpop.f32.mrf.mxu1 }
 0x1e8   : > { %v9150_v55 = vpop.f32.mrf.mxu0 }
 0x1e9   : > { %9832 = vst [vmem:[#allocation16_spill] sm:$0xff] %v9150_v55  ;;  %v9152_v17 = vpop.f32.mrf.mxu1 }
 0x1ea   : > { %v9154_v41 = vpop.f32.mrf.mxu0 }
 0x1eb   : > { %9833 = vst [vmem:[#allocation26_spill] sm:$0xff] %v9154_v41  ;;  %v9156_v5 = vpop.f32.mrf.mxu1 }
 0x1ec   : > { %v9158_v36 = vpop.f32.mrf.mxu0 }
 0x1ed   : > { %9834 = vst [vmem:[#allocation8_spill] sm:$0xff] %v9158_v36  ;;  %v9160_v20 = vpop.f32.mrf.mxu1 }
 0x1ee   : > { %v9162_v29 = vpop.f32.mrf.mxu0 }
 0x1ef   : > { %9835 = vst [vmem:[#allocation7_spill] sm:$0xff] %v9162_v29  ;;  %v9164_v33 = vpop.f32.mrf.mxu1 }
 0x1f0   : > { %v9166_v11 = vpop.f32.mrf.mxu0 }
 0x1f1   : > { %9836 = vst [vmem:[#allocation30_spill] sm:$0xff] %v9166_v11  ;;  %v9168_v14 = vpop.f32.mrf.mxu1 }
 0x1f2   : > { %v9170_v40 = vpop.f32.mrf.mxu0 }
 0x1f3   : > { %9837 = vst [vmem:[#allocation22_spill] sm:$0xff] %v9170_v40  ;;  %v9172_v32 = vpop.f32.mrf.mxu1 }
 0x1f4   : > { %9838 = vst [vmem:[#allocation23_spill] sm:$0xff] %v9172_v32  ;;  %v9174_v61 = vpop.f32.mrf.mxu0 }
 0x1f5   : > { %9839 = vst [vmem:[#allocation19_spill] sm:$0xff] %v9174_v61  ;;  %v9176_v45 = vpop.f32.mrf.mxu1  ;;  %v3139_v61 = vadd.f32 %v9008_v28, %v9054_v39  ;;  %v3134_v39 = vadd.f32 %v9031_v37, %v9068_v42  ;;  %v3147_v37 = vadd.f32 %v9040_v43, %v9084_v25  ;;  %v3150_v43 = vadd.f32 %v9057_v44, %v9092_v58 }
 0x1f6   : > { %9840 = vst [vmem:[#allocation21_spill] sm:$0xff] %v9176_v45  ;;  %v9178_v26 = vpop.f32.mrf.mxu0  ;;  %v3163_v44 = vadd.f32 %v9066_v27, %v9104_v38  ;;  %v3166_v27 = vadd.f32 %v9082_v3, %v9112_v31  ;;  %v3179_v3 = vadd.f32 %v9090_v49, %v9120_v54  ;;  %v3182_v49 = vadd.f32 %v9102_v57, %v9128_v7 }
 0x1f7   : > { %9841 = vst [vmem:[#allocation28_spill] sm:$0xff] %v9178_v26  ;;  %v9180_v18 = vpop.f32.mrf.mxu1  ;;  %v3195_v57 = vadd.f32 %v9110_v4, %v9136_v16  ;;  %v3198_v4 = vadd.f32 %v9118_v50, %v9144_v0  ;;  %v3211_v50 = vadd.f32 %v9126_v30, %v9152_v17  ;;  %v3214_v30 = vadd.f32 %v9134_v13, %v9160_v20  ;;  %v9850_v20 = vld [vmem:[#allocation11_spill] sm:$0xff] }
 0x1f8   : > { %9842 = vst [vmem:[#allocation34_spill] sm:$0xff] %v9180_v18  ;;  %v9182_v36 = vpop.f32.mrf.mxu0  ;;  %v3131_v18 = vadd.f32 %v9016_v63, %v9059_v51 }
 0x1f9   : > { %9843 = vst [vmem:[#allocation25_spill] sm:$0xff] %v9182_v36  ;;  %v9184_v29 = vpop.f32.mrf.mxu1 }
 0x1fa   : > { %9844 = vst [vmem:[#allocation37_spill] sm:$0xff] %v9184_v29  ;;  %v9186_v41 = vpop.f32.mrf.mxu0  ;;  %v3713_v29 = vld [vmem:[#allocation2 + $0x10] sm:$0xff] }
 0x1fb   : > { %9845 = vst [vmem:[#allocation33_spill] sm:$0xff] %v9186_v41  ;;  %v9188_v11 = vpop.f32.mrf.mxu1 }
 0x1fc   : > { %9846 = vst [vmem:[#allocation29_spill] sm:$0xff] %v9188_v11  ;;  %v9190_v55 = vpop.f32.mrf.mxu0  ;;  %v3142_v11 = vadd.f32 %v9023_v35, %v9064_v23  ;;  %v3155_v35 = vadd.f32 %v9036_v12, %v9080_v34  ;;  %v3158_v12 = vadd.f32 %v9048_v46, %v9088_v15  ;;  %v3171_v46 = vadd.f32 %v9062_v59, %v9100_v56 }
 0x1fd   : > { %9847 = vst [vmem:[#allocation36_spill] sm:$0xff] %v9190_v55  ;;  %v9192_v40 = vpop.f32.mrf.mxu1  ;;  %v3174_v59 = vadd.f32 %v9074_v8, %v9108_v2  ;;  %v3187_v8 = vadd.f32 %v9086_v19, %v9116_v21  ;;  %v3190_v19 = vadd.f32 %v9098_v60, %v9124_v47  ;;  %v3203_v60 = vadd.f32 %v9106_v48, %v9132_v53 }
 0x1fe   : > { %9848 = vst [vmem:[#allocation32_spill] sm:$0xff] %v9192_v40  ;;  %v9196_v45 = vpop.f32.mrf.mxu0  ;;  %v3206_v48 = vadd.f32 %v9114_v24, %v9140_v9  ;;  %v3219_v24 = vadd.f32 %v9122_v6, %v9148_v62  ;;  %v3222_v6 = vadd.f32 %v9130_v22, %v9156_v5 }
 0x1ff   : > { %v6450_v26 = vpop.f32.mrf.mxu1 }
 0x200   : > { %v3681_v36 = vadd.f32 %v6450_v26, %v3139_v61  ;;  %v9200_v1 = vpop.f32.mrf.mxu0  ;;  %v3714_v26 = vld [vmem:[#allocation2 + $0x18] sm:$0xff] }
 0x201   : > { %9849 = vst [vmem:[#allocation38_spill] sm:$0xff] %v9200_v1  ;;  %v3552_v41 = vpop.f32.mrf.mxu1 }
 0x202   : > { %v3745_v55 = vadd.f32 %v3713_v29, %v3681_v36  ;;  %v3679_v32 = vadd.f32 %v3552_v41, %v3131_v18  ;;  %v9204_v40 = vpop.f32.mrf.mxu0  ;;  %v3712_v29 = vld [vmem:[#allocation2 + $0x8] sm:$0xff] }
 0x203   : > { %v6451_v28 = vpop.f32.mrf.mxu1 }
 0x204   : > { %3777 = vst.msk [vmem:[#allocation2 + $0x10] sm:$0xff] %vm2236_vm2, %v3745_v55  ;;  %v3743_v63 = vadd.f32 %v3711_v10, %v3679_v32  ;;  %v3682_v51 = vadd.f32 %v6451_v28, %v3142_v11  ;;  %v9209_v61 = vpop.f32.mrf.mxu0  ;;  %v3717_v55 = vld [vmem:[#allocation2 + $0x30] sm:$0xff]  ;;  %v3715_v28 = vld [vmem:[#allocation2 + $0x20] sm:$0xff] }
 0x205   : > { %v3555_v1 = vpop.f32.mrf.mxu1 }
 0x206   : > { %3775 = vst.msk [vmem:[#allocation2] sm:$0xff] %vm2236_vm2, %v3743_v63  ;;  %v3746_v23 = vadd.f32 %v3714_v26, %v3682_v51  ;;  %v3680_v41 = vadd.f32 %v3555_v1, %v3134_v39  ;;  %v9214_v36 = vpop.f32.mrf.mxu0  ;;  %v3718_v51 = vld [vmem:[#allocation2 + $0x38] sm:$0xff] }
 0x207   : > { %v6454_v18 = vpop.f32.mrf.mxu1 }
 0x208   : > { %3778 = vst.msk [vmem:[#allocation2 + $0x18] sm:$0xff] %vm2236_vm2, %v3746_v23  ;;  %v3744_v42 = vadd.f32 %v3712_v29, %v3680_v41  ;;  %v3685_v10 = vadd.f32 %v6454_v18, %v3155_v35  ;;  %v9222_v32 = vpop.f32.mrf.mxu0  ;;  %v3716_v41 = vld [vmem:[#allocation2 + $0x28] sm:$0xff] }
 0x209   : > { %v3568_v11 = vpop.f32.mrf.mxu1 }
 0x20a   : > { %3776 = vst.msk [vmem:[#allocation2 + $0x8] sm:$0xff] %vm2236_vm2, %v3744_v42  ;;  %v3749_v34 = vadd.f32 %v3717_v55, %v3685_v10  ;;  %v3683_v1 = vadd.f32 %v3568_v11, %v3147_v37  ;;  %v3721_v37 = vld [vmem:[#allocation2 + $0x50] sm:$0xff]  ;;  %v3719_v11 = vld [vmem:[#allocation2 + $0x40] sm:$0xff] }
 0x20b   : > { %v6455_v39 = vpop.f32.mrf.mxu1  ;;  %v9230_v23 = vpop.f32.mrf.mxu0 }
 0x20c   : > { %3781 = vst.msk [vmem:[#allocation2 + $0x30] sm:$0xff] %vm2236_vm2, %v3749_v34  ;;  %v3747_v25 = vadd.f32 %v3715_v28, %v3683_v1  ;;  %v3686_v63 = vadd.f32 %v6455_v39, %v3158_v12  ;;  %v3722_v1 = vld [vmem:[#allocation2 + $0x58] sm:$0xff] }
 0x20d   : > { %v3571_v26 = vpop.f32.mrf.mxu1  ;;  %v9238_v55 = vpop.f32.mrf.mxu0 }
 0x20e   : > { %3779 = vst.msk [vmem:[#allocation2 + $0x20] sm:$0xff] %vm2236_vm2, %v3747_v25  ;;  %v3750_v15 = vadd.f32 %v3718_v51, %v3686_v63  ;;  %v3684_v35 = vadd.f32 %v3571_v26, %v3150_v43  ;;  %v3720_v25 = vld [vmem:[#allocation2 + $0x48] sm:$0xff]  ;;  %v3725_v26 = vld [vmem:[#allocation2 + $0x70] sm:$0xff] }
 0x20f   : > { %v6458_v29 = vpop.f32.mrf.mxu1  ;;  %v9246_v43 = vpop.f32.mrf.mxu0 }
 0x210   : > { %3782 = vst.msk [vmem:[#allocation2 + $0x38] sm:$0xff] %vm2236_vm2, %v3750_v15  ;;  %v3748_v58 = vadd.f32 %v3716_v41, %v3684_v35  ;;  %v3689_v18 = vadd.f32 %v6458_v29, %v3171_v46  ;;  %v3723_v41 = vld [vmem:[#allocation2 + $0x60] sm:$0xff] }
 0x211   : > { %v3584_v42 = vpop.f32.mrf.mxu1  ;;  %v9254_v35 = vpop.f32.mrf.mxu0 }
 0x212   : > { %3780 = vst.msk [vmem:[#allocation2 + $0x28] sm:$0xff] %vm2236_vm2, %v3748_v58  ;;  %v3753_v56 = vadd.f32 %v3721_v37, %v3689_v18  ;;  %v3687_v10 = vadd.f32 %v3584_v42, %v3163_v44  ;;  %v3726_v58 = vld [vmem:[#allocation2 + $0x78] sm:$0xff] }
 0x213   : > { %v6459_v12 = vpop.f32.mrf.mxu1 }
 0x214   : > { %3785 = vst.msk [vmem:[#allocation2 + $0x50] sm:$0xff] %vm2236_vm2, %v3753_v56  ;;  %v3751_v38 = vadd.f32 %v3719_v11, %v3687_v10  ;;  %v3690_v34 = vadd.f32 %v6459_v12, %v3174_v59  ;;  %v3724_v59 = vld [vmem:[#allocation2 + $0x68] sm:$0xff]  ;;  %v3729_v11 = vld [vmem:[#allocation2 + $0x90] sm:$0xff] }
 0x215   : > { %v3587_v28 = vpop.f32.mrf.mxu1 }
 0x216   : > { %3783 = vst.msk [vmem:[#allocation2 + $0x40] sm:$0xff] %vm2236_vm2, %v3751_v38  ;;  %v3754_v2 = vadd.f32 %v3722_v1, %v3690_v34  ;;  %v3688_v39 = vadd.f32 %v3587_v28, %v3166_v27  ;;  %v3727_v34 = vld [vmem:[#allocation2 + $0x80] sm:$0xff] }
 0x217   : > { %v6462_v63 = vpop.f32.mrf.mxu1  ;;  %v9262_v42 = vpop.f32.mrf.mxu0 }
 0x218   : > { %3786 = vst.msk [vmem:[#allocation2 + $0x58] sm:$0xff] %vm2236_vm2, %v3754_v2  ;;  %v3752_v31 = vadd.f32 %v3720_v25, %v3688_v39  ;;  %v3693_v51 = vadd.f32 %v6462_v63, %v3187_v8  ;;  %v3730_v8 = vld [vmem:[#allocation2 + $0x98] sm:$0xff]  ;;  %v3728_v63 = vld [vmem:[#allocation2 + $0x88] sm:$0xff] }
 0x219   : > { %v3600_v46 = vpop.f32.mrf.mxu1  ;;  %v9270_v27 = vpop.f32.mrf.mxu0 }
 0x21a   : > { %3784 = vst.msk [vmem:[#allocation2 + $0x48] sm:$0xff] %vm2236_vm2, %v3752_v31  ;;  %v3757_v21 = vadd.f32 %v3725_v26, %v3693_v51  ;;  %v3691_v15 = vadd.f32 %v3600_v46, %v3179_v3  ;;  %v3733_v51 = vld [vmem:[#allocation2 + $0xb0] sm:$0xff] }
 0x21b   : > { %v6463_v29 = vpop.f32.mrf.mxu1  ;;  %v9278_v9 = vpop.f32.mrf.mxu0 }
 0x21c   : > { %3789 = vst.msk [vmem:[#allocation2 + $0x70] sm:$0xff] %vm2236_vm2, %v3757_v21  ;;  %v3755_v54 = vadd.f32 %v3723_v41, %v3691_v15  ;;  %v3694_v44 = vadd.f32 %v6463_v29, %v3190_v19  ;;  %v3731_v21 = vld [vmem:[#allocation2 + $0xa0] sm:$0xff]  ;;  %v3734_v29 = vld [vmem:[#allocation2 + $0xb8] sm:$0xff] }
 0x21d   : > { %v3603_v18 = vpop.f32.mrf.mxu1  ;;  %v9285_v62 = vpop.f32.mrf.mxu0 }
 0x21e   : > { %3787 = vst.msk [vmem:[#allocation2 + $0x60] sm:$0xff] %vm2236_vm2, %v3755_v54  ;;  %v3758_v47 = vadd.f32 %v3726_v58, %v3694_v44  ;;  %v3692_v37 = vadd.f32 %v3603_v18, %v3182_v49  ;;  %v3732_v44 = vld [vmem:[#allocation2 + $0xa8] sm:$0xff]  ;;  %v3235_v58 = vadd.f32 %v9138_v52, %v9164_v33  ;;  %v3735_v52 = vld [vmem:[#allocation2 + $0xc0] sm:$0xff] }
 0x21f   : > { %v6466_v56 = vpop.f32.mrf.mxu1 }
 0x220   : > { %3790 = vst.msk [vmem:[#allocation2 + $0x78] sm:$0xff] %vm2236_vm2, %v3758_v47  ;;  %v3756_v7 = vadd.f32 %v3724_v59, %v3692_v37  ;;  %v3697_v10 = vadd.f32 %v6466_v56, %v3203_v60  ;;  %v3227_v60 = vadd.f32 %v9850_v20, %v9168_v14  ;;  %v3737_v59 = vld [vmem:[#allocation2 + $0xd0] sm:$0xff] }
 0x221   : > { %v3616_v12 = vpop.f32.mrf.mxu1 }
 0x222   : > { %3788 = vst.msk [vmem:[#allocation2 + $0x68] sm:$0xff] %vm2236_vm2, %v3756_v7  ;;  %v3761_v53 = vadd.f32 %v3729_v11, %v3697_v10  ;;  %v3695_v38 = vadd.f32 %v3616_v12, %v3195_v57  ;;  %v9851_v57 = vld [vmem:[#allocation23_spill] sm:$0xff]  ;;  %v9852_v7 = vld [vmem:[#allocation17_spill] sm:$0xff] }
 0x223   : > { %v6467_v1 = vpop.f32.mrf.mxu1  ;;  %v3238_v10 = vadd.f32 %v9852_v7, %v9851_v57 }
 0x224   : > { %3793 = vst.msk [vmem:[#allocation2 + $0x90] sm:$0xff] %vm2236_vm2, %v3761_v53  ;;  %v3759_v16 = vadd.f32 %v3727_v34, %v3695_v38  ;;  %v3698_v28 = vadd.f32 %v6467_v1, %v3206_v48  ;;  %v9291_v54 = vpop.f32.mrf.mxu0  ;;  %v9853_v48 = vld [vmem:[#allocation21_spill] sm:$0xff]  ;;  %v9854_v53 = vld [vmem:[#allocation16_spill] sm:$0xff] }
 0x225   : > { %v3619_v2 = vpop.f32.mrf.mxu1  ;;  %v3230_v38 = vadd.f32 %v9854_v53, %v9853_v48 }
 0x226   : > { %3791 = vst.msk [vmem:[#allocation2 + $0x80] sm:$0xff] %vm2236_vm2, %v3759_v16  ;;  %v3762_v39 = vadd.f32 %v3730_v8, %v3698_v28  ;;  %v3696_v25 = vadd.f32 %v3619_v2, %v3198_v4  ;;  %v9299_v47 = vpop.f32.mrf.mxu0  ;;  %v3738_v4 = vld [vmem:[#allocation2 + $0xd8] sm:$0xff]  ;;  %v9855_v2 = vld [vmem:[#allocation34_spill] sm:$0xff] }
 0x227   : > { %v6470_v3 = vpop.f32.mrf.mxu1 }
 0x228   : > { %3794 = vst.msk [vmem:[#allocation2 + $0x98] sm:$0xff] %vm2236_vm2, %v3762_v39  ;;  %v3760_v0 = vadd.f32 %v3728_v63, %v3696_v25  ;;  %v3701_v31 = vadd.f32 %v6470_v3, %v3219_v24  ;;  %v9306_v34 = vpop.f32.mrf.mxu0  ;;  %v9856_v24 = vld [vmem:[#allocation26_spill] sm:$0xff]  ;;  %v3736_v25 = vld [vmem:[#allocation2 + $0xc8] sm:$0xff] }
 0x229   : > { %v3632_v26 = vpop.f32.mrf.mxu1  ;;  %v3251_v39 = vadd.f32 %v9856_v24, %v9855_v2 }
 0x22a   : > { %3792 = vst.msk [vmem:[#allocation2 + $0x88] sm:$0xff] %vm2236_vm2, %v3760_v0  ;;  %v3765_v46 = vadd.f32 %v3733_v51, %v3701_v31  ;;  %v3699_v19 = vadd.f32 %v3632_v26, %v3211_v50  ;;  %v9312_v63 = vpop.f32.mrf.mxu0  ;;  %v9857_v0 = vld [vmem:[#allocation37_spill] sm:$0xff]  ;;  %v9858_v31 = vld [vmem:[#allocation8_spill] sm:$0xff] }
 0x22b   : > { %v6471_v15 = vpop.f32.mrf.mxu1  ;;  %v3243_v51 = vadd.f32 %v9858_v31, %v9857_v0 }
 0x22c   : > { %3797 = vst.msk [vmem:[#allocation2 + $0xb0] sm:$0xff] %vm2236_vm2, %v3765_v46  ;;  %v3763_v17 = vadd.f32 %v3731_v21, %v3699_v19  ;;  %v3702_v41 = vadd.f32 %v6471_v15, %v3222_v6  ;;  %v3741_v6 = vld [vmem:[#allocation2 + $0xf0] sm:$0xff]  ;;  %v9859_v19 = vld [vmem:[#allocation29_spill] sm:$0xff]  ;;  %v9860_v21 = vld [vmem:[#allocation7_spill] sm:$0xff] }
 0x22d   : > { %v3635_v49 = vpop.f32.mrf.mxu1  ;;  %v3254_v15 = vadd.f32 %v9860_v21, %v9859_v19 }
 0x22e   : > { %3795 = vst.msk [vmem:[#allocation2 + $0xa0] sm:$0xff] %vm2236_vm2, %v3763_v17  ;;  %v3766_v22 = vadd.f32 %v3734_v29, %v3702_v41  ;;  %v3700_v5 = vadd.f32 %v3635_v49, %v3214_v30  ;;  %v3739_v29 = vld [vmem:[#allocation2 + $0xe0] sm:$0xff] }
 0x230   : > { %3798 = vst.msk [vmem:[#allocation2 + $0xb8] sm:$0xff] %vm2236_vm2, %v3766_v22  ;;  %v3764_v18 = vadd.f32 %v3732_v44, %v3700_v5  ;;  %v6474_v13 = vpop.f32.mrf.mxu1  ;;  %v9320_v41 = vpop.f32.mrf.mxu0  ;;  %v9861_v22 = vld [vmem:[#allocation32_spill] sm:$0xff]  ;;  %v9862_v5 = vld [vmem:[#allocation30_spill] sm:$0xff] }
 0x231   : > { %v3705_v37 = vadd.f32 %v6474_v13, %v3235_v58  ;;  %v3246_v44 = vadd.f32 %v9862_v5, %v9861_v22  ;;  %v3742_v13 = vld [vmem:[#allocation2 + $0xf8] sm:$0xff] }
 0x232   : > { %3796 = vst.msk [vmem:[#allocation2 + $0xa8] sm:$0xff] %vm2236_vm2, %v3764_v18  ;;  %v3648_v56 = vpop.f32.mrf.mxu1 }
 0x233   : > { %v3769_v11 = vadd.f32 %v3737_v59, %v3705_v37  ;;  %v3703_v12 = vadd.f32 %v3648_v56, %v3227_v60  ;;  %v9326_v59 = vpop.f32.mrf.mxu0  ;;  %v3740_v56 = vld [vmem:[#allocation2 + $0xe8] sm:$0xff] }
 0x234   : > { %v6475_v33 = vpop.f32.mrf.mxu1 }
 0x235   : > { %3801 = vst.msk [vmem:[#allocation2 + $0xd0] sm:$0xff] %vm2236_vm2, %v3769_v11  ;;  %v3767_v14 = vadd.f32 %v3735_v52, %v3703_v12  ;;  %v3706_v1 = vadd.f32 %v6475_v33, %v3238_v10  ;;  %v9330_v11 = vpop.f32.mrf.mxu0 }
 0x236   : > { %v3651_v16 = vpop.f32.mrf.mxu1 }
 0x237   : > { %3799 = vst.msk [vmem:[#allocation2 + $0xc0] sm:$0xff] %vm2236_vm2, %v3767_v14  ;;  %v3770_v28 = vadd.f32 %v3738_v4, %v3706_v1  ;;  %v3704_v8 = vadd.f32 %v3651_v16, %v3230_v38  ;;  %v9332_v33 = vpop.f32.mrf.mxu0 }
 0x239   : > { %3802 = vst.msk [vmem:[#allocation2 + $0xd8] sm:$0xff] %vm2236_vm2, %v3770_v28  ;;  %v3768_v3 = vadd.f32 %v3736_v25, %v3704_v8  ;;  %v6478_v50 = vpop.f32.mrf.mxu1  ;;  %v9863_v8 = vld [vmem:[#allocation22_spill] sm:$0xff]  ;;  %v9864_v25 = vld [vmem:[#allocation19_spill] sm:$0xff] }
 0x23a   : > { %v3709_v26 = vadd.f32 %v6478_v50, %v3251_v39 }
 0x23b   : > { %3800 = vst.msk [vmem:[#allocation2 + $0xc8] sm:$0xff] %vm2236_vm2, %v3768_v3  ;;  %v3664_v46 = vpop.f32.mrf.mxu1 }
 0x23c   : > { %v3773_v30 = vadd.f32 %v3741_v6, %v3709_v26  ;;  %v3707_v17 = vadd.f32 %v3664_v46, %v3243_v51  ;;  %v9865_v51 = vld [vmem:[#allocation28_spill] sm:$0xff]  ;;  %v5252_v6 = vld [vmem:[#allocation2 + $0x10] sm:$0xff] }
 0x23d   : > { %v6479_v49 = vpop.f32.mrf.mxu1 }
 0x23e   : > { %3805 = vst.msk [vmem:[#allocation2 + $0xf0] sm:$0xff] %vm2236_vm2, %v3773_v30  ;;  %v3771_v58 = vadd.f32 %v3739_v29, %v3707_v17  ;;  %v3710_v18 = vadd.f32 %v6479_v49, %v3254_v15  ;;  %v9866_v30 = vld [vmem:[#allocation25_spill] sm:$0xff]  ;;  %v5250_v29 = vld [vmem:[#allocation2] sm:$0xff] }
 0x23f   : > { %v3667_v20 = vpop.f32.mrf.mxu1 }
 0x240   : > { %3803 = vst.msk [vmem:[#allocation2 + $0xe0] sm:$0xff] %vm2236_vm2, %v3771_v58  ;;  %v3774_v60 = vadd.f32 %v3742_v13, %v3710_v18  ;;  %v3708_v37 = vadd.f32 %v3667_v20, %v3246_v44  ;;  %v9867_v58 = vld [vmem:[#allocation33_spill] sm:$0xff]  ;;  %v5253_v13 = vld [vmem:[#allocation2 + $0x18] sm:$0xff] }
 0x241   : > { %v6518_v57 = vpop.f32.mrf.mxu1 }
 0x242   : > { %3806 = vst.msk [vmem:[#allocation2 + $0xf8] sm:$0xff] %vm2236_vm2, %v3774_v60  ;;  %v3772_v7 = vadd.f32 %v3740_v56, %v3708_v37  ;;  %v4678_v2 = vadd.f32 %v6518_v57, %v9863_v8  ;;  %v9868_v57 = vld [vmem:[#allocation36_spill] sm:$0xff] }
 0x243   : > { %v4669_v10 = vpop.f32.mrf.mxu1 }
 0x244   : > { %3804 = vst.msk [vmem:[#allocation2 + $0xe8] sm:$0xff] %vm2236_vm2, %v3772_v7  ;;  %v4670_v3 = vadd.f32 %v4669_v10, %v9864_v25  ;;  %v5251_v10 = vld [vmem:[#allocation2 + $0x8] sm:$0xff]  ;;  %v9366_v25 = vld [vmem:[%s9624_s2] ss:$0 sm:$0xff] }
 0x245   : > { %v6519_v12 = vpop.f32.mrf.mxu1 }
 0x246   : > { %v4681_v26 = vadd.f32 %v6519_v12, %v9865_v51 }
 0x247   : > { %v4672_v52 = vpop.f32.mrf.mxu1 }
 0x248   : > { %v4673_v17 = vadd.f32 %v4672_v52, %v9866_v30 }
 0x249   : > { %v6522_v48 = vpop.f32.mrf.mxu1 }
 0x24a   : > { %v4694_v18 = vadd.f32 %v6522_v48, %v9867_v58 }
 0x24b   : > { %v4685_v53 = vpop.f32.mrf.mxu1 }
 0x24c   : > { %v4686_v7 = vadd.f32 %v4685_v53, %v9868_v57  ;;  %v5255_v57 = vld [vmem:[#allocation2 + $0x28] sm:$0xff] }
 0x24d   : > { %v9334_v38 = vpop.f32.mrf.mxu0  ;;  %v6523_v14 = vpop.f32.mrf.mxu1 }
 0x24e   : > { %v4697_v48 = vadd.f32 %v6523_v14, %v9196_v45 }
 0x24f   : > { %v9336_v1 = vpop.f32.mrf.mxu0  ;;  %v4688_v4 = vpop.f32.mrf.mxu1 }
 0x251   : > { %v9338_v16 = vpop.f32.mrf.mxu0  ;;  %v6526_v28 = vpop.f32.mrf.mxu1 }
 0x253   : > { %v9341_v24 = vpop.f32.mrf.mxu0  ;;  %v4701_v39 = vpop.f32.mrf.mxu1 }
 0x255   : > { %v6552_v50 = vpop.f32.mrf.mxu0  ;;  %v9344_v0 = vpop.f32.mrf.mxu1 }
 0x256   : > { %v5220_v31 = vadd.f32 %v6552_v50, %v4678_v2 }
 0x257   : > { %v5091_v46 = vpop.f32.mrf.mxu0  ;;  %v9347_v19 = vpop.f32.mrf.mxu1 }
 0x258   : > { %v5284_v21 = vadd.f32 %v5252_v6, %v5220_v31  ;;  %v5218_v15 = vadd.f32 %v5091_v46, %v4670_v3  ;;  %v5256_v3 = vld [vmem:[#allocation2 + $0x30] sm:$0xff] }
 0x259   : > { %v6553_v49 = vpop.f32.mrf.mxu0  ;;  %v9350_v22 = vpop.f32.mrf.mxu1 }
 0x25a   : > { %5316 = vst.msk [vmem:[#allocation2 + $0x10] sm:$0xff] %vm2236_vm2, %v5284_v21  ;;  %v5282_v5 = vadd.f32 %v5250_v29, %v5218_v15  ;;  %v5221_v44 = vadd.f32 %v6553_v49, %v4681_v26  ;;  %v9869_v26 = vld [vmem:[#allocation38_spill] sm:$0xff]  ;;  %v5254_v21 = vld [vmem:[#allocation2 + $0x20] sm:$0xff]  ;;  %v5257_v49 = vld [vmem:[#allocation2 + $0x38] sm:$0xff] }
 0x25b   : > { %v5094_v20 = vpop.f32.mrf.mxu0  ;;  %v9354_v60 = vpop.f32.mrf.mxu1  ;;  %v4689_v6 = vadd.f32 %v4688_v4, %v9869_v26  ;;  %v4702_v4 = vadd.f32 %v4701_v39, %v9209_v61 }
 0x25c   : > { %5314 = vst.msk [vmem:[#allocation2] sm:$0xff] %vm2236_vm2, %v5282_v5  ;;  %v5285_v37 = vadd.f32 %v5253_v13, %v5221_v44  ;;  %v5219_v56 = vadd.f32 %v5094_v20, %v4673_v17  ;;  %v4710_v44 = vadd.f32 %v6526_v28, %v9204_v40 }
 0x25d   : > { %v6556_v12 = vpop.f32.mrf.mxu0  ;;  %v9358_v52 = vpop.f32.mrf.mxu1 }
 0x25e   : > { %5317 = vst.msk [vmem:[#allocation2 + $0x18] sm:$0xff] %vm2236_vm2, %v5285_v37  ;;  %v5283_v8 = vadd.f32 %v5251_v10, %v5219_v56  ;;  %v5224_v2 = vadd.f32 %v6556_v12, %v4694_v18 }
 0x25f   : > { %v5107_v50 = vpop.f32.mrf.mxu0  ;;  %v9368_v53 = vpop.f32.mrf.mxu1 }
 0x260   : > { %5315 = vst.msk [vmem:[#allocation2 + $0x8] sm:$0xff] %vm2236_vm2, %v5283_v8  ;;  %v5288_v31 = vadd.f32 %v5256_v3, %v5224_v2  ;;  %v5222_v51 = vadd.f32 %v5107_v50, %v4686_v7  ;;  %v4705_v3 = vadd.f32 %v9347_v19, %v9222_v32  ;;  %v5258_v32 = vld [vmem:[#allocation2 + $0x40] sm:$0xff] }
 0x261   : > { %v5348_v46 = vld [vmem:[#allocation2 + $0x10] sm:$0xff]  ;;  %v6557_v15 = vpop.f32.mrf.mxu0  ;;  %v9372_v45 = vpop.f32.mrf.mxu1 }
 0x262   : > { %v5386_v14 = vadd.f32 %v9366_v25, %v5348_v46  ;;  %5320 = vst.msk [vmem:[#allocation2 + $0x30] sm:$0xff] %vm2236_vm2, %v5288_v31  ;;  %v5286_v30 = vadd.f32 %v5254_v21, %v5222_v51  ;;  %v5225_v17 = vadd.f32 %v6557_v15, %v4697_v48  ;;  %v4713_v48 = vadd.f32 %v9344_v0, %v9214_v36 }
 0x263   : > { %v5346_v29 = vld [vmem:[#allocation2] sm:$0xff]  ;;  %v5110_v5 = vpop.f32.mrf.mxu0  ;;  %v9382_v58 = vpop.f32.mrf.mxu1 }
 0x264   : > { %v5418_v18 = vmax.f32 %v5386_v14, 0.0  ;;  %v5384_v13 = vadd.f32 %v9366_v25, %v5346_v29  ;;  %5318 = vst.msk [vmem:[#allocation2 + $0x20] sm:$0xff] %vm2236_vm2, %v5286_v30  ;;  %v5289_v20 = vadd.f32 %v5257_v49, %v5225_v17  ;;  %v5223_v37 = vadd.f32 %v5110_v5, %v4689_v6  ;;  %v5260_v6 = vld [vmem:[#allocation2 + $0x50] sm:$0xff] }
 0x265   : > { %v5349_v56 = vld [vmem:[#allocation2 + $0x18] sm:$0xff]  ;;  %v6560_v7 = vpop.f32.mrf.mxu0  ;;  %v9386_v10 = vpop.f32.mrf.mxu1 }
 0x266   : > { %v6092_v12 = vpack.c.bf16 %v5418_v18, %v5418_v18  ;;  %v5416_v40 = vmax.f32 %v5384_v13, 0.0  ;;  %v5387_v61 = vadd.f32 %v9366_v25, %v5349_v56  ;;  %5321 = vst.msk [vmem:[#allocation2 + $0x38] sm:$0xff] %vm2236_vm2, %v5289_v20  ;;  %v5287_v28 = vadd.f32 %v5255_v57, %v5223_v37  ;;  %v5261_v56 = vld [vmem:[#allocation2 + $0x58] sm:$0xff] }
 0x267   : > { %v5347_v39 = vld [vmem:[#allocation2 + $0x8] sm:$0xff]  ;;  %v5228_v8 = vadd.f32 %v6560_v7, %v4710_v44  ;;  %v5123_v2 = vpop.f32.mrf.mxu0  ;;  %v9394_v50 = vpop.f32.mrf.mxu1  ;;  %v4726_v44 = vadd.f32 %v9350_v22, %v9230_v23 }
 0x268   : > { %5579 = vst.msk [vmem:[%s9397_s9 + $0x8] sm:$0xf] %vm5576_vm3, %v6092_v12  ;;  %v6090_v31 = vpack.c.bf16 %v5416_v40, %v5416_v40  ;;  %v5419_v51 = vmax.f32 %v5387_v61, 0.0  ;;  %v5385_v26 = vadd.f32 %v9366_v25, %v5347_v39  ;;  %v5226_v46 = vadd.f32 %v5123_v2, %v4702_v4  ;;  %v5259_v23 = vld [vmem:[#allocation2 + $0x48] sm:$0xff] }
 0x269   : > { %5319 = vst.msk [vmem:[#allocation2 + $0x28] sm:$0xff] %vm2236_vm2, %v5287_v28  ;;  %v5352_v36 = vld [vmem:[#allocation2 + $0x30] sm:$0xff]  ;;  %v5292_v0 = vadd.f32 %v5260_v6, %v5228_v8  ;;  %v6561_v19 = vpop.f32.mrf.mxu0  ;;  %v9403_v21 = vpop.f32.mrf.mxu1  ;;  %v4718_v4 = vadd.f32 %v9354_v60, %v9238_v55  ;;  %v4729_v55 = vadd.f32 %v9358_v52, %v9246_v43 }
 0x26a   : > { %5577 = vst.msk [vmem:[%s9397_s9] sm:$0xf] %vm5576_vm3, %v6090_v31  ;;  %v6093_v15 = vpack.c.bf16 %v5419_v51, %v5419_v51  ;;  %v5417_v14 = vmax.f32 %v5385_v26, 0.0  ;;  %v5390_v30 = vadd.f32 %v9366_v25, %v5352_v36  ;;  %v5290_v17 = vadd.f32 %v5258_v32, %v5226_v46  ;;  %v5264_v26 = vld [vmem:[#allocation2 + $0x70] sm:$0xff]  ;;  %v5262_v36 = vld [vmem:[#allocation2 + $0x60] sm:$0xff] }
 0x26b   : > { %v5350_v29 = vld [vmem:[#allocation2 + $0x20] sm:$0xff]  ;;  %5324 = vst.msk [vmem:[#allocation2 + $0x50] sm:$0xff] %vm2236_vm2, %v5292_v0  ;;  %v5229_v49 = vadd.f32 %v6561_v19, %v4713_v48  ;;  %v5126_v5 = vpop.f32.mrf.mxu0  ;;  %v9413_v18 = vpop.f32.mrf.mxu1  ;;  %v4742_v32 = vadd.f32 %v9372_v45, %v9262_v42  ;;  %v4734_v42 = vadd.f32 %v9382_v58, %v9270_v27 }
 0x26c   : > { %5580 = vst.msk [vmem:[%s9397_s9 + $0xc] sm:$0xf] %vm5576_vm3, %v6093_v15  ;;  %v6091_v13 = vpack.c.bf16 %v5417_v14, %v5417_v14  ;;  %v5422_v20 = vmax.f32 %v5390_v30, 0.0  ;;  %v5388_v37 = vadd.f32 %v9366_v25, %v5350_v29  ;;  %v5227_v57 = vadd.f32 %v5126_v5, %v4705_v3 }
 0x26d   : > { %5322 = vst.msk [vmem:[#allocation2 + $0x40] sm:$0xff] %vm2236_vm2, %v5290_v17  ;;  %v5353_v7 = vld [vmem:[#allocation2 + $0x38] sm:$0xff]  ;;  %v5293_v12 = vadd.f32 %v5261_v56, %v5229_v49  ;;  %v6564_v22 = vpop.f32.mrf.mxu0  ;;  %v9421_v60 = vpop.f32.mrf.mxu1  ;;  %v4721_v3 = vadd.f32 %v9368_v53, %v9254_v35 }
 0x26e   : > { %5578 = vst.msk [vmem:[%s9397_s9 + $0x4] sm:$0xf] %vm5576_vm3, %v6091_v13  ;;  %v6096_v40 = vpack.c.bf16 %v5422_v20, %v5422_v20  ;;  %v5420_v61 = vmax.f32 %v5388_v37, 0.0  ;;  %v5391_v28 = vadd.f32 %v9366_v25, %v5353_v7  ;;  %v5291_v39 = vadd.f32 %v5259_v23, %v5227_v57  ;;  %v5265_v49 = vld [vmem:[#allocation2 + $0x78] sm:$0xff]  ;;  %v5263_v37 = vld [vmem:[#allocation2 + $0x68] sm:$0xff] }
 0x26f   : > { %5325 = vst.msk [vmem:[#allocation2 + $0x58] sm:$0xff] %vm2236_vm2, %v5293_v12  ;;  %v5232_v2 = vadd.f32 %v6564_v22, %v4726_v44  ;;  %v5139_v48 = vpop.f32.mrf.mxu0  ;;  %v9429_v31 = vpop.f32.mrf.mxu1  ;;  %v4745_v23 = vadd.f32 %v9386_v10, %v9278_v9  ;;  %v5266_v10 = vld [vmem:[#allocation2 + $0x80] sm:$0xff] }
 0x270   : > { %v5351_v8 = vld [vmem:[#allocation2 + $0x28] sm:$0xff]  ;;  %5583 = vst.msk [vmem:[%s9397_s9 + $0x18] sm:$0xf] %vm5576_vm3, %v6096_v40  ;;  %v6094_v43 = vpack.c.bf16 %v5420_v61, %v5420_v61  ;;  %v5423_v52 = vmax.f32 %v5391_v28, 0.0  ;;  %v5230_v6 = vadd.f32 %v5139_v48, %v4718_v4  ;;  %v5268_v61 = vld [vmem:[#allocation2 + $0x90] sm:$0xff] }
 0x271   : > { %v5389_v51 = vadd.f32 %v9366_v25, %v5351_v8  ;;  %5323 = vst.msk [vmem:[#allocation2 + $0x48] sm:$0xff] %vm2236_vm2, %v5291_v39  ;;  %v5296_v46 = vadd.f32 %v5264_v26, %v5232_v2  ;;  %v6565_v0 = vpop.f32.mrf.mxu0  ;;  %v9437_v35 = vpop.f32.mrf.mxu1  ;;  %v4737_v39 = vadd.f32 %v9394_v50, %v9285_v62 }
 0x272   : > { %5581 = vst.msk [vmem:[%s9397_s9 + $0x10] sm:$0xf] %vm5576_vm3, %v6094_v43  ;;  %v6097_v53 = vpack.c.bf16 %v5423_v52, %v5423_v52  ;;  %v5356_v15 = vld [vmem:[#allocation2 + $0x50] sm:$0xff]  ;;  %v5294_v14 = vadd.f32 %v5262_v36, %v5230_v6  ;;  %v5233_v30 = vadd.f32 %v6565_v0, %v4729_v55  ;;  %v4758_v6 = vadd.f32 %v9403_v21, %v9291_v54 }
 0x273   : > { %v5421_v19 = vmax.f32 %v5389_v51, 0.0  ;;  %v5394_v17 = vadd.f32 %v9366_v25, %v5356_v15  ;;  %5328 = vst.msk [vmem:[#allocation2 + $0x70] sm:$0xff] %vm2236_vm2, %v5296_v46  ;;  %v5142_v5 = vpop.f32.mrf.mxu0  ;;  %v9449_v57 = vpop.f32.mrf.mxu1  ;;  %v4750_v21 = vadd.f32 %v9413_v18, %v9299_v47 }
 0x274   : > { %v5354_v29 = vld [vmem:[#allocation2 + $0x40] sm:$0xff]  ;;  %5584 = vst.msk [vmem:[%s9397_s9 + $0x1c] sm:$0xf] %vm5576_vm3, %v6097_v53  ;;  %v5297_v4 = vadd.f32 %v5265_v49, %v5233_v30  ;;  %v5231_v13 = vadd.f32 %v5142_v5, %v4721_v3  ;;  %v5267_v49 = vld [vmem:[#allocation2 + $0x88] sm:$0xff]  ;;  %v4761_v5 = vadd.f32 %v9421_v60, %v9306_v34 }
 0x275   : > { %v6095_v45 = vpack.c.bf16 %v5421_v19, %v5421_v19  ;;  %v5392_v44 = vadd.f32 %v9366_v25, %v5354_v29  ;;  %5326 = vst.msk [vmem:[#allocation2 + $0x60] sm:$0xff] %vm2236_vm2, %v5294_v14  ;;  %v5426_v20 = vmax.f32 %v5394_v17, 0.0  ;;  %v6568_v56 = vpop.f32.mrf.mxu0  ;;  %v9463_v52 = vpop.f32.mrf.mxu1 }
 0x276   : > { %v5357_v12 = vld [vmem:[#allocation2 + $0x58] sm:$0xff]  ;;  %5329 = vst.msk [vmem:[#allocation2 + $0x78] sm:$0xff] %vm2236_vm2, %v5297_v4  ;;  %v5295_v27 = vadd.f32 %v5263_v37, %v5231_v13  ;;  %v5236_v58 = vadd.f32 %v6568_v56, %v4742_v32  ;;  %v5272_v56 = vld [vmem:[#allocation2 + $0xb0] sm:$0xff] }
 0x277   : > { %5582 = vst.msk [vmem:[%s9397_s9 + $0x14] sm:$0xf] %vm5576_vm3, %v6095_v45  ;;  %v5424_v7 = vmax.f32 %v5392_v44, 0.0  ;;  %v6100_v22 = vpack.c.bf16 %v5426_v20, %v5426_v20  ;;  %v5395_v55 = vadd.f32 %v9366_v25, %v5357_v12  ;;  %v5155_v28 = vpop.f32.mrf.mxu0  ;;  %v5269_v32 = vld [vmem:[#allocation2 + $0x98] sm:$0xff] }
 0x278   : > { %v5355_v40 = vld [vmem:[#allocation2 + $0x48] sm:$0xff]  ;;  %5327 = vst.msk [vmem:[#allocation2 + $0x68] sm:$0xff] %vm2236_vm2, %v5295_v27  ;;  %v5300_v48 = vadd.f32 %v5268_v61, %v5236_v58  ;;  %v5234_v3 = vadd.f32 %v5155_v28, %v4734_v42  ;;  %v4768_v42 = vpop.f32.mrf.mxu1 }
 0x279   : > { %v6098_v8 = vpack.c.bf16 %v5424_v7, %v5424_v7  ;;  %v5393_v2 = vadd.f32 %v9366_v25, %v5355_v40  ;;  %5587 = vst.msk [vmem:[%s9397_s9 + $0x28] sm:$0xf] %vm5576_vm3, %v6100_v22  ;;  %v5427_v9 = vmax.f32 %v5395_v55, 0.0  ;;  %v6569_v43 = vpop.f32.mrf.mxu0  ;;  %v4774_v22 = vadd.f32 %v9437_v35, %v9320_v41 }
 0x27a   : > { %v5360_v26 = vld [vmem:[#allocation2 + $0x70] sm:$0xff]  ;;  %5332 = vst.msk [vmem:[#allocation2 + $0x90] sm:$0xff] %vm2236_vm2, %v5300_v48  ;;  %v5298_v62 = vadd.f32 %v5266_v10, %v5234_v3  ;;  %v5237_v50 = vadd.f32 %v6569_v43, %v4745_v23  ;;  %v4753_v23 = vadd.f32 %v9429_v31, %v9312_v63  ;;  %v6546_v55 = vpop.f32.mrf.mxu1  ;;  %v5273_v3 = vld [vmem:[#allocation2 + $0xb8] sm:$0xff] }
 0x27b   : > { %5585 = vst.msk [vmem:[%s9397_s9 + $0x20] sm:$0xf] %vm5576_vm3, %v6098_v8  ;;  %v5425_v51 = vmax.f32 %v5393_v2, 0.0  ;;  %v6101_v46 = vpack.c.bf16 %v5427_v9, %v5427_v9  ;;  %v5398_v36 = vadd.f32 %v9366_v25, %v5360_v26  ;;  %v5158_v53 = vpop.f32.mrf.mxu0  ;;  %v4766_v26 = vadd.f32 %v9449_v57, %v9326_v59 }
 0x27c   : > { %v5358_v0 = vld [vmem:[#allocation2 + $0x60] sm:$0xff]  ;;  %5330 = vst.msk [vmem:[#allocation2 + $0x80] sm:$0xff] %vm2236_vm2, %v5298_v62  ;;  %v5301_v14 = vadd.f32 %v5269_v32, %v5237_v50  ;;  %v5235_v30 = vadd.f32 %v5158_v53, %v4737_v39  ;;  %v4777_v62 = vadd.f32 %v9463_v52, %v9330_v11  ;;  %v4781_v50 = vpop.f32.mrf.mxu1  ;;  %v4769_v59 = vadd.f32 %v4768_v42, %v9332_v33 }
 0x27d   : > { %v6099_v19 = vpack.c.bf16 %v5425_v51, %v5425_v51  ;;  %v5396_v15 = vadd.f32 %v9366_v25, %v5358_v0  ;;  %5588 = vst.msk [vmem:[%s9397_s9 + $0x2c] sm:$0xf] %vm5576_vm3, %v6101_v46  ;;  %v5430_v17 = vmax.f32 %v5398_v36, 0.0  ;;  %v5361_v29 = vld [vmem:[#allocation2 + $0x78] sm:$0xff]  ;;  %v6572_v54 = vpop.f32.mrf.mxu0  ;;  %v5270_v39 = vld [vmem:[#allocation2 + $0xa0] sm:$0xff]  ;;  %v5271_v0 = vld [vmem:[#allocation2 + $0xa8] sm:$0xff] }
 0x27e   : > { %v5399_v44 = vadd.f32 %v9366_v25, %v5361_v29  ;;  %5333 = vst.msk [vmem:[#allocation2 + $0x98] sm:$0xff] %vm2236_vm2, %v5301_v14  ;;  %v5299_v4 = vadd.f32 %v5267_v49, %v5235_v30  ;;  %v5240_v13 = vadd.f32 %v6572_v54, %v4758_v6  ;;  %v4790_v54 = vadd.f32 %v6546_v55, %v9334_v38 }
 0x27f   : > { %5586 = vst.msk [vmem:[%s9397_s9 + $0x24] sm:$0xf] %vm5576_vm3, %v6099_v19  ;;  %v5428_v45 = vmax.f32 %v5396_v15, 0.0  ;;  %v6104_v20 = vpack.c.bf16 %v5430_v17, %v5430_v17  ;;  %v5359_v37 = vld [vmem:[#allocation2 + $0x68] sm:$0xff]  ;;  %v5171_v7 = vpop.f32.mrf.mxu0  ;;  %v5276_v15 = vld [vmem:[#allocation2 + $0xd0] sm:$0xff] }
 0x280   : > { %v5431_v18 = vmax.f32 %v5399_v44, 0.0  ;;  %v5397_v34 = vadd.f32 %v9366_v25, %v5359_v37  ;;  %5331 = vst.msk [vmem:[#allocation2 + $0x88] sm:$0xff] %vm2236_vm2, %v5299_v4  ;;  %v5304_v60 = vadd.f32 %v5272_v56, %v5240_v13  ;;  %v5238_v27 = vadd.f32 %v5171_v7, %v4750_v21  ;;  %v6547_v21 = vpop.f32.mrf.mxu1  ;;  %v5277_v13 = vld [vmem:[#allocation2 + $0xd8] sm:$0xff] }
 0x281   : > { %v6102_v47 = vpack.c.bf16 %v5428_v45, %v5428_v45  ;;  %5591 = vst.msk [vmem:[%s9397_s9 + $0x38] sm:$0xf] %vm5576_vm3, %v6104_v20  ;;  %v5364_v12 = vld [vmem:[#allocation2 + $0x90] sm:$0xff]  ;;  %v6573_v58 = vpop.f32.mrf.mxu0  ;;  %v5274_v45 = vld [vmem:[#allocation2 + $0xc0] sm:$0xff]  ;;  %v4782_v37 = vadd.f32 %v4781_v50, %v9336_v1  ;;  %v5281_v50 = vld [vmem:[#allocation2 + $0xf8] sm:$0xff] }
 0x282   : > { %v6105_v40 = vpack.c.bf16 %v5431_v18, %v5431_v18  ;;  %v5429_v61 = vmax.f32 %v5397_v34, 0.0  ;;  %v5402_v28 = vadd.f32 %v9366_v25, %v5364_v12  ;;  %5336 = vst.msk [vmem:[#allocation2 + $0xb0] sm:$0xff] %vm2236_vm2, %v5304_v60  ;;  %v5241_v8 = vadd.f32 %v6573_v58, %v4761_v5  ;;  %v5275_v12 = vld [vmem:[#allocation2 + $0xc8] sm:$0xff] }
 0x283   : > { %5589 = vst.msk [vmem:[%s9397_s9 + $0x30] sm:$0xf] %vm5576_vm3, %v6102_v47  ;;  %v5362_v2 = vld [vmem:[#allocation2 + $0x80] sm:$0xff]  ;;  %v5302_v48 = vadd.f32 %v5270_v39, %v5238_v27  ;;  %v5174_v9 = vpop.f32.mrf.mxu0  ;;  %v4793_v58 = vadd.f32 %v6547_v21, %v9338_v16 }
 0x284   : > { %5592 = vst.msk [vmem:[%s9397_s9 + $0x3c] sm:$0xf] %vm5576_vm3, %v6105_v40  ;;  %v6103_v63 = vpack.c.bf16 %v5429_v61, %v5429_v61  ;;  %v5434_v41 = vmax.f32 %v5402_v28, 0.0  ;;  %v5400_v31 = vadd.f32 %v9366_v25, %v5362_v2  ;;  %v5305_v35 = vadd.f32 %v5273_v3, %v5241_v8  ;;  %v5280_v28 = vld [vmem:[#allocation2 + $0xf0] sm:$0xff] }
 0x285   : > { %v5365_v10 = vld [vmem:[#allocation2 + $0x98] sm:$0xff]  ;;  %5334 = vst.msk [vmem:[#allocation2 + $0xa0] sm:$0xff] %vm2236_vm2, %v5302_v48  ;;  %v5239_v43 = vadd.f32 %v5174_v9, %v4753_v23  ;;  %v6576_v51 = vpop.f32.mrf.mxu0  ;;  %v4784_v23 = vpop.f32.mrf.mxu1 }
 0x286   : > { %5590 = vst.msk [vmem:[%s9397_s9 + $0x34] sm:$0xf] %vm5576_vm3, %v6103_v63  ;;  %v6108_v6 = vpack.c.bf16 %v5434_v41, %v5434_v41  ;;  %v5432_v46 = vmax.f32 %v5400_v31, 0.0  ;;  %v5403_v36 = vadd.f32 %v9366_v25, %v5365_v10  ;;  %v5244_v32 = vadd.f32 %v6576_v51, %v4774_v22  ;;  %v5278_v31 = vld [vmem:[#allocation2 + $0xe0] sm:$0xff] }
 0x287   : > { %5337 = vst.msk [vmem:[#allocation2 + $0xb8] sm:$0xff] %vm2236_vm2, %v5305_v35  ;;  %v5363_v53 = vld [vmem:[#allocation2 + $0x88] sm:$0xff]  ;;  %v5303_v19 = vadd.f32 %v5271_v0, %v5239_v43  ;;  %v5187_v14 = vpop.f32.mrf.mxu0  ;;  %v4785_v3 = vadd.f32 %v4784_v23, %v9341_v24 }
 0x288   : > { %5595 = vst.msk [vmem:[%s9397_s9 + $0x48] sm:$0xf] %vm5576_vm3, %v6108_v6  ;;  %v6106_v11 = vpack.c.bf16 %v5432_v46, %v5432_v46  ;;  %v5435_v57 = vmax.f32 %v5403_v36, 0.0  ;;  %v5401_v52 = vadd.f32 %v9366_v25, %v5363_v53  ;;  %v5308_v30 = vadd.f32 %v5276_v15, %v5244_v32  ;;  %v5279_v15 = vld [vmem:[#allocation2 + $0xe8] sm:$0xff] }
 0x289   : > { %v5368_v17 = vld [vmem:[#allocation2 + $0xb0] sm:$0xff]  ;;  %5335 = vst.msk [vmem:[#allocation2 + $0xa8] sm:$0xff] %vm2236_vm2, %v5303_v19  ;;  %v5242_v29 = vadd.f32 %v5187_v14, %v4766_v26  ;;  %v6577_v49 = vpop.f32.mrf.mxu0 }
 0x28a   : > { %5593 = vst.msk [vmem:[%s9397_s9 + $0x40] sm:$0xf] %vm5576_vm3, %v6106_v11  ;;  %v6109_v5 = vpack.c.bf16 %v5435_v57, %v5435_v57  ;;  %v5433_v33 = vmax.f32 %v5401_v52, 0.0  ;;  %v5406_v42 = vadd.f32 %v9366_v25, %v5368_v17  ;;  %v5245_v44 = vadd.f32 %v6577_v49, %v4777_v62 }
 0x28b   : > { %5340 = vst.msk [vmem:[#allocation2 + $0xd0] sm:$0xff] %vm2236_vm2, %v5308_v30  ;;  %v5306_v4 = vadd.f32 %v5274_v45, %v5242_v29  ;;  %v5190_v20 = vpop.f32.mrf.mxu0 }
 0x28c   : > { %5596 = vst.msk [vmem:[%s9397_s9 + $0x4c] sm:$0xf] %vm5576_vm3, %v6109_v5  ;;  %v6107_v38 = vpack.c.bf16 %v5433_v33, %v5433_v33  ;;  %v5438_v56 = vmax.f32 %v5406_v42, 0.0  ;;  %v5366_v7 = vld [vmem:[#allocation2 + $0xa0] sm:$0xff]  ;;  %v5309_v47 = vadd.f32 %v5277_v13, %v5245_v44  ;;  %v5243_v18 = vadd.f32 %v5190_v20, %v4769_v59 }
 0x28d   : > { %v5404_v34 = vadd.f32 %v9366_v25, %v5366_v7  ;;  %5338 = vst.msk [vmem:[#allocation2 + $0xc0] sm:$0xff] %vm2236_vm2, %v5306_v4  ;;  %v6580_v27 = vpop.f32.mrf.mxu0 }
 0x28e   : > { %v5369_v60 = vld [vmem:[#allocation2 + $0xb8] sm:$0xff]  ;;  %5594 = vst.msk [vmem:[%s9397_s9 + $0x44] sm:$0xf] %vm5576_vm3, %v6107_v38  ;;  %v6112_v1 = vpack.c.bf16 %v5438_v56, %v5438_v56  ;;  %v5307_v55 = vadd.f32 %v5275_v12, %v5243_v18  ;;  %v5248_v40 = vadd.f32 %v6580_v27, %v4790_v54 }
 0x28f   : > { %v5407_v22 = vadd.f32 %v9366_v25, %v5369_v60  ;;  %5341 = vst.msk [vmem:[#allocation2 + $0xd8] sm:$0xff] %vm2236_vm2, %v5309_v47  ;;  %v5436_v61 = vmax.f32 %v5404_v34, 0.0  ;;  %v5203_v39 = vpop.f32.mrf.mxu0 }
 0x290   : > { %5599 = vst.msk [vmem:[%s9397_s9 + $0x58] sm:$0xf] %vm5576_vm3, %v6112_v1  ;;  %v5367_v2 = vld [vmem:[#allocation2 + $0xa8] sm:$0xff]  ;;  %v5312_v16 = vadd.f32 %v5280_v28, %v5248_v40  ;;  %v5246_v48 = vadd.f32 %v5203_v39, %v4782_v37 }
 0x291   : > { %v5439_v8 = vmax.f32 %v5407_v22, 0.0  ;;  %5339 = vst.msk [vmem:[#allocation2 + $0xc8] sm:$0xff] %vm2236_vm2, %v5307_v55  ;;  %v6110_v9 = vpack.c.bf16 %v5436_v61, %v5436_v61  ;;  %v5405_v63 = vadd.f32 %v9366_v25, %v5367_v2  ;;  %v6581_v35 = vpop.f32.mrf.mxu0 }
 0x292   : > { %v5372_v41 = vld [vmem:[#allocation2 + $0xd0] sm:$0xff]  ;;  %5344 = vst.msk [vmem:[#allocation2 + $0xf0] sm:$0xff] %vm2236_vm2, %v5312_v16  ;;  %v5310_v51 = vadd.f32 %v5278_v31, %v5246_v48  ;;  %v5249_v26 = vadd.f32 %v6581_v35, %v4793_v58 }
 0x293   : > { %v6113_v10 = vpack.c.bf16 %v5439_v8, %v5439_v8  ;;  %v5410_v43 = vadd.f32 %v9366_v25, %v5372_v41  ;;  %5597 = vst.msk [vmem:[%s9397_s9 + $0x50] sm:$0xf] %vm5576_vm3, %v6110_v9  ;;  %v5437_v62 = vmax.f32 %v5405_v63, 0.0  ;;  %v5206_v6 = vpop.f32.mrf.mxu0 }
 0x294   : > { %v5370_v46 = vld [vmem:[#allocation2 + $0xc0] sm:$0xff]  ;;  %5342 = vst.msk [vmem:[#allocation2 + $0xe0] sm:$0xff] %vm2236_vm2, %v5310_v51  ;;  %v5313_v36 = vadd.f32 %v5281_v50, %v5249_v26  ;;  %v5247_v0 = vadd.f32 %v5206_v6, %v4785_v3 }
 0x295   : > { %5600 = vst.msk [vmem:[%s9397_s9 + $0x5c] sm:$0xf] %vm5576_vm3, %v6113_v10  ;;  %v5442_v24 = vmax.f32 %v5410_v43, 0.0  ;;  %v6111_v32 = vpack.c.bf16 %v5437_v62, %v5437_v62  ;;  %v5408_v53 = vadd.f32 %v9366_v25, %v5370_v46 }
 0x296   : > { %v5373_v19 = vld [vmem:[#allocation2 + $0xd8] sm:$0xff]  ;;  %5345 = vst.msk [vmem:[#allocation2 + $0xf8] sm:$0xff] %vm2236_vm2, %v5313_v36  ;;  %v5311_v11 = vadd.f32 %v5279_v15, %v5247_v0 }
 0x297   : > { %v6116_v14 = vpack.c.bf16 %v5442_v24, %v5442_v24  ;;  %v5411_v59 = vadd.f32 %v9366_v25, %v5373_v19  ;;  %5598 = vst.msk [vmem:[%s9397_s9 + $0x54] sm:$0xf] %vm5576_vm3, %v6111_v32  ;;  %v5440_v57 = vmax.f32 %v5408_v53, 0.0 }
 0x298   : > { %v5371_v52 = vld [vmem:[#allocation2 + $0xc8] sm:$0xff]  ;;  %5343 = vst.msk [vmem:[#allocation2 + $0xe8] sm:$0xff] %vm2236_vm2, %v5311_v11 }
 0x299   : > { %5603 = vst.msk [vmem:[%s9397_s9 + $0x68] sm:$0xf] %vm5576_vm3, %v6116_v14  ;;  %v5443_v30 = vmax.f32 %v5411_v59, 0.0  ;;  %v5409_v17 = vadd.f32 %v9366_v25, %v5371_v52  ;;  %v6114_v29 = vpack.c.bf16 %v5440_v57, %v5440_v57  ;;  %v5376_v49 = vld [vmem:[#allocation2 + $0xf0] sm:$0xff] }
 0x29a   : > { %v5414_v5 = vadd.f32 %v9366_v25, %v5376_v49 }
 0x29b   : > { %v6117_v54 = vpack.c.bf16 %v5443_v30, %v5443_v30  ;;  %v5441_v21 = vmax.f32 %v5409_v17, 0.0  ;;  %5601 = vst.msk [vmem:[%s9397_s9 + $0x60] sm:$0xf] %vm5576_vm3, %v6114_v29  ;;  %v5374_v33 = vld [vmem:[#allocation2 + $0xe0] sm:$0xff] }
 0x29c   : > { %v5446_v45 = vmax.f32 %v5414_v5, 0.0  ;;  %v5412_v44 = vadd.f32 %v9366_v25, %v5374_v33 }
 0x29d   : > { %5604 = vst.msk [vmem:[%s9397_s9 + $0x6c] sm:$0xf] %vm5576_vm3, %v6117_v54  ;;  %v6115_v42 = vpack.c.bf16 %v5441_v21, %v5441_v21  ;;  %v5377_v4 = vld [vmem:[#allocation2 + $0xf8] sm:$0xff] }
 0x29e   : > { %v6120_v13 = vpack.c.bf16 %v5446_v45, %v5446_v45  ;;  %v5444_v20 = vmax.f32 %v5412_v44, 0.0  ;;  %v5415_v37 = vadd.f32 %v9366_v25, %v5377_v4 }
 0x29f   : > { %5602 = vst.msk [vmem:[%s9397_s9 + $0x64] sm:$0xf] %vm5576_vm3, %v6115_v42  ;;  %v5375_v38 = vld [vmem:[#allocation2 + $0xe8] sm:$0xff] }
 0x2a0   : > { %5607 = vst.msk [vmem:[%s9397_s9 + $0x78] sm:$0xf] %vm5576_vm3, %v6120_v13  ;;  %v6118_v56 = vpack.c.bf16 %v5444_v20, %v5444_v20  ;;  %v5447_v7 = vmax.f32 %v5415_v37, 0.0  ;;  %v5413_v47 = vadd.f32 %v9366_v25, %v5375_v38 }
 0x2a2   : > { %5605 = vst.msk [vmem:[%s9397_s9 + $0x70] sm:$0xf] %vm5576_vm3, %v6118_v56  ;;  %v6121_v18 = vpack.c.bf16 %v5447_v7, %v5447_v7  ;;  %v5445_v34 = vmax.f32 %v5413_v47, 0.0 }
 0x2a4   : > { %5608 = vst.msk [vmem:[%s9397_s9 + $0x7c] sm:$0xf] %vm5576_vm3, %v6121_v18  ;;  %v6119_v60 = vpack.c.bf16 %v5445_v34, %v5445_v34 }
 0x2a6   : > { %5606 = vst.msk [vmem:[%s9397_s9 + $0x74] sm:$0xf] %vm5576_vm3, %v6119_v60 }
 0x2a7   : > { %6720 = shalt.err (!%p6717_p5)
}
 0x2a8   : > { %s6721_s29 = scalar_lea.hbm %s9567_s21, 2048  ;;  %s6725_s5 = scalar_lea.hbm %s9625_s3, 4096 }
 0x2a9   : > { %p6722_p6 = scmp.ne.s32.totalorder %s9567_s21, %s6721_s29  ;;  %p6726_p10 = scmp.lt.s32.totalorder %s9567_s21, %s9625_s3 }
 0x2aa   : > { %p6727_p11 = scmp.lt.s32.totalorder %s6725_s5, %s6721_s29 }
 0x2ab   : > { %p6723_p7 = pnand %p6722_p6, %p6850_p4 }
 0x2ac   : > { %p6728_p12 = por %p6727_p11, %p6726_p10 }
 0x2ad   : > { %p6724_p9 = pneg %p6723_p7 }
 0x2af   : > { %p6729_p13 = pnand %p6728_p12, %p6724_p9 }
 0x2b1   : > { %6732 = shalt.err (!%p6729_p13)
}
 0x2b2   : > { %s6788_s8 = smov 64   ;;  %s6789_s9 = smov 4  }
 0x2b3   : > { %6584 = dma.vmem_to_hbm [thread:$0]  (%p6850_p4), %s9569_s11, 2048, %s9567_s21, %s9577_s15, %s6788_s8, %s6788_s8, %s6789_s9  }
 0x2b4 PF: > { %p6590_p0 = scmp.ge.s32.totalorder %s6783_s17, 2  ;;  %s5641_s10 = sand.u32 1, %s6763_s12  }
 0x2b5   : > { %s5642_s18 = scalar_lea.sflag [#allocation5], %s5641_s10 }
 0x2b6   : > { %p6587_p1 = pnand %p6590_p0, %p6857_p8 }
 0x2b8   : > { %p6588_p2 = pneg %p6587_p1 }
 0x2ba   : > { %6758 = dma.done.wait (%p6588_p2), %s5642_s18, 2048  }
 0x2bb   : > { %6760 = vsyncadd (%p6588_p2), %s5642_s18, 4294965248  ;;  %s16_s17 = sadd.s32 1, %s6783_s17   ;;  %s9870_s12 = smov %s6767_s13 }
 0x2bc   : > { %p13_p3 = scmp.ge.s32.totalorder %s16_s17, 4   ;;  %s9871_s13 = smov %s6771_s14 }
 0x2bd   : > { %s9872_s14 = smov %s6863_s25  ;;  %s9873_s15 = smov %s6779_s16 }
 0x2be   : > { %s9874_s16 = smov %s9876_s20  ;;  %15 = sbr.rel (!%p13_p3) target bundleno = 4 (0x4), region = 78 }
 0x2c3   :  { %5647 = vsyncpa [#allocation5], 1 }
 0x2c4   :  { %5649 = vsyncpa [#allocation5 + $0x1], 1 }

</bundles_post_ra>
